<compile_context>
chip_gen: v5e
topology: v5e:2x2
jax: 0.10.0
libtpu: 0.0.40
codegen_flags: <defaults>
</compile_context>

<pallas_src>
import functools

import jax
import jax.numpy as jnp
import numpy as np
from jax.experimental import pallas as pl
from jax.experimental.pallas import tpu as pltpu

EPS = 1e-5  # torch.nn.LayerNorm default eps


def _layernorm(y, gamma, beta):
    mean = jnp.mean(y, axis=-1, keepdims=True)
    var = jnp.mean((y - mean) ** 2, axis=-1, keepdims=True)
    return (y - mean) * jax.lax.rsqrt(var + EPS) * gamma + beta


# ---------------------------------------------------------------------------
# Kernel 1: fused [Linear -> LayerNorm -> ReLU -> (Dropout=id)] x 2
# (pert_encoder).  v*_ref packs [bias; ln_gamma; ln_beta] as a (3, F) array.
# ---------------------------------------------------------------------------
def mlp2_kernel(x_ref, w1_ref, v1_ref, w2_ref, v2_ref, o_ref):
    h = jnp.dot(x_ref[...], w1_ref[...],
                preferred_element_type=jnp.float32) + v1_ref[0:1, :]
    h = jnp.maximum(_layernorm(h, v1_ref[1:2, :], v1_ref[2:3, :]), 0.0)
    h = jnp.dot(h, w2_ref[...],
                preferred_element_type=jnp.float32) + v2_ref[0:1, :]
    o_ref[...] = jnp.maximum(_layernorm(h, v2_ref[1:2, :], v2_ref[2:3, :]), 0.0)


# ---------------------------------------------------------------------------
# Kernel 2: expression_encoder followed by the length-1-sequence
# MultiheadAttention.  With seq_len == 1 the softmax over a single key is
# exactly 1, so attention == out_proj(V_proj(x)) — folded offline into one
# affine (w3, b3) and fused here as a third matmul (exact, not approximate).
# ---------------------------------------------------------------------------
def mlp2_affine_kernel(x_ref, w1_ref, v1_ref, w2_ref, v2_ref, w3_ref, b3_ref,
                       o_ref):
    h = jnp.dot(x_ref[...], w1_ref[...],
                preferred_element_type=jnp.float32) + v1_ref[0:1, :]
    h = jnp.maximum(_layernorm(h, v1_ref[1:2, :], v1_ref[2:3, :]), 0.0)
    h = jnp.dot(h, w2_ref[...],
                preferred_element_type=jnp.float32) + v2_ref[0:1, :]
    h = jnp.maximum(_layernorm(h, v2_ref[1:2, :], v2_ref[2:3, :]), 0.0)
    o_ref[...] = jnp.dot(h, w3_ref[...],
                         preferred_element_type=jnp.float32) + b3_ref[...]


# ---------------------------------------------------------------------------
# Kernel 3: 2-input MLP block — replaces cat([a, b], 1) @ w1 by
# a @ w1a + b @ w1b (w1 split into row blocks), so the 2*hidden-wide concat is
# never materialized in HBM.  Used for combination_encoder and fusion.
# ---------------------------------------------------------------------------
def mlp2_2in_kernel(xa_ref, xb_ref, w1a_ref, w1b_ref, v1_ref, w2_ref, v2_ref,
                    o_ref):
    h = (jnp.dot(xa_ref[...], w1a_ref[...], preferred_element_type=jnp.float32)
         + jnp.dot(xb_ref[...], w1b_ref[...], preferred_element_type=jnp.float32)
         + v1_ref[0:1, :])
    h = jnp.maximum(_layernorm(h, v1_ref[1:2, :], v1_ref[2:3, :]), 0.0)
    h = jnp.dot(h, w2_ref[...],
                preferred_element_type=jnp.float32) + v2_ref[0:1, :]
    o_ref[...] = jnp.maximum(_layernorm(h, v2_ref[1:2, :], v2_ref[2:3, :]), 0.0)


# ---------------------------------------------------------------------------
# Kernel 4: output head  [Linear -> LayerNorm -> ReLU -> Linear]
# ---------------------------------------------------------------------------
def out_head_kernel(x_ref, w1_ref, v1_ref, w2_ref, b2_ref, o_ref):
    h = jnp.dot(x_ref[...], w1_ref[...],
                preferred_element_type=jnp.float32) + v1_ref[0:1, :]
    h = jnp.maximum(_layernorm(h, v1_ref[1:2, :], v1_ref[2:3, :]), 0.0)
    o_ref[...] = jnp.dot(h, w2_ref[...],
                         preferred_element_type=jnp.float32) + b2_ref[...]


# ---------------------------------------------------------------------------
# Kernel 5: GATConv (heads concatenated) + F.relu with a dense adjacency mask,
# row-tiled over destination nodes.
#   adj[i, j] = 1 iff there is an edge j -> i (self-loops already added,
#   matching GATConv add_self_loops=True).  Per-head attention scores come
#   from two dense matmuls against block-diagonal score matrices:
#     a_dst  = h_dst @ adst_bd            -> (TM, heads)
#     a_srcT = asrc_bd contract h_src     -> (heads, N)
#   The additive -1e30 mask is computed once per tile; each head writes its
#   (TM, head_dim) slice of the output directly.
# ---------------------------------------------------------------------------
def gat_relu_kernel(xd_ref, xs_ref, w_ref, adst_ref, asrc_ref, bias_ref,
                    adj_ref, o_ref, *, heads, head_dim):
    h_src = jnp.dot(xs_ref[...], w_ref[...],
                    preferred_element_type=jnp.float32)          # (N, H')
    h_dst = jnp.dot(xd_ref[...], w_ref[...],
                    preferred_element_type=jnp.float32)          # (TM, H')
    a_dst = jnp.dot(h_dst, adst_ref[...],
                    preferred_element_type=jnp.float32)          # (TM, heads)
    a_srcT = jax.lax.dot_general(asrc_ref[...], h_src,
                                 (((1,), (1,)), ((), ())),
                                 preferred_element_type=jnp.float32)  # (heads, N)
    # head-invariant additive mask (no per-head select, no post-exp `* adj`;
    # self-loops guarantee every row keeps at least one unmasked entry).
    neg_mask = jnp.where(adj_ref[...] > 0.0, 0.0, jnp.float32(-1e30))  # (TM, N)
    bias = bias_ref[...]                                               # (1, H')
    for hd in range(heads):
        lo = hd * head_dim
        hi = lo + head_dim
        e = a_dst[:, hd:hd + 1] + a_srcT[hd:hd + 1, :]           # (TM, N)
        e = jnp.where(e > 0, e, 0.2 * e)                         # LeakyReLU(0.2)
        e = e + neg_mask
        e = e - jnp.max(e, axis=-1, keepdims=True)
        p = jnp.exp(e)
        inv = pl.reciprocal(jnp.sum(p, axis=-1, keepdims=True), approx=True)
        agg = jnp.dot(p * inv, h_src[:, lo:hi],
                      preferred_element_type=jnp.float32)        # (TM, head_dim)
        o_ref[:, lo:hi] = jnp.maximum(agg + bias[:, lo:hi], 0.0)  # F.relu


# ---------------------------------------------------------------------------
# pallas_call wrappers (row-tiled grid, "parallel" node axis)
# ---------------------------------------------------------------------------
_PARALLEL = pltpu.CompilerParams(dimension_semantics=("parallel",))


def mlp2(x, p, tile_m):
    n, d_in = x.shape
    d_h, d_o = p["w1"].shape[1], p["w2"].shape[1]
    return pl.pallas_call(
        mlp2_kernel,
        out_shape=jax.ShapeDtypeStruct((n, d_o), jnp.float32),
        grid=(n // tile_m,),
        in_specs=[pl.BlockSpec((tile_m, d_in), lambda i: (i, 0)),
                  pl.BlockSpec((d_in, d_h), lambda i: (0, 0)),
                  pl.BlockSpec((3, d_h), lambda i: (0, 0)),
                  pl.BlockSpec((d_h, d_o), lambda i: (0, 0)),
                  pl.BlockSpec((3, d_o), lambda i: (0, 0))],
        out_specs=pl.BlockSpec((tile_m, d_o), lambda i: (i, 0)),
        compiler_params=_PARALLEL,
    )(x, p["w1"], p["v1"], p["w2"], p["v2"])


def mlp2_affine(x, p, tile_m):
    n, d_in = x.shape
    d_h, d_o = p["w1"].shape[1], p["w3"].shape[1]
    return pl.pallas_call(
        mlp2_affine_kernel,
        out_shape=jax.ShapeDtypeStruct((n, d_o), jnp.float32),
        grid=(n // tile_m,),
        in_specs=[pl.BlockSpec((tile_m, d_in), lambda i: (i, 0)),
                  pl.BlockSpec((d_in, d_h), lambda i: (0, 0)),
                  pl.BlockSpec((3, d_h), lambda i: (0, 0)),
                  pl.BlockSpec((d_h, d_h), lambda i: (0, 0)),
                  pl.BlockSpec((3, d_h), lambda i: (0, 0)),
                  pl.BlockSpec((d_h, d_o), lambda i: (0, 0)),
                  pl.BlockSpec((1, d_o), lambda i: (0, 0))],
        out_specs=pl.BlockSpec((tile_m, d_o), lambda i: (i, 0)),
        compiler_params=_PARALLEL,
    )(x, p["w1"], p["v1"], p["w2"], p["v2"], p["w3"], p["b3"])


def mlp2_2in(xa, xb, p, tile_m):
    n, d_a = xa.shape
    d_b = xb.shape[1]
    d_h, d_o = p["w2"].shape[0], p["w2"].shape[1]
    return pl.pallas_call(
        mlp2_2in_kernel,
        out_shape=jax.ShapeDtypeStruct((n, d_o), jnp.float32),
        grid=(n // tile_m,),
        in_specs=[pl.BlockSpec((tile_m, d_a), lambda i: (i, 0)),
                  pl.BlockSpec((tile_m, d_b), lambda i: (i, 0)),
                  pl.BlockSpec((d_a, d_h), lambda i: (0, 0)),
                  pl.BlockSpec((d_b, d_h), lambda i: (0, 0)),
                  pl.BlockSpec((3, d_h), lambda i: (0, 0)),
                  pl.BlockSpec((d_h, d_o), lambda i: (0, 0)),
                  pl.BlockSpec((3, d_o), lambda i: (0, 0))],
        out_specs=pl.BlockSpec((tile_m, d_o), lambda i: (i, 0)),
        compiler_params=_PARALLEL,
    )(xa, xb, p["w1a"], p["w1b"], p["v1"], p["w2"], p["v2"])


def out_head(x, p, tile_m):
    n, d_h = x.shape
    d_o = p["w2"].shape[1]
    return pl.pallas_call(
        out_head_kernel,
        out_shape=jax.ShapeDtypeStruct((n, d_o), jnp.float32),
        grid=(n // tile_m,),
        in_specs=[pl.BlockSpec((tile_m, d_h), lambda i: (i, 0)),
                  pl.BlockSpec((d_h, d_h), lambda i: (0, 0)),
                  pl.BlockSpec((3, d_h), lambda i: (0, 0)),
                  pl.BlockSpec((d_h, d_o), lambda i: (0, 0)),
                  pl.BlockSpec((1, d_o), lambda i: (0, 0))],
        out_specs=pl.BlockSpec((tile_m, d_o), lambda i: (i, 0)),
        compiler_params=_PARALLEL,
    )(x, p["w1"], p["v1"], p["w2"], p["b2"])


def gat_layer(x, adj, p, heads, head_dim, tile_m):
    n, f = x.shape
    hp = heads * head_dim
    kern = functools.partial(gat_relu_kernel, heads=heads, head_dim=head_dim)
    return pl.pallas_call(
        kern,
        out_shape=jax.ShapeDtypeStruct((n, hp), jnp.float32),
        grid=(n // tile_m,),
        in_specs=[pl.BlockSpec((tile_m, f), lambda i: (i, 0)),   # x (dst rows)
                  pl.BlockSpec((n, f), lambda i: (0, 0)),        # x (all sources)
                  pl.BlockSpec((f, hp), lambda i: (0, 0)),       # W
                  pl.BlockSpec((hp, heads), lambda i: (0, 0)),   # att_dst (block-diag)
                  pl.BlockSpec((heads, hp), lambda i: (0, 0)),   # att_src (block-diag)
                  pl.BlockSpec((1, hp), lambda i: (0, 0)),       # bias
                  pl.BlockSpec((tile_m, n), lambda i: (i, 0))],  # adj rows
        out_specs=pl.BlockSpec((tile_m, hp), lambda i: (i, 0)),
        compiler_params=pltpu.CompilerParams(
            dimension_semantics=("parallel",),
            vmem_limit_bytes=48 * 1024 * 1024),   # sized for v7x's 64 MiB VMEM
    )(x, x, p["w"], p["adst_bd"], p["asrc_bd"], p["bias"], adj)


# ---------------------------------------------------------------------------
# Full forward (mirrors EnhancedGEARS.forward, eval mode: dropout = identity)
# ---------------------------------------------------------------------------
def enhanced_gears_forward(params, x, pert, adj, input_dim, heads, head_dim,
                           tile_m=None):
    n = x.shape[0]
    if tile_m is None:
        tile_m = min(256, n)
    assert n % tile_m == 0
    if pert.shape[1] != input_dim:                       # F.pad on the right
        pert = jnp.pad(pert, ((0, 0), (0, input_dim - pert.shape[1])))
    # expression encoder + folded length-1 self-attention (one kernel)
    gene = mlp2_affine(x, params["expr_enc"], tile_m)
    pert_f = mlp2(pert, params["pert_enc"], tile_m)
    # TODO(synk): edge_weight is ignored, matching torch_geometric GATConv with
    # edge_dim=None (edge_attr unused when lin_edge is None).
    # TODO(synk): for realistic N (tens of thousands of genes) store adj as
    # int8/bool and fuse the n_layers GAT layers to keep adj resident in VMEM.
    for lp in params["gat"]:
        gene = gat_layer(gene, adj, lp, heads, head_dim, tile_m)
    comb = mlp2_2in(gene, pert_f, params["comb_enc"], tile_m)
    fused = mlp2_2in(gene, comb, params["fusion"], tile_m)
    return out_head(fused, params["out"], tile_m)


# ---------------------------------------------------------------------------
# Pure-JAX reference (same math, no Pallas) for a correctness check
# ---------------------------------------------------------------------------
def ref_forward(params, x, pert, adj, input_dim, heads, head_dim):
    if pert.shape[1] != input_dim:
        pert = jnp.pad(pert, ((0, 0), (0, input_dim - pert.shape[1])))

    def ln(y, g, b):
        m = y.mean(-1, keepdims=True)
        v = ((y - m) ** 2).mean(-1, keepdims=True)
        return (y - m) * jax.lax.rsqrt(v + EPS) * g + b

    def rmlp(z, p):
        h = jnp.maximum(ln(z @ p["w1"] + p["v1"][0], p["v1"][1], p["v1"][2]), 0.0)
        return jnp.maximum(ln(h @ p["w2"] + p["v2"][0], p["v2"][1], p["v2"][2]), 0.0)

    def rmlp2(a, b, p):
        h = jnp.maximum(ln(a @ p["w1a"] + b @ p["w1b"] + p["v1"][0],
                           p["v1"][1], p["v1"][2]), 0.0)
        return jnp.maximum(ln(h @ p["w2"] + p["v2"][0], p["v2"][1], p["v2"][2]), 0.0)

    e = params["expr_enc"]
    gene = rmlp(x, e) @ e["w3"] + e["b3"]
    pf = rmlp(pert, params["pert_enc"])
    for lp in params["gat"]:
        h = gene @ lp["w"]
        a_dst = h @ lp["adst_bd"]                  # (N, heads)
        a_srcT = lp["asrc_bd"] @ h.T               # (heads, N)
        outs = []
        for hd in range(heads):
            lg = a_dst[:, hd:hd + 1] + a_srcT[hd:hd + 1, :]
            lg = jnp.where(lg > 0, lg, 0.2 * lg)
            lg = jnp.where(adj > 0, lg, -1e30)
            lg = lg - lg.max(-1, keepdims=True)
            pe = jnp.exp(lg)
            alpha = pe / pe.sum(-1, keepdims=True)
            outs.append(alpha @ h[:, hd * head_dim:(hd + 1) * head_dim])
        gene = jnp.maximum(jnp.concatenate(outs, -1) + lp["bias"], 0.0)
    comb = rmlp2(gene, pf, params["comb_enc"])
    fused = rmlp2(gene, comb, params["fusion"])
    o = params["out"]
    h = jnp.maximum(ln(fused @ o["w1"] + o["v1"][0], o["v1"][1], o["v1"][2]), 0.0)
    return h @ o["w2"] + o["b2"]


# ---------------------------------------------------------------------------
# Deterministic synthetic parameter init (shapes follow the nn.Module __init__)
# ---------------------------------------------------------------------------
def init_params(key, input_dim, hidden, heads, head_dim, n_layers):
    keys = jax.random.split(key, 8 + n_layers)

    def lin(k, fi, fo):
        kw, kb = jax.random.split(k)
        w = jax.random.normal(kw, (fi, fo), jnp.float32) * (1.0 / np.sqrt(fi))
        b = jax.random.normal(kb, (fo,), jnp.float32) * 0.02
        return w, b

    def pack(b):  # [bias; ln_gamma; ln_beta] -> (3, F)
        return jnp.stack([b, jnp.ones_like(b), jnp.zeros_like(b)])

    def mlp(k, d_in, d_h, d_o):
        k1, k2 = jax.random.split(k)
        w1, b1 = lin(k1, d_in, d_h)
        w2, b2 = lin(k2, d_h, d_o)
        return dict(w1=w1, v1=pack(b1), w2=w2, v2=pack(b2))

    p = {}
    expr = mlp(keys[0], input_dim, hidden, hidden)
    # MultiheadAttention over a length-1 sequence -> out_proj(V_proj(x));
    # fold to a single affine once at setup (exact; fold done at full precision).
    kv, ko = jax.random.split(keys[2])
    wv, bv = lin(kv, hidden, hidden)
    wo, bo = lin(ko, hidden, hidden)
    expr["w3"] = jnp.dot(wv, wo, precision=jax.lax.Precision.HIGHEST)
    expr["b3"] = (jnp.dot(bv[None, :], wo, precision=jax.lax.Precision.HIGHEST)
                  + bo[None, :])
    p["expr_enc"] = expr
    p["pert_enc"] = mlp(keys[1], input_dim, hidden, hidden)

    p["gat"] = []
    eye = jnp.eye(heads, dtype=jnp.float32)
    for l in range(n_layers):
        kl = jax.random.split(keys[4 + l], 4)
        att_src = jax.random.normal(kl[1], (heads, head_dim), jnp.float32) * 0.3
        att_dst = jax.random.normal(kl[2], (heads, head_dim), jnp.float32) * 0.3
        # block-diagonal score matrices: all per-head scores in one matmul each
        adst_bd = (att_dst[:, :, None] * eye[:, None, :]).reshape(
            heads * head_dim, heads)
        asrc_bd = (eye[:, :, None] * att_src[None, :, :]).reshape(
            heads, heads * head_dim)
        p["gat"].append(dict(
            w=jax.random.normal(kl[0], (hidden, heads * head_dim), jnp.float32)
              * (1.0 / np.sqrt(hidden)),
            adst_bd=adst_bd, asrc_bd=asrc_bd,
            bias=jax.random.normal(kl[3], (1, heads * head_dim), jnp.float32) * 0.02))

    def mlp2in(k, d_a, d_b, d_h, d_o):
        k1, k2 = jax.random.split(k)
        w1, b1 = lin(k1, d_a + d_b, d_h)     # nn.Linear(2*hidden, hidden)
        w2, b2 = lin(k2, d_h, d_o)
        return dict(w1a=w1[:d_a], w1b=w1[d_a:], v1=pack(b1), w2=w2, v2=pack(b2))

    p["comb_enc"] = mlp2in(keys[4 + n_layers], hidden, hidden, hidden, hidden)
    p["fusion"] = mlp2in(keys[5 + n_layers], hidden, hidden, hidden, hidden)
    kw1, kw2 = jax.random.split(keys[6 + n_layers])
    w1, b1 = lin(kw1, hidden, hidden)
    w2, b2 = lin(kw2, hidden, input_dim)
    p["out"] = dict(w1=w1, v1=pack(b1), w2=w2, b2=b2[None, :])
    return p


def edge_index_to_adj(edge_index, num_nodes):
    # PyG convention: edge_index[0] = source j, edge_index[1] = target i
    src, dst = np.asarray(edge_index)
    adj = np.zeros((num_nodes, num_nodes), np.float32)
    adj[dst, src] = 1.0
    np.fill_diagonal(adj, 1.0)            # GATConv add_self_loops=True
    return jnp.asarray(adj)


if __name__ == "__main__":
    # small but lane/sublane-aligned shapes: features = 128 lanes, nodes % 8 == 0
    N, INPUT_DIM, HIDDEN, HEADS, N_LAYERS = 16, 128, 128, 8, 2
    PERT_DIM = 96                          # gets zero-padded to INPUT_DIM
    HEAD_DIM = HIDDEN // HEADS

    key = jax.random.PRNGKey(0)
    k_x, k_p, k_params = jax.random.split(key, 3)
    x = jax.random.normal(k_x, (N, INPUT_DIM), jnp.float32)
    pert = jax.random.normal(k_p, (N, PERT_DIM), jnp.float32)

    # deterministic bidirectional ring graph
    src = np.concatenate([np.arange(N), (np.arange(N) + 1) % N])
    dst = np.concatenate([(np.arange(N) + 1) % N, np.arange(N)])
    edge_index = np.stack([src, dst]).astype(np.int32)
    adj = edge_index_to_adj(edge_index, N)

    params = init_params(k_params, INPUT_DIM, HIDDEN, HEADS, HEAD_DIM, N_LAYERS)

    fwd = jax.jit(lambda p_, x_, pe_, a_: enhanced_gears_forward(
        p_, x_, pe_, a_, INPUT_DIM, HEADS, HEAD_DIM))
    out = jax.block_until_ready(fwd(params, x, pert, adj))

    ref = ref_forward(params, x, pert, adj, INPUT_DIM, HEADS, HEAD_DIM)
    assert out.shape == (N, INPUT_DIM)
    assert bool(jnp.all(jnp.isfinite(out)))
    # tolerance accounts for default MXU precision + approx EUP reciprocal in
    # the GAT softmax (exact division in the pure-JAX reference)
    assert bool(jnp.allclose(out, ref, atol=1e-2, rtol=1e-2)), \
        float(jnp.max(jnp.abs(out - ref)))
    print("KERNEL_OK")
</pallas_src>

<mosaic_0001>
module attributes {stable_mosaic.version = 11 : i64} {
  func.func @mlp2_affine_kernel(%arg0: i32, %arg1: memref<16x128xf32, #tpu.memory_space<vmem>>, %arg2: memref<128x128xf32, #tpu.memory_space<vmem>>, %arg3: memref<3x128xf32, #tpu.memory_space<vmem>>, %arg4: memref<128x128xf32, #tpu.memory_space<vmem>>, %arg5: memref<3x128xf32, #tpu.memory_space<vmem>>, %arg6: memref<128x128xf32, #tpu.memory_space<vmem>>, %arg7: memref<1x128xf32, #tpu.memory_space<vmem>>, %arg8: memref<16x128xf32, #tpu.memory_space<vmem>>) attributes {dimension_semantics = [#tpu.dimension_semantics<parallel>], iteration_bounds = array<i64: 1>, scalar_prefetch = 0 : i64, scratch_operands = 0 : i64, tpu.core_type = #tpu.core_type<tc>, window_params = [{transform_indices = @transform_0, window_bounds = array<i64: 16, 128>}, {pipeline_mode = #tpu.pipeline_mode<synchronous>, transform_indices = @transform_1, window_bounds = array<i64: 128, 128>}, {pipeline_mode = #tpu.pipeline_mode<synchronous>, transform_indices = @transform_2, window_bounds = array<i64: 3, 128>}, {pipeline_mode = #tpu.pipeline_mode<synchronous>, transform_indices = @transform_3, window_bounds = array<i64: 128, 128>}, {pipeline_mode = #tpu.pipeline_mode<synchronous>, transform_indices = @transform_4, window_bounds = array<i64: 3, 128>}, {pipeline_mode = #tpu.pipeline_mode<synchronous>, transform_indices = @transform_5, window_bounds = array<i64: 128, 128>}, {pipeline_mode = #tpu.pipeline_mode<synchronous>, transform_indices = @transform_6, window_bounds = array<i64: 1, 128>}, {transform_indices = @transform_7, window_bounds = array<i64: 16, 128>}]} {
    %c0 = arith.constant 0 : index
    %c0_0 = arith.constant 0 : index
    %0 = vector.load %arg1[%c0, %c0_0] : memref<16x128xf32, #tpu.memory_space<vmem>>, vector<16x128xf32>
    %c0_1 = arith.constant 0 : index
    %c0_2 = arith.constant 0 : index
    %1 = vector.load %arg2[%c0_1, %c0_2] : memref<128x128xf32, #tpu.memory_space<vmem>>, vector<128x128xf32>
    %cst = arith.constant dense<0.000000e+00> : vector<16x128xf32>
    %2 = tpu.matmul %0, %1, %cst {dimension_numbers = #tpu.dot_dimension_numbers<[1], [0], [0], [1], [0, 0, 1, 1], [], []>} : vector<16x128xf32>, vector<128x128xf32>, vector<16x128xf32> -> vector<16x128xf32>
    %c0_3 = arith.constant 0 : index
    %c0_4 = arith.constant 0 : index
    %3 = vector.load %arg3[%c0_3, %c0_4] : memref<3x128xf32, #tpu.memory_space<vmem>>, vector<1x128xf32>
    %4 = vector.broadcast %3 : vector<1x128xf32> to vector<16x128xf32>
    %5 = arith.addf %2, %4 : vector<16x128xf32>
    %c1 = arith.constant 1 : index
    %c0_5 = arith.constant 0 : index
    %6 = vector.load %arg3[%c1, %c0_5] : memref<3x128xf32, #tpu.memory_space<vmem>>, vector<1x128xf32>
    %c2 = arith.constant 2 : index
    %c0_6 = arith.constant 0 : index
    %7 = vector.load %arg3[%c2, %c0_6] : memref<3x128xf32, #tpu.memory_space<vmem>>, vector<1x128xf32>
    %cst_7 = arith.constant dense<0.000000e+00> : vector<16xf32>
    %8 = vector.multi_reduction <add>, %5, %cst_7 [1] : vector<16x128xf32> to vector<16xf32>
    %9 = vector.shape_cast %8 : vector<16xf32> to vector<16x1xf32>
    %cst_8 = arith.constant 1.280000e+02 : f32
    %10 = vector.broadcast %cst_8 : f32 to vector<16x1xf32>
    %11 = arith.divf %9, %10 : vector<16x1xf32>
    %12 = vector.broadcast %11 : vector<16x1xf32> to vector<16x128xf32>
    %13 = arith.subf %5, %12 : vector<16x128xf32>
    %14 = arith.mulf %13, %13 : vector<16x128xf32>
    %cst_9 = arith.constant dense<0.000000e+00> : vector<16xf32>
    %15 = vector.multi_reduction <add>, %14, %cst_9 [1] : vector<16x128xf32> to vector<16xf32>
    %16 = vector.shape_cast %15 : vector<16xf32> to vector<16x1xf32>
    %cst_10 = arith.constant 1.280000e+02 : f32
    %17 = vector.broadcast %cst_10 : f32 to vector<16x1xf32>
    %18 = arith.divf %16, %17 : vector<16x1xf32>
    %19 = vector.broadcast %11 : vector<16x1xf32> to vector<16x128xf32>
    %20 = arith.subf %5, %19 : vector<16x128xf32>
    %cst_11 = arith.constant 9.99999974E-6 : f32
    %21 = vector.broadcast %cst_11 : f32 to vector<16x1xf32>
    %22 = arith.addf %18, %21 : vector<16x1xf32>
    %23 = math.rsqrt %22 : vector<16x1xf32>
    %24 = vector.broadcast %23 : vector<16x1xf32> to vector<16x128xf32>
    %25 = arith.mulf %20, %24 : vector<16x128xf32>
    %26 = vector.broadcast %6 : vector<1x128xf32> to vector<16x128xf32>
    %27 = arith.mulf %25, %26 : vector<16x128xf32>
    %28 = vector.broadcast %7 : vector<1x128xf32> to vector<16x128xf32>
    %29 = arith.addf %27, %28 : vector<16x128xf32>
    %cst_12 = arith.constant 0.000000e+00 : f32
    %30 = vector.broadcast %cst_12 : f32 to vector<16x128xf32>
    %31 = arith.maximumf %29, %30 : vector<16x128xf32>
    %c0_13 = arith.constant 0 : index
    %c0_14 = arith.constant 0 : index
    %32 = vector.load %arg4[%c0_13, %c0_14] : memref<128x128xf32, #tpu.memory_space<vmem>>, vector<128x128xf32>
    %cst_15 = arith.constant dense<0.000000e+00> : vector<16x128xf32>
    %33 = tpu.matmul %31, %32, %cst_15 {dimension_numbers = #tpu.dot_dimension_numbers<[1], [0], [0], [1], [0, 0, 1, 1], [], []>} : vector<16x128xf32>, vector<128x128xf32>, vector<16x128xf32> -> vector<16x128xf32>
    %c0_16 = arith.constant 0 : index
    %c0_17 = arith.constant 0 : index
    %34 = vector.load %arg5[%c0_16, %c0_17] : memref<3x128xf32, #tpu.memory_space<vmem>>, vector<1x128xf32>
    %35 = vector.broadcast %34 : vector<1x128xf32> to vector<16x128xf32>
    %36 = arith.addf %33, %35 : vector<16x128xf32>
    %c1_18 = arith.constant 1 : index
    %c0_19 = arith.constant 0 : index
    %37 = vector.load %arg5[%c1_18, %c0_19] : memref<3x128xf32, #tpu.memory_space<vmem>>, vector<1x128xf32>
    %c2_20 = arith.constant 2 : index
    %c0_21 = arith.constant 0 : index
    %38 = vector.load %arg5[%c2_20, %c0_21] : memref<3x128xf32, #tpu.memory_space<vmem>>, vector<1x128xf32>
    %cst_22 = arith.constant dense<0.000000e+00> : vector<16xf32>
    %39 = vector.multi_reduction <add>, %36, %cst_22 [1] : vector<16x128xf32> to vector<16xf32>
    %40 = vector.shape_cast %39 : vector<16xf32> to vector<16x1xf32>
    %cst_23 = arith.constant 1.280000e+02 : f32
    %41 = vector.broadcast %cst_23 : f32 to vector<16x1xf32>
    %42 = arith.divf %40, %41 : vector<16x1xf32>
    %43 = vector.broadcast %42 : vector<16x1xf32> to vector<16x128xf32>
    %44 = arith.subf %36, %43 : vector<16x128xf32>
    %45 = arith.mulf %44, %44 : vector<16x128xf32>
    %cst_24 = arith.constant dense<0.000000e+00> : vector<16xf32>
    %46 = vector.multi_reduction <add>, %45, %cst_24 [1] : vector<16x128xf32> to vector<16xf32>
    %47 = vector.shape_cast %46 : vector<16xf32> to vector<16x1xf32>
    %cst_25 = arith.constant 1.280000e+02 : f32
    %48 = vector.broadcast %cst_25 : f32 to vector<16x1xf32>
    %49 = arith.divf %47, %48 : vector<16x1xf32>
    %50 = vector.broadcast %42 : vector<16x1xf32> to vector<16x128xf32>
    %51 = arith.subf %36, %50 : vector<16x128xf32>
    %cst_26 = arith.constant 9.99999974E-6 : f32
    %52 = vector.broadcast %cst_26 : f32 to vector<16x1xf32>
    %53 = arith.addf %49, %52 : vector<16x1xf32>
    %54 = math.rsqrt %53 : vector<16x1xf32>
    %55 = vector.broadcast %54 : vector<16x1xf32> to vector<16x128xf32>
    %56 = arith.mulf %51, %55 : vector<16x128xf32>
    %57 = vector.broadcast %37 : vector<1x128xf32> to vector<16x128xf32>
    %58 = arith.mulf %56, %57 : vector<16x128xf32>
    %59 = vector.broadcast %38 : vector<1x128xf32> to vector<16x128xf32>
    %60 = arith.addf %58, %59 : vector<16x128xf32>
    %cst_27 = arith.constant 0.000000e+00 : f32
    %61 = vector.broadcast %cst_27 : f32 to vector<16x128xf32>
    %62 = arith.maximumf %60, %61 : vector<16x128xf32>
    %c0_28 = arith.constant 0 : index
    %c0_29 = arith.constant 0 : index
    %63 = vector.load %arg6[%c0_28, %c0_29] : memref<128x128xf32, #tpu.memory_space<vmem>>, vector<128x128xf32>
    %cst_30 = arith.constant dense<0.000000e+00> : vector<16x128xf32>
    %64 = tpu.matmul %62, %63, %cst_30 {dimension_numbers = #tpu.dot_dimension_numbers<[1], [0], [0], [1], [0, 0, 1, 1], [], []>} : vector<16x128xf32>, vector<128x128xf32>, vector<16x128xf32> -> vector<16x128xf32>
    %c0_31 = arith.constant 0 : index
    %c0_32 = arith.constant 0 : index
    %65 = vector.load %arg7[%c0_31, %c0_32] : memref<1x128xf32, #tpu.memory_space<vmem>>, vector<1x128xf32>
    %66 = vector.broadcast %65 : vector<1x128xf32> to vector<16x128xf32>
    %67 = arith.addf %64, %66 : vector<16x128xf32>
    %c0_33 = arith.constant 0 : index
    %c0_34 = arith.constant 0 : index
    %68 = vector.load %arg8[%c0_33, %c0_34] : memref<16x128xf32, #tpu.memory_space<vmem>>, vector<16x128xf32>
    tpu.vector_store %arg8[%c0_33, %c0_34], %67 {strides = array<i32>} : memref<16x128xf32, #tpu.memory_space<vmem>>, vector<16x128xf32>,
    return
  }
  func.func @transform_0(%arg0: i32) -> (i32, i32) {
    %c0_i32 = arith.constant 0 : i32
    %c0_i32_0 = arith.constant 0 : i32
    return %arg0, %c0_i32 : i32, i32
  }
  func.func @transform_1(%arg0: i32) -> (i32, i32) {
    %c0_i32 = arith.constant 0 : i32
    %c0_i32_0 = arith.constant 0 : i32
    %c0_i32_1 = arith.constant 0 : i32
    return %c0_i32, %c0_i32_0 : i32, i32
  }
  func.func @transform_2(%arg0: i32) -> (i32, i32) {
    %c0_i32 = arith.constant 0 : i32
    %c0_i32_0 = arith.constant 0 : i32
    %c0_i32_1 = arith.constant 0 : i32
    return %c0_i32, %c0_i32_0 : i32, i32
  }
  func.func @transform_3(%arg0: i32) -> (i32, i32) {
    %c0_i32 = arith.constant 0 : i32
    %c0_i32_0 = arith.constant 0 : i32
    %c0_i32_1 = arith.constant 0 : i32
    return %c0_i32, %c0_i32_0 : i32, i32
  }
  func.func @transform_4(%arg0: i32) -> (i32, i32) {
    %c0_i32 = arith.constant 0 : i32
    %c0_i32_0 = arith.constant 0 : i32
    %c0_i32_1 = arith.constant 0 : i32
    return %c0_i32, %c0_i32_0 : i32, i32
  }
  func.func @transform_5(%arg0: i32) -> (i32, i32) {
    %c0_i32 = arith.constant 0 : i32
    %c0_i32_0 = arith.constant 0 : i32
    %c0_i32_1 = arith.constant 0 : i32
    return %c0_i32, %c0_i32_0 : i32, i32
  }
  func.func @transform_6(%arg0: i32) -> (i32, i32) {
    %c0_i32 = arith.constant 0 : i32
    %c0_i32_0 = arith.constant 0 : i32
    %c0_i32_1 = arith.constant 0 : i32
    return %c0_i32, %c0_i32_0 : i32, i32
  }
  func.func @transform_7(%arg0: i32) -> (i32, i32) {
    %c0_i32 = arith.constant 0 : i32
    %c0_i32_0 = arith.constant 0 : i32
    return %arg0, %c0_i32 : i32, i32
  }
}

module attributes {stable_mosaic.version = 11 : i64} {
  func.func @gat_relu_kernel(%arg0: i32, %arg1: memref<16x128xf32, #tpu.memory_space<vmem>>, %arg2: memref<16x128xf32, #tpu.memory_space<vmem>>, %arg3: memref<128x128xf32, #tpu.memory_space<vmem>>, %arg4: memref<128x8xf32, #tpu.memory_space<vmem>>, %arg5: memref<8x128xf32, #tpu.memory_space<vmem>>, %arg6: memref<1x128xf32, #tpu.memory_space<vmem>>, %arg7: memref<16x16xf32, #tpu.memory_space<vmem>>, %arg8: memref<16x128xf32, #tpu.memory_space<vmem>>) attributes {dimension_semantics = [#tpu.dimension_semantics<parallel>], iteration_bounds = array<i64: 1>, scalar_prefetch = 0 : i64, scratch_operands = 0 : i64, tpu.core_type = #tpu.core_type<tc>, window_params = [{transform_indices = @transform_0, window_bounds = array<i64: 16, 128>}, {pipeline_mode = #tpu.pipeline_mode<synchronous>, transform_indices = @transform_1, window_bounds = array<i64: 16, 128>}, {pipeline_mode = #tpu.pipeline_mode<synchronous>, transform_indices = @transform_2, window_bounds = array<i64: 128, 128>}, {pipeline_mode = #tpu.pipeline_mode<synchronous>, transform_indices = @transform_3, window_bounds = array<i64: 128, 8>}, {pipeline_mode = #tpu.pipeline_mode<synchronous>, transform_indices = @transform_4, window_bounds = array<i64: 8, 128>}, {pipeline_mode = #tpu.pipeline_mode<synchronous>, transform_indices = @transform_5, window_bounds = array<i64: 1, 128>}, {transform_indices = @transform_6, window_bounds = array<i64: 16, 16>}, {transform_indices = @transform_7, window_bounds = array<i64: 16, 128>}]} {
    %c0 = arith.constant 0 : index
    %c0_0 = arith.constant 0 : index
    %0 = vector.load %arg2[%c0, %c0_0] : memref<16x128xf32, #tpu.memory_space<vmem>>, vector<16x128xf32>
    %c0_1 = arith.constant 0 : index
    %c0_2 = arith.constant 0 : index
    %1 = vector.load %arg3[%c0_1, %c0_2] : memref<128x128xf32, #tpu.memory_space<vmem>>, vector<128x128xf32>
    %cst = arith.constant dense<0.000000e+00> : vector<16x128xf32>
    %2 = tpu.matmul %0, %1, %cst {dimension_numbers = #tpu.dot_dimension_numbers<[1], [0], [0], [1], [0, 0, 1, 1], [], []>} : vector<16x128xf32>, vector<128x128xf32>, vector<16x128xf32> -> vector<16x128xf32>
    %c0_3 = arith.constant 0 : index
    %c0_4 = arith.constant 0 : index
    %3 = vector.load %arg1[%c0_3, %c0_4] : memref<16x128xf32, #tpu.memory_space<vmem>>, vector<16x128xf32>
    %c0_5 = arith.constant 0 : index
    %c0_6 = arith.constant 0 : index
    %4 = vector.load %arg3[%c0_5, %c0_6] : memref<128x128xf32, #tpu.memory_space<vmem>>, vector<128x128xf32>
    %cst_7 = arith.constant dense<0.000000e+00> : vector<16x128xf32>
    %5 = tpu.matmul %3, %4, %cst_7 {dimension_numbers = #tpu.dot_dimension_numbers<[1], [0], [0], [1], [0, 0, 1, 1], [], []>} : vector<16x128xf32>, vector<128x128xf32>, vector<16x128xf32> -> vector<16x128xf32>
    %c0_8 = arith.constant 0 : index
    %c0_9 = arith.constant 0 : index
    %6 = vector.load %arg4[%c0_8, %c0_9] : memref<128x8xf32, #tpu.memory_space<vmem>>, vector<128x8xf32>
    %cst_10 = arith.constant dense<0.000000e+00> : vector<16x8xf32>
    %7 = tpu.matmul %5, %6, %cst_10 {dimension_numbers = #tpu.dot_dimension_numbers<[1], [0], [0], [1], [0, 0, 1, 1], [], []>} : vector<16x128xf32>, vector<128x8xf32>, vector<16x8xf32> -> vector<16x8xf32>
    %c0_11 = arith.constant 0 : index
    %c0_12 = arith.constant 0 : index
    %8 = vector.load %arg5[%c0_11, %c0_12] : memref<8x128xf32, #tpu.memory_space<vmem>>, vector<8x128xf32>
    %cst_13 = arith.constant dense<0.000000e+00> : vector<8x16xf32>
    %9 = tpu.matmul %8, %2, %cst_13 {dimension_numbers = #tpu.dot_dimension_numbers<[1], [1], [0], [0], [0, 0, 1, 0], [], []>} : vector<8x128xf32>, vector<16x128xf32>, vector<8x16xf32> -> vector<8x16xf32>
    %c0_14 = arith.constant 0 : index
    %c0_15 = arith.constant 0 : index
    %10 = vector.load %arg7[%c0_14, %c0_15] : memref<16x16xf32, #tpu.memory_space<vmem>>, vector<16x16xf32>
    %cst_16 = arith.constant 0.000000e+00 : f32
    %11 = vector.broadcast %cst_16 : f32 to vector<16x16xf32>
    %12 = arith.cmpf ogt, %10, %11 : vector<16x16xf32>
    %cst_17 = arith.constant 0.000000e+00 : f32
    %cst_18 = arith.constant -1.000000e+30 : f32
    %13 = vector.broadcast %cst_17 : f32 to vector<16x16xf32>
    %14 = vector.broadcast %cst_18 : f32 to vector<16x16xf32>
    %15 = arith.select %12, %13, %14 : vector<16x16xi1>, vector<16x16xf32>
    %c0_19 = arith.constant 0 : index
    %c0_20 = arith.constant 0 : index
    %16 = vector.load %arg6[%c0_19, %c0_20] : memref<1x128xf32, #tpu.memory_space<vmem>>, vector<1x128xf32>
    %17 = vector.extract_strided_slice %7 {offsets = [0, 0], sizes = [16, 1], strides = [1, 1]} : vector<16x8xf32> to vector<16x1xf32>
    %18 = vector.extract_strided_slice %9 {offsets = [0, 0], sizes = [1, 16], strides = [1, 1]} : vector<8x16xf32> to vector<1x16xf32>
    %19 = vector.broadcast %17 : vector<16x1xf32> to vector<16x16xf32>
    %20 = vector.broadcast %18 : vector<1x16xf32> to vector<16x16xf32>
    %21 = arith.addf %19, %20 : vector<16x16xf32>
    %cst_21 = arith.constant 0.000000e+00 : f32
    %22 = vector.broadcast %cst_21 : f32 to vector<16x16xf32>
    %23 = arith.cmpf ogt, %21, %22 : vector<16x16xf32>
    %cst_22 = arith.constant 2.000000e-01 : f32
    %24 = vector.broadcast %cst_22 : f32 to vector<16x16xf32>
    %25 = arith.mulf %24, %21 : vector<16x16xf32>
    %26 = arith.select %23, %21, %25 : vector<16x16xi1>, vector<16x16xf32>
    %27 = arith.addf %26, %15 : vector<16x16xf32>
    %cst_23 = arith.constant dense<0xFF800000> : vector<16xf32>
    %28 = vector.multi_reduction <maximumf>, %27, %cst_23 [1] : vector<16x16xf32> to vector<16xf32>
    %29 = vector.shape_cast %28 : vector<16xf32> to vector<16x1xf32>
    %30 = vector.broadcast %29 : vector<16x1xf32> to vector<16x16xf32>
    %31 = arith.subf %27, %30 : vector<16x16xf32>
    %32 = math.exp %31 : vector<16x16xf32>
    %cst_24 = arith.constant dense<0.000000e+00> : vector<16xf32>
    %33 = vector.multi_reduction <add>, %32, %cst_24 [1] : vector<16x16xf32> to vector<16xf32>
    %34 = vector.shape_cast %33 : vector<16xf32> to vector<16x1xf32>
    %35 = tpu.reciprocal %34 {approx = true} : vector<16x1xf32> -> vector<16x1xf32>
    %36 = vector.broadcast %35 : vector<16x1xf32> to vector<16x16xf32>
    %37 = arith.mulf %32, %36 : vector<16x16xf32>
    %38 = vector.extract_strided_slice %2 {offsets = [0, 0], sizes = [16, 16], strides = [1, 1]} : vector<16x128xf32> to vector<16x16xf32>
    %cst_25 = arith.constant dense<0.000000e+00> : vector<16x16xf32>
    %39 = tpu.matmul %37, %38, %cst_25 {dimension_numbers = #tpu.dot_dimension_numbers<[1], [0], [0], [1], [0, 0, 1, 1], [], []>} : vector<16x16xf32>, vector<16x16xf32>, vector<16x16xf32> -> vector<16x16xf32>
    %40 = vector.extract_strided_slice %16 {offsets = [0, 0], sizes = [1, 16], strides = [1, 1]} : vector<1x128xf32> to vector<1x16xf32>
    %41 = vector.broadcast %40 : vector<1x16xf32> to vector<16x16xf32>
    %42 = arith.addf %39, %41 : vector<16x16xf32>
    %cst_26 = arith.constant 0.000000e+00 : f32
    %43 = vector.broadcast %cst_26 : f32 to vector<16x16xf32>
    %44 = arith.maximumf %42, %43 : vector<16x16xf32>
    %c0_27 = arith.constant 0 : index
    %c0_28 = arith.constant 0 : index
    %45 = vector.load %arg8[%c0_27, %c0_28] : memref<16x128xf32, #tpu.memory_space<vmem>>, vector<16x16xf32>
    tpu.vector_store %arg8[%c0_27, %c0_28], %44 {strides = array<i32>} : memref<16x128xf32, #tpu.memory_space<vmem>>, vector<16x16xf32>,
    %46 = vector.extract_strided_slice %7 {offsets = [0, 1], sizes = [16, 1], strides = [1, 1]} : vector<16x8xf32> to vector<16x1xf32>
    %47 = vector.extract_strided_slice %9 {offsets = [1, 0], sizes = [1, 16], strides = [1, 1]} : vector<8x16xf32> to vector<1x16xf32>
    %48 = vector.broadcast %46 : vector<16x1xf32> to vector<16x16xf32>
    %49 = vector.broadcast %47 : vector<1x16xf32> to vector<16x16xf32>
    %50 = arith.addf %48, %49 : vector<16x16xf32>
    %cst_29 = arith.constant 0.000000e+00 : f32
    %51 = vector.broadcast %cst_29 : f32 to vector<16x16xf32>
    %52 = arith.cmpf ogt, %50, %51 : vector<16x16xf32>
    %cst_30 = arith.constant 2.000000e-01 : f32
    %53 = vector.broadcast %cst_30 : f32 to vector<16x16xf32>
    %54 = arith.mulf %53, %50 : vector<16x16xf32>
    %55 = arith.select %52, %50, %54 : vector<16x16xi1>, vector<16x16xf32>
    %56 = arith.addf %55, %15 : vector<16x16xf32>
    %cst_31 = arith.constant dense<0xFF800000> : vector<16xf32>
    %57 = vector.multi_reduction <maximumf>, %56, %cst_31 [1] : vector<16x16xf32> to vector<16xf32>
    %58 = vector.shape_cast %57 : vector<16xf32> to vector<16x1xf32>
    %59 = vector.broadcast %58 : vector<16x1xf32> to vector<16x16xf32>
    %60 = arith.subf %56, %59 : vector<16x16xf32>
    %61 = math.exp %60 : vector<16x16xf32>
    %cst_32 = arith.constant dense<0.000000e+00> : vector<16xf32>
    %62 = vector.multi_reduction <add>, %61, %cst_32 [1] : vector<16x16xf32> to vector<16xf32>
    %63 = vector.shape_cast %62 : vector<16xf32> to vector<16x1xf32>
    %64 = tpu.reciprocal %63 {approx = true} : vector<16x1xf32> -> vector<16x1xf32>
    %65 = vector.broadcast %64 : vector<16x1xf32> to vector<16x16xf32>
    %66 = arith.mulf %61, %65 : vector<16x16xf32>
    %67 = vector.extract_strided_slice %2 {offsets = [0, 16], sizes = [16, 16], strides = [1, 1]} : vector<16x128xf32> to vector<16x16xf32>
    %cst_33 = arith.constant dense<0.000000e+00> : vector<16x16xf32>
    %68 = tpu.matmul %66, %67, %cst_33 {dimension_numbers = #tpu.dot_dimension_numbers<[1], [0], [0], [1], [0, 0, 1, 1], [], []>} : vector<16x16xf32>, vector<16x16xf32>, vector<16x16xf32> -> vector<16x16xf32>
    %69 = vector.extract_strided_slice %16 {offsets = [0, 16], sizes = [1, 16], strides = [1, 1]} : vector<1x128xf32> to vector<1x16xf32>
    %70 = vector.broadcast %69 : vector<1x16xf32> to vector<16x16xf32>
    %71 = arith.addf %68, %70 : vector<16x16xf32>
    %cst_34 = arith.constant 0.000000e+00 : f32
    %72 = vector.broadcast %cst_34 : f32 to vector<16x16xf32>
    %73 = arith.maximumf %71, %72 : vector<16x16xf32>
    %c0_35 = arith.constant 0 : index
    %c16 = arith.constant 16 : index
    %74 = vector.load %arg8[%c0_35, %c16] : memref<16x128xf32, #tpu.memory_space<vmem>>, vector<16x16xf32>
    tpu.vector_store %arg8[%c0_35, %c16], %73 {strides = array<i32>} : memref<16x128xf32, #tpu.memory_space<vmem>>, vector<16x16xf32>,
    %75 = vector.extract_strided_slice %7 {offsets = [0, 2], sizes = [16, 1], strides = [1, 1]} : vector<16x8xf32> to vector<16x1xf32>
    %76 = vector.extract_strided_slice %9 {offsets = [2, 0], sizes = [1, 16], strides = [1, 1]} : vector<8x16xf32> to vector<1x16xf32>
    %77 = vector.broadcast %75 : vector<16x1xf32> to vector<16x16xf32>
    %78 = vector.broadcast %76 : vector<1x16xf32> to vector<16x16xf32>
    %79 = arith.addf %77, %78 : vector<16x16xf32>
    %cst_36 = arith.constant 0.000000e+00 : f32
    %80 = vector.broadcast %cst_36 : f32 to vector<16x16xf32>
    %81 = arith.cmpf ogt, %79, %80 : vector<16x16xf32>
    %cst_37 = arith.constant 2.000000e-01 : f32
    %82 = vector.broadcast %cst_37 : f32 to vector<16x16xf32>
    %83 = arith.mulf %82, %79 : vector<16x16xf32>
    %84 = arith.select %81, %79, %83 : vector<16x16xi1>, vector<16x16xf32>
    %85 = arith.addf %84, %15 : vector<16x16xf32>
    %cst_38 = arith.constant dense<0xFF800000> : vector<16xf32>
    %86 = vector.multi_reduction <maximumf>, %85, %cst_38 [1] : vector<16x16xf32> to vector<16xf32>
    %87 = vector.shape_cast %86 : vector<16xf32> to vector<16x1xf32>
    %88 = vector.broadcast %87 : vector<16x1xf32> to vector<16x16xf32>
    %89 = arith.subf %85, %88 : vector<16x16xf32>
    %90 = math.exp %89 : vector<16x16xf32>
    %cst_39 = arith.constant dense<0.000000e+00> : vector<16xf32>
    %91 = vector.multi_reduction <add>, %90, %cst_39 [1] : vector<16x16xf32> to vector<16xf32>
    %92 = vector.shape_cast %91 : vector<16xf32> to vector<16x1xf32>
    %93 = tpu.reciprocal %92 {approx = true} : vector<16x1xf32> -> vector<16x1xf32>
    %94 = vector.broadcast %93 : vector<16x1xf32> to vector<16x16xf32>
    %95 = arith.mulf %90, %94 : vector<16x16xf32>
    %96 = vector.extract_strided_slice %2 {offsets = [0, 32], sizes = [16, 16], strides = [1, 1]} : vector<16x128xf32> to vector<16x16xf32>
    %cst_40 = arith.constant dense<0.000000e+00> : vector<16x16xf32>
    %97 = tpu.matmul %95, %96, %cst_40 {dimension_numbers = #tpu.dot_dimension_numbers<[1], [0], [0], [1], [0, 0, 1, 1], [], []>} : vector<16x16xf32>, vector<16x16xf32>, vector<16x16xf32> -> vector<16x16xf32>
    %98 = vector.extract_strided_slice %16 {offsets = [0, 32], sizes = [1, 16], strides = [1, 1]} : vector<1x128xf32> to vector<1x16xf32>
    %99 = vector.broadcast %98 : vector<1x16xf32> to vector<16x16xf32>
    %100 = arith.addf %97, %99 : vector<16x16xf32>
    %cst_41 = arith.constant 0.000000e+00 : f32
    %101 = vector.broadcast %cst_41 : f32 to vector<16x16xf32>
    %102 = arith.maximumf %100, %101 : vector<16x16xf32>
    %c0_42 = arith.constant 0 : index
    %c32 = arith.constant 32 : index
    %103 = vector.load %arg8[%c0_42, %c32] : memref<16x128xf32, #tpu.memory_space<vmem>>, vector<16x16xf32>
    tpu.vector_store %arg8[%c0_42, %c32], %102 {strides = array<i32>} : memref<16x128xf32, #tpu.memory_space<vmem>>, vector<16x16xf32>,
    %104 = vector.extract_strided_slice %7 {offsets = [0, 3], sizes = [16, 1], strides = [1, 1]} : vector<16x8xf32> to vector<16x1xf32>
    %105 = vector.extract_strided_slice %9 {offsets = [3, 0], sizes = [1, 16], strides = [1, 1]} : vector<8x16xf32> to vector<1x16xf32>
    %106 = vector.broadcast %104 : vector<16x1xf32> to vector<16x16xf32>
    %107 = vector.broadcast %105 : vector<1x16xf32> to vector<16x16xf32>
    %108 = arith.addf %106, %107 : vector<16x16xf32>
    %cst_43 = arith.constant 0.000000e+00 : f32
    %109 = vector.broadcast %cst_43 : f32 to vector<16x16xf32>
    %110 = arith.cmpf ogt, %108, %109 : vector<16x16xf32>
    %cst_44 = arith.constant 2.000000e-01 : f32
    %111 = vector.broadcast %cst_44 : f32 to vector<16x16xf32>
    %112 = arith.mulf %111, %108 : vector<16x16xf32>
    %113 = arith.select %110, %108, %112 : vector<16x16xi1>, vector<16x16xf32>
    %114 = arith.addf %113, %15 : vector<16x16xf32>
    %cst_45 = arith.constant dense<0xFF800000> : vector<16xf32>
    %115 = vector.multi_reduction <maximumf>, %114, %cst_45 [1] : vector<16x16xf32> to vector<16xf32>
    %116 = vector.shape_cast %115 : vector<16xf32> to vector<16x1xf32>
    %117 = vector.broadcast %116 : vector<16x1xf32> to vector<16x16xf32>
    %118 = arith.subf %114, %117 : vector<16x16xf32>
    %119 = math.exp %118 : vector<16x16xf32>
    %cst_46 = arith.constant dense<0.000000e+00> : vector<16xf32>
    %120 = vector.multi_reduction <add>, %119, %cst_46 [1] : vector<16x16xf32> to vector<16xf32>
    %121 = vector.shape_cast %120 : vector<16xf32> to vector<16x1xf32>
    %122 = tpu.reciprocal %121 {approx = true} : vector<16x1xf32> -> vector<16x1xf32>
    %123 = vector.broadcast %122 : vector<16x1xf32> to vector<16x16xf32>
    %124 = arith.mulf %119, %123 : vector<16x16xf32>
    %125 = vector.extract_strided_slice %2 {offsets = [0, 48], sizes = [16, 16], strides = [1, 1]} : vector<16x128xf32> to vector<16x16xf32>
    %cst_47 = arith.constant dense<0.000000e+00> : vector<16x16xf32>
    %126 = tpu.matmul %124, %125, %cst_47 {dimension_numbers = #tpu.dot_dimension_numbers<[1], [0], [0], [1], [0, 0, 1, 1], [], []>} : vector<16x16xf32>, vector<16x16xf32>, vector<16x16xf32> -> vector<16x16xf32>
    %127 = vector.extract_strided_slice %16 {offsets = [0, 48], sizes = [1, 16], strides = [1, 1]} : vector<1x128xf32> to vector<1x16xf32>
    %128 = vector.broadcast %127 : vector<1x16xf32> to vector<16x16xf32>
    %129 = arith.addf %126, %128 : vector<16x16xf32>
    %cst_48 = arith.constant 0.000000e+00 : f32
    %130 = vector.broadcast %cst_48 : f32 to vector<16x16xf32>
    %131 = arith.maximumf %129, %130 : vector<16x16xf32>
    %c0_49 = arith.constant 0 : index
    %c48 = arith.constant 48 : index
    %132 = vector.load %arg8[%c0_49, %c48] : memref<16x128xf32, #tpu.memory_space<vmem>>, vector<16x16xf32>
    tpu.vector_store %arg8[%c0_49, %c48], %131 {strides = array<i32>} : memref<16x128xf32, #tpu.memory_space<vmem>>, vector<16x16xf32>,
    %133 = vector.extract_strided_slice %7 {offsets = [0, 4], sizes = [16, 1], strides = [1, 1]} : vector<16x8xf32> to vector<16x1xf32>
    %134 = vector.extract_strided_slice %9 {offsets = [4, 0], sizes = [1, 16], strides = [1, 1]} : vector<8x16xf32> to vector<1x16xf32>
    %135 = vector.broadcast %133 : vector<16x1xf32> to vector<16x16xf32>
    %136 = vector.broadcast %134 : vector<1x16xf32> to vector<16x16xf32>
    %137 = arith.addf %135, %136 : vector<16x16xf32>
    %cst_50 = arith.constant 0.000000e+00 : f32
    %138 = vector.broadcast %cst_50 : f32 to vector<16x16xf32>
    %139 = arith.cmpf ogt, %137, %138 : vector<16x16xf32>
    %cst_51 = arith.constant 2.000000e-01 : f32
    %140 = vector.broadcast %cst_51 : f32 to vector<16x16xf32>
    %141 = arith.mulf %140, %137 : vector<16x16xf32>
    %142 = arith.select %139, %137, %141 : vector<16x16xi1>, vector<16x16xf32>
    %143 = arith.addf %142, %15 : vector<16x16xf32>
    %cst_52 = arith.constant dense<0xFF800000> : vector<16xf32>
    %144 = vector.multi_reduction <maximumf>, %143, %cst_52 [1] : vector<16x16xf32> to vector<16xf32>
    %145 = vector.shape_cast %144 : vector<16xf32> to vector<16x1xf32>
    %146 = vector.broadcast %145 : vector<16x1xf32> to vector<16x16xf32>
    %147 = arith.subf %143, %146 : vector<16x16xf32>
    %148 = math.exp %147 : vector<16x16xf32>
    %cst_53 = arith.constant dense<0.000000e+00> : vector<16xf32>
    %149 = vector.multi_reduction <add>, %148, %cst_53 [1] : vector<16x16xf32> to vector<16xf32>
    %150 = vector.shape_cast %149 : vector<16xf32> to vector<16x1xf32>
    %151 = tpu.reciprocal %150 {approx = true} : vector<16x1xf32> -> vector<16x1xf32>
    %152 = vector.broadcast %151 : vector<16x1xf32> to vector<16x16xf32>
    %153 = arith.mulf %148, %152 : vector<16x16xf32>
    %154 = vector.extract_strided_slice %2 {offsets = [0, 64], sizes = [16, 16], strides = [1, 1]} : vector<16x128xf32> to vector<16x16xf32>
    %cst_54 = arith.constant dense<0.000000e+00> : vector<16x16xf32>
    %155 = tpu.matmul %153, %154, %cst_54 {dimension_numbers = #tpu.dot_dimension_numbers<[1], [0], [0], [1], [0, 0, 1, 1], [], []>} : vector<16x16xf32>, vector<16x16xf32>, vector<16x16xf32> -> vector<16x16xf32>
    %156 = vector.extract_strided_slice %16 {offsets = [0, 64], sizes = [1, 16], strides = [1, 1]} : vector<1x128xf32> to vector<1x16xf32>
    %157 = vector.broadcast %156 : vector<1x16xf32> to vector<16x16xf32>
    %158 = arith.addf %155, %157 : vector<16x16xf32>
    %cst_55 = arith.constant 0.000000e+00 : f32
    %159 = vector.broadcast %cst_55 : f32 to vector<16x16xf32>
    %160 = arith.maximumf %158, %159 : vector<16x16xf32>
    %c0_56 = arith.constant 0 : index
    %c64 = arith.constant 64 : index
    %161 = vector.load %arg8[%c0_56, %c64] : memref<16x128xf32, #tpu.memory_space<vmem>>, vector<16x16xf32>
    tpu.vector_store %arg8[%c0_56, %c64], %160 {strides = array<i32>} : memref<16x128xf32, #tpu.memory_space<vmem>>, vector<16x16xf32>,
    %162 = vector.extract_strided_slice %7 {offsets = [0, 5], sizes = [16, 1], strides = [1, 1]} : vector<16x8xf32> to vector<16x1xf32>
    %163 = vector.extract_strided_slice %9 {offsets = [5, 0], sizes = [1, 16], strides = [1, 1]} : vector<8x16xf32> to vector<1x16xf32>
    %164 = vector.broadcast %162 : vector<16x1xf32> to vector<16x16xf32>
    %165 = vector.broadcast %163 : vector<1x16xf32> to vector<16x16xf32>
    %166 = arith.addf %164, %165 : vector<16x16xf32>
    %cst_57 = arith.constant 0.000000e+00 : f32
    %167 = vector.broadcast %cst_57 : f32 to vector<16x16xf32>
    %168 = arith.cmpf ogt, %166, %167 : vector<16x16xf32>
    %cst_58 = arith.constant 2.000000e-01 : f32
    %169 = vector.broadcast %cst_58 : f32 to vector<16x16xf32>
    %170 = arith.mulf %169, %166 : vector<16x16xf32>
    %171 = arith.select %168, %166, %170 : vector<16x16xi1>, vector<16x16xf32>
    %172 = arith.addf %171, %15 : vector<16x16xf32>
    %cst_59 = arith.constant dense<0xFF800000> : vector<16xf32>
    %173 = vector.multi_reduction <maximumf>, %172, %cst_59 [1] : vector<16x16xf32> to vector<16xf32>
    %174 = vector.shape_cast %173 : vector<16xf32> to vector<16x1xf32>
    %175 = vector.broadcast %174 : vector<16x1xf32> to vector<16x16xf32>
    %176 = arith.subf %172, %175 : vector<16x16xf32>
    %177 = math.exp %176 : vector<16x16xf32>
    %cst_60 = arith.constant dense<0.000000e+00> : vector<16xf32>
    %178 = vector.multi_reduction <add>, %177, %cst_60 [1] : vector<16x16xf32> to vector<16xf32>
    %179 = vector.shape_cast %178 : vector<16xf32> to vector<16x1xf32>
    %180 = tpu.reciprocal %179 {approx = true} : vector<16x1xf32> -> vector<16x1xf32>
    %181 = vector.broadcast %180 : vector<16x1xf32> to vector<16x16xf32>
    %182 = arith.mulf %177, %181 : vector<16x16xf32>
    %183 = vector.extract_strided_slice %2 {offsets = [0, 80], sizes = [16, 16], strides = [1, 1]} : vector<16x128xf32> to vector<16x16xf32>
    %cst_61 = arith.constant dense<0.000000e+00> : vector<16x16xf32>
    %184 = tpu.matmul %182, %183, %cst_61 {dimension_numbers = #tpu.dot_dimension_numbers<[1], [0], [0], [1], [0, 0, 1, 1], [], []>} : vector<16x16xf32>, vector<16x16xf32>, vector<16x16xf32> -> vector<16x16xf32>
    %185 = vector.extract_strided_slice %16 {offsets = [0, 80], sizes = [1, 16], strides = [1, 1]} : vector<1x128xf32> to vector<1x16xf32>
    %186 = vector.broadcast %185 : vector<1x16xf32> to vector<16x16xf32>
    %187 = arith.addf %184, %186 : vector<16x16xf32>
    %cst_62 = arith.constant 0.000000e+00 : f32
    %188 = vector.broadcast %cst_62 : f32 to vector<16x16xf32>
    %189 = arith.maximumf %187, %188 : vector<16x16xf32>
    %c0_63 = arith.constant 0 : index
    %c80 = arith.constant 80 : index
    %190 = vector.load %arg8[%c0_63, %c80] : memref<16x128xf32, #tpu.memory_space<vmem>>, vector<16x16xf32>
    tpu.vector_store %arg8[%c0_63, %c80], %189 {strides = array<i32>} : memref<16x128xf32, #tpu.memory_space<vmem>>, vector<16x16xf32>,
    %191 = vector.extract_strided_slice %7 {offsets = [0, 6], sizes = [16, 1], strides = [1, 1]} : vector<16x8xf32> to vector<16x1xf32>
    %192 = vector.extract_strided_slice %9 {offsets = [6, 0], sizes = [1, 16], strides = [1, 1]} : vector<8x16xf32> to vector<1x16xf32>
    %193 = vector.broadcast %191 : vector<16x1xf32> to vector<16x16xf32>
    %194 = vector.broadcast %192 : vector<1x16xf32> to vector<16x16xf32>
    %195 = arith.addf %193, %194 : vector<16x16xf32>
    %cst_64 = arith.constant 0.000000e+00 : f32
    %196 = vector.broadcast %cst_64 : f32 to vector<16x16xf32>
    %197 = arith.cmpf ogt, %195, %196 : vector<16x16xf32>
    %cst_65 = arith.constant 2.000000e-01 : f32
    %198 = vector.broadcast %cst_65 : f32 to vector<16x16xf32>
    %199 = arith.mulf %198, %195 : vector<16x16xf32>
    %200 = arith.select %197, %195, %199 : vector<16x16xi1>, vector<16x16xf32>
    %201 = arith.addf %200, %15 : vector<16x16xf32>
    %cst_66 = arith.constant dense<0xFF800000> : vector<16xf32>
    %202 = vector.multi_reduction <maximumf>, %201, %cst_66 [1] : vector<16x16xf32> to vector<16xf32>
    %203 = vector.shape_cast %202 : vector<16xf32> to vector<16x1xf32>
    %204 = vector.broadcast %203 : vector<16x1xf32> to vector<16x16xf32>
    %205 = arith.subf %201, %204 : vector<16x16xf32>
    %206 = math.exp %205 : vector<16x16xf32>
    %cst_67 = arith.constant dense<0.000000e+00> : vector<16xf32>
    %207 = vector.multi_reduction <add>, %206, %cst_67 [1] : vector<16x16xf32> to vector<16xf32>
    %208 = vector.shape_cast %207 : vector<16xf32> to vector<16x1xf32>
    %209 = tpu.reciprocal %208 {approx = true} : vector<16x1xf32> -> vector<16x1xf32>
    %210 = vector.broadcast %209 : vector<16x1xf32> to vector<16x16xf32>
    %211 = arith.mulf %206, %210 : vector<16x16xf32>
    %212 = vector.extract_strided_slice %2 {offsets = [0, 96], sizes = [16, 16], strides = [1, 1]} : vector<16x128xf32> to vector<16x16xf32>
    %cst_68 = arith.constant dense<0.000000e+00> : vector<16x16xf32>
    %213 = tpu.matmul %211, %212, %cst_68 {dimension_numbers = #tpu.dot_dimension_numbers<[1], [0], [0], [1], [0, 0, 1, 1], [], []>} : vector<16x16xf32>, vector<16x16xf32>, vector<16x16xf32> -> vector<16x16xf32>
    %214 = vector.extract_strided_slice %16 {offsets = [0, 96], sizes = [1, 16], strides = [1, 1]} : vector<1x128xf32> to vector<1x16xf32>
    %215 = vector.broadcast %214 : vector<1x16xf32> to vector<16x16xf32>
    %216 = arith.addf %213, %215 : vector<16x16xf32>
    %cst_69 = arith.constant 0.000000e+00 : f32
    %217 = vector.broadcast %cst_69 : f32 to vector<16x16xf32>
    %218 = arith.maximumf %216, %217 : vector<16x16xf32>
    %c0_70 = arith.constant 0 : index
    %c96 = arith.constant 96 : index
    %219 = vector.load %arg8[%c0_70, %c96] : memref<16x128xf32, #tpu.memory_space<vmem>>, vector<16x16xf32>
    tpu.vector_store %arg8[%c0_70, %c96], %218 {strides = array<i32>} : memref<16x128xf32, #tpu.memory_space<vmem>>, vector<16x16xf32>,
    %220 = vector.extract_strided_slice %7 {offsets = [0, 7], sizes = [16, 1], strides = [1, 1]} : vector<16x8xf32> to vector<16x1xf32>
    %221 = vector.extract_strided_slice %9 {offsets = [7, 0], sizes = [1, 16], strides = [1, 1]} : vector<8x16xf32> to vector<1x16xf32>
    %222 = vector.broadcast %220 : vector<16x1xf32> to vector<16x16xf32>
    %223 = vector.broadcast %221 : vector<1x16xf32> to vector<16x16xf32>
    %224 = arith.addf %222, %223 : vector<16x16xf32>
    %cst_71 = arith.constant 0.000000e+00 : f32
    %225 = vector.broadcast %cst_71 : f32 to vector<16x16xf32>
    %226 = arith.cmpf ogt, %224, %225 : vector<16x16xf32>
    %cst_72 = arith.constant 2.000000e-01 : f32
    %227 = vector.broadcast %cst_72 : f32 to vector<16x16xf32>
    %228 = arith.mulf %227, %224 : vector<16x16xf32>
    %229 = arith.select %226, %224, %228 : vector<16x16xi1>, vector<16x16xf32>
    %230 = arith.addf %229, %15 : vector<16x16xf32>
    %cst_73 = arith.constant dense<0xFF800000> : vector<16xf32>
    %231 = vector.multi_reduction <maximumf>, %230, %cst_73 [1] : vector<16x16xf32> to vector<16xf32>
    %232 = vector.shape_cast %231 : vector<16xf32> to vector<16x1xf32>
    %233 = vector.broadcast %232 : vector<16x1xf32> to vector<16x16xf32>
    %234 = arith.subf %230, %233 : vector<16x16xf32>
    %235 = math.exp %234 : vector<16x16xf32>
    %cst_74 = arith.constant dense<0.000000e+00> : vector<16xf32>
    %236 = vector.multi_reduction <add>, %235, %cst_74 [1] : vector<16x16xf32> to vector<16xf32>
    %237 = vector.shape_cast %236 : vector<16xf32> to vector<16x1xf32>
    %238 = tpu.reciprocal %237 {approx = true} : vector<16x1xf32> -> vector<16x1xf32>
    %239 = vector.broadcast %238 : vector<16x1xf32> to vector<16x16xf32>
    %240 = arith.mulf %235, %239 : vector<16x16xf32>
    %241 = vector.extract_strided_slice %2 {offsets = [0, 112], sizes = [16, 16], strides = [1, 1]} : vector<16x128xf32> to vector<16x16xf32>
    %cst_75 = arith.constant dense<0.000000e+00> : vector<16x16xf32>
    %242 = tpu.matmul %240, %241, %cst_75 {dimension_numbers = #tpu.dot_dimension_numbers<[1], [0], [0], [1], [0, 0, 1, 1], [], []>} : vector<16x16xf32>, vector<16x16xf32>, vector<16x16xf32> -> vector<16x16xf32>
    %243 = vector.extract_strided_slice %16 {offsets = [0, 112], sizes = [1, 16], strides = [1, 1]} : vector<1x128xf32> to vector<1x16xf32>
    %244 = vector.broadcast %243 : vector<1x16xf32> to vector<16x16xf32>
    %245 = arith.addf %242, %244 : vector<16x16xf32>
    %cst_76 = arith.constant 0.000000e+00 : f32
    %246 = vector.broadcast %cst_76 : f32 to vector<16x16xf32>
    %247 = arith.maximumf %245, %246 : vector<16x16xf32>
    %c0_77 = arith.constant 0 : index
    %c112 = arith.constant 112 : index
    %248 = vector.load %arg8[%c0_77, %c112] : memref<16x128xf32, #tpu.memory_space<vmem>>, vector<16x16xf32>
    tpu.vector_store %arg8[%c0_77, %c112], %247 {strides = array<i32>} : memref<16x128xf32, #tpu.memory_space<vmem>>, vector<16x16xf32>,
    return
  }
  func.func @transform_0(%arg0: i32) -> (i32, i32) {
    %c0_i32 = arith.constant 0 : i32
    %c0_i32_0 = arith.constant 0 : i32
    return %arg0, %c0_i32 : i32, i32
  }
  func.func @transform_1(%arg0: i32) -> (i32, i32) {
    %c0_i32 = arith.constant 0 : i32
    %c0_i32_0 = arith.constant 0 : i32
    %c0_i32_1 = arith.constant 0 : i32
    return %c0_i32, %c0_i32_0 : i32, i32
  }
  func.func @transform_2(%arg0: i32) -> (i32, i32) {
    %c0_i32 = arith.constant 0 : i32
    %c0_i32_0 = arith.constant 0 : i32
    %c0_i32_1 = arith.constant 0 : i32
    return %c0_i32, %c0_i32_0 : i32, i32
  }
  func.func @transform_3(%arg0: i32) -> (i32, i32) {
    %c0_i32 = arith.constant 0 : i32
    %c0_i32_0 = arith.constant 0 : i32
    %c0_i32_1 = arith.constant 0 : i32
    return %c0_i32, %c0_i32_0 : i32, i32
  }
  func.func @transform_4(%arg0: i32) -> (i32, i32) {
    %c0_i32 = arith.constant 0 : i32
    %c0_i32_0 = arith.constant 0 : i32
    %c0_i32_1 = arith.constant 0 : i32
    return %c0_i32, %c0_i32_0 : i32, i32
  }
  func.func @transform_5(%arg0: i32) -> (i32, i32) {
    %c0_i32 = arith.constant 0 : i32
    %c0_i32_0 = arith.constant 0 : i32
    %c0_i32_1 = arith.constant 0 : i32
    return %c0_i32, %c0_i32_0 : i32, i32
  }
  func.func @transform_6(%arg0: i32) -> (i32, i32) {
    %c0_i32 = arith.constant 0 : i32
    %c0_i32_0 = arith.constant 0 : i32
    return %arg0, %c0_i32 : i32, i32
  }
  func.func @transform_7(%arg0: i32) -> (i32, i32) {
    %c0_i32 = arith.constant 0 : i32
    %c0_i32_0 = arith.constant 0 : i32
    return %arg0, %c0_i32 : i32, i32
  }
}

module attributes {stable_mosaic.version = 11 : i64} {
  func.func @gat_relu_kernel(%arg0: i32, %arg1: memref<16x128xf32, #tpu.memory_space<vmem>>, %arg2: memref<16x128xf32, #tpu.memory_space<vmem>>, %arg3: memref<128x128xf32, #tpu.memory_space<vmem>>, %arg4: memref<128x8xf32, #tpu.memory_space<vmem>>, %arg5: memref<8x128xf32, #tpu.memory_space<vmem>>, %arg6: memref<1x128xf32, #tpu.memory_space<vmem>>, %arg7: memref<16x16xf32, #tpu.memory_space<vmem>>, %arg8: memref<16x128xf32, #tpu.memory_space<vmem>>) attributes {dimension_semantics = [#tpu.dimension_semantics<parallel>], iteration_bounds = array<i64: 1>, scalar_prefetch = 0 : i64, scratch_operands = 0 : i64, tpu.core_type = #tpu.core_type<tc>, window_params = [{transform_indices = @transform_0, window_bounds = array<i64: 16, 128>}, {pipeline_mode = #tpu.pipeline_mode<synchronous>, transform_indices = @transform_1, window_bounds = array<i64: 16, 128>}, {pipeline_mode = #tpu.pipeline_mode<synchronous>, transform_indices = @transform_2, window_bounds = array<i64: 128, 128>}, {pipeline_mode = #tpu.pipeline_mode<synchronous>, transform_indices = @transform_3, window_bounds = array<i64: 128, 8>}, {pipeline_mode = #tpu.pipeline_mode<synchronous>, transform_indices = @transform_4, window_bounds = array<i64: 8, 128>}, {pipeline_mode = #tpu.pipeline_mode<synchronous>, transform_indices = @transform_5, window_bounds = array<i64: 1, 128>}, {transform_indices = @transform_6, window_bounds = array<i64: 16, 16>}, {transform_indices = @transform_7, window_bounds = array<i64: 16, 128>}]} {
    %c0 = arith.constant 0 : index
    %c0_0 = arith.constant 0 : index
    %0 = vector.load %arg2[%c0, %c0_0] : memref<16x128xf32, #tpu.memory_space<vmem>>, vector<16x128xf32>
    %c0_1 = arith.constant 0 : index
    %c0_2 = arith.constant 0 : index
    %1 = vector.load %arg3[%c0_1, %c0_2] : memref<128x128xf32, #tpu.memory_space<vmem>>, vector<128x128xf32>
    %cst = arith.constant dense<0.000000e+00> : vector<16x128xf32>
    %2 = tpu.matmul %0, %1, %cst {dimension_numbers = #tpu.dot_dimension_numbers<[1], [0], [0], [1], [0, 0, 1, 1], [], []>} : vector<16x128xf32>, vector<128x128xf32>, vector<16x128xf32> -> vector<16x128xf32>
    %c0_3 = arith.constant 0 : index
    %c0_4 = arith.constant 0 : index
    %3 = vector.load %arg1[%c0_3, %c0_4] : memref<16x128xf32, #tpu.memory_space<vmem>>, vector<16x128xf32>
    %c0_5 = arith.constant 0 : index
    %c0_6 = arith.constant 0 : index
    %4 = vector.load %arg3[%c0_5, %c0_6] : memref<128x128xf32, #tpu.memory_space<vmem>>, vector<128x128xf32>
    %cst_7 = arith.constant dense<0.000000e+00> : vector<16x128xf32>
    %5 = tpu.matmul %3, %4, %cst_7 {dimension_numbers = #tpu.dot_dimension_numbers<[1], [0], [0], [1], [0, 0, 1, 1], [], []>} : vector<16x128xf32>, vector<128x128xf32>, vector<16x128xf32> -> vector<16x128xf32>
    %c0_8 = arith.constant 0 : index
    %c0_9 = arith.constant 0 : index
    %6 = vector.load %arg4[%c0_8, %c0_9] : memref<128x8xf32, #tpu.memory_space<vmem>>, vector<128x8xf32>
    %cst_10 = arith.constant dense<0.000000e+00> : vector<16x8xf32>
    %7 = tpu.matmul %5, %6, %cst_10 {dimension_numbers = #tpu.dot_dimension_numbers<[1], [0], [0], [1], [0, 0, 1, 1], [], []>} : vector<16x128xf32>, vector<128x8xf32>, vector<16x8xf32> -> vector<16x8xf32>
    %c0_11 = arith.constant 0 : index
    %c0_12 = arith.constant 0 : index
    %8 = vector.load %arg5[%c0_11, %c0_12] : memref<8x128xf32, #tpu.memory_space<vmem>>, vector<8x128xf32>
    %cst_13 = arith.constant dense<0.000000e+00> : vector<8x16xf32>
    %9 = tpu.matmul %8, %2, %cst_13 {dimension_numbers = #tpu.dot_dimension_numbers<[1], [1], [0], [0], [0, 0, 1, 0], [], []>} : vector<8x128xf32>, vector<16x128xf32>, vector<8x16xf32> -> vector<8x16xf32>
    %c0_14 = arith.constant 0 : index
    %c0_15 = arith.constant 0 : index
    %10 = vector.load %arg7[%c0_14, %c0_15] : memref<16x16xf32, #tpu.memory_space<vmem>>, vector<16x16xf32>
    %cst_16 = arith.constant 0.000000e+00 : f32
    %11 = vector.broadcast %cst_16 : f32 to vector<16x16xf32>
    %12 = arith.cmpf ogt, %10, %11 : vector<16x16xf32>
    %cst_17 = arith.constant 0.000000e+00 : f32
    %cst_18 = arith.constant -1.000000e+30 : f32
    %13 = vector.broadcast %cst_17 : f32 to vector<16x16xf32>
    %14 = vector.broadcast %cst_18 : f32 to vector<16x16xf32>
    %15 = arith.select %12, %13, %14 : vector<16x16xi1>, vector<16x16xf32>
    %c0_19 = arith.constant 0 : index
    %c0_20 = arith.constant 0 : index
    %16 = vector.load %arg6[%c0_19, %c0_20] : memref<1x128xf32, #tpu.memory_space<vmem>>, vector<1x128xf32>
    %17 = vector.extract_strided_slice %7 {offsets = [0, 0], sizes = [16, 1], strides = [1, 1]} : vector<16x8xf32> to vector<16x1xf32>
    %18 = vector.extract_strided_slice %9 {offsets = [0, 0], sizes = [1, 16], strides = [1, 1]} : vector<8x16xf32> to vector<1x16xf32>
    %19 = vector.broadcast %17 : vector<16x1xf32> to vector<16x16xf32>
    %20 = vector.broadcast %18 : vector<1x16xf32> to vector<16x16xf32>
    %21 = arith.addf %19, %20 : vector<16x16xf32>
    %cst_21 = arith.constant 0.000000e+00 : f32
    %22 = vector.broadcast %cst_21 : f32 to vector<16x16xf32>
    %23 = arith.cmpf ogt, %21, %22 : vector<16x16xf32>
    %cst_22 = arith.constant 2.000000e-01 : f32
    %24 = vector.broadcast %cst_22 : f32 to vector<16x16xf32>
    %25 = arith.mulf %24, %21 : vector<16x16xf32>
    %26 = arith.select %23, %21, %25 : vector<16x16xi1>, vector<16x16xf32>
    %27 = arith.addf %26, %15 : vector<16x16xf32>
    %cst_23 = arith.constant dense<0xFF800000> : vector<16xf32>
    %28 = vector.multi_reduction <maximumf>, %27, %cst_23 [1] : vector<16x16xf32> to vector<16xf32>
    %29 = vector.shape_cast %28 : vector<16xf32> to vector<16x1xf32>
    %30 = vector.broadcast %29 : vector<16x1xf32> to vector<16x16xf32>
    %31 = arith.subf %27, %30 : vector<16x16xf32>
    %32 = math.exp %31 : vector<16x16xf32>
    %cst_24 = arith.constant dense<0.000000e+00> : vector<16xf32>
    %33 = vector.multi_reduction <add>, %32, %cst_24 [1] : vector<16x16xf32> to vector<16xf32>
    %34 = vector.shape_cast %33 : vector<16xf32> to vector<16x1xf32>
    %35 = tpu.reciprocal %34 {approx = true} : vector<16x1xf32> -> vector<16x1xf32>
    %36 = vector.broadcast %35 : vector<16x1xf32> to vector<16x16xf32>
    %37 = arith.mulf %32, %36 : vector<16x16xf32>
    %38 = vector.extract_strided_slice %2 {offsets = [0, 0], sizes = [16, 16], strides = [1, 1]} : vector<16x128xf32> to vector<16x16xf32>
    %cst_25 = arith.constant dense<0.000000e+00> : vector<16x16xf32>
    %39 = tpu.matmul %37, %38, %cst_25 {dimension_numbers = #tpu.dot_dimension_numbers<[1], [0], [0], [1], [0, 0, 1, 1], [], []>} : vector<16x16xf32>, vector<16x16xf32>, vector<16x16xf32> -> vector<16x16xf32>
    %40 = vector.extract_strided_slice %16 {offsets = [0, 0], sizes = [1, 16], strides = [1, 1]} : vector<1x128xf32> to vector<1x16xf32>
    %41 = vector.broadcast %40 : vector<1x16xf32> to vector<16x16xf32>
    %42 = arith.addf %39, %41 : vector<16x16xf32>
    %cst_26 = arith.constant 0.000000e+00 : f32
    %43 = vector.broadcast %cst_26 : f32 to vector<16x16xf32>
    %44 = arith.maximumf %42, %43 : vector<16x16xf32>
    %c0_27 = arith.constant 0 : index
    %c0_28 = arith.constant 0 : index
    %45 = vector.load %arg8[%c0_27, %c0_28] : memref<16x128xf32, #tpu.memory_space<vmem>>, vector<16x16xf32>
    tpu.vector_store %arg8[%c0_27, %c0_28], %44 {strides = array<i32>} : memref<16x128xf32, #tpu.memory_space<vmem>>, vector<16x16xf32>,
    %46 = vector.extract_strided_slice %7 {offsets = [0, 1], sizes = [16, 1], strides = [1, 1]} : vector<16x8xf32> to vector<16x1xf32>
    %47 = vector.extract_strided_slice %9 {offsets = [1, 0], sizes = [1, 16], strides = [1, 1]} : vector<8x16xf32> to vector<1x16xf32>
    %48 = vector.broadcast %46 : vector<16x1xf32> to vector<16x16xf32>
    %49 = vector.broadcast %47 : vector<1x16xf32> to vector<16x16xf32>
    %50 = arith.addf %48, %49 : vector<16x16xf32>
    %cst_29 = arith.constant 0.000000e+00 : f32
    %51 = vector.broadcast %cst_29 : f32 to vector<16x16xf32>
    %52 = arith.cmpf ogt, %50, %51 : vector<16x16xf32>
    %cst_30 = arith.constant 2.000000e-01 : f32
    %53 = vector.broadcast %cst_30 : f32 to vector<16x16xf32>
    %54 = arith.mulf %53, %50 : vector<16x16xf32>
    %55 = arith.select %52, %50, %54 : vector<16x16xi1>, vector<16x16xf32>
    %56 = arith.addf %55, %15 : vector<16x16xf32>
    %cst_31 = arith.constant dense<0xFF800000> : vector<16xf32>
    %57 = vector.multi_reduction <maximumf>, %56, %cst_31 [1] : vector<16x16xf32> to vector<16xf32>
    %58 = vector.shape_cast %57 : vector<16xf32> to vector<16x1xf32>
    %59 = vector.broadcast %58 : vector<16x1xf32> to vector<16x16xf32>
    %60 = arith.subf %56, %59 : vector<16x16xf32>
    %61 = math.exp %60 : vector<16x16xf32>
    %cst_32 = arith.constant dense<0.000000e+00> : vector<16xf32>
    %62 = vector.multi_reduction <add>, %61, %cst_32 [1] : vector<16x16xf32> to vector<16xf32>
    %63 = vector.shape_cast %62 : vector<16xf32> to vector<16x1xf32>
    %64 = tpu.reciprocal %63 {approx = true} : vector<16x1xf32> -> vector<16x1xf32>
    %65 = vector.broadcast %64 : vector<16x1xf32> to vector<16x16xf32>
    %66 = arith.mulf %61, %65 : vector<16x16xf32>
    %67 = vector.extract_strided_slice %2 {offsets = [0, 16], sizes = [16, 16], strides = [1, 1]} : vector<16x128xf32> to vector<16x16xf32>
    %cst_33 = arith.constant dense<0.000000e+00> : vector<16x16xf32>
    %68 = tpu.matmul %66, %67, %cst_33 {dimension_numbers = #tpu.dot_dimension_numbers<[1], [0], [0], [1], [0, 0, 1, 1], [], []>} : vector<16x16xf32>, vector<16x16xf32>, vector<16x16xf32> -> vector<16x16xf32>
    %69 = vector.extract_strided_slice %16 {offsets = [0, 16], sizes = [1, 16], strides = [1, 1]} : vector<1x128xf32> to vector<1x16xf32>
    %70 = vector.broadcast %69 : vector<1x16xf32> to vector<16x16xf32>
    %71 = arith.addf %68, %70 : vector<16x16xf32>
    %cst_34 = arith.constant 0.000000e+00 : f32
    %72 = vector.broadcast %cst_34 : f32 to vector<16x16xf32>
    %73 = arith.maximumf %71, %72 : vector<16x16xf32>
    %c0_35 = arith.constant 0 : index
    %c16 = arith.constant 16 : index
    %74 = vector.load %arg8[%c0_35, %c16] : memref<16x128xf32, #tpu.memory_space<vmem>>, vector<16x16xf32>
    tpu.vector_store %arg8[%c0_35, %c16], %73 {strides = array<i32>} : memref<16x128xf32, #tpu.memory_space<vmem>>, vector<16x16xf32>,
    %75 = vector.extract_strided_slice %7 {offsets = [0, 2], sizes = [16, 1], strides = [1, 1]} : vector<16x8xf32> to vector<16x1xf32>
    %76 = vector.extract_strided_slice %9 {offsets = [2, 0], sizes = [1, 16], strides = [1, 1]} : vector<8x16xf32> to vector<1x16xf32>
    %77 = vector.broadcast %75 : vector<16x1xf32> to vector<16x16xf32>
    %78 = vector.broadcast %76 : vector<1x16xf32> to vector<16x16xf32>
    %79 = arith.addf %77, %78 : vector<16x16xf32>
    %cst_36 = arith.constant 0.000000e+00 : f32
    %80 = vector.broadcast %cst_36 : f32 to vector<16x16xf32>
    %81 = arith.cmpf ogt, %79, %80 : vector<16x16xf32>
    %cst_37 = arith.constant 2.000000e-01 : f32
    %82 = vector.broadcast %cst_37 : f32 to vector<16x16xf32>
    %83 = arith.mulf %82, %79 : vector<16x16xf32>
    %84 = arith.select %81, %79, %83 : vector<16x16xi1>, vector<16x16xf32>
    %85 = arith.addf %84, %15 : vector<16x16xf32>
    %cst_38 = arith.constant dense<0xFF800000> : vector<16xf32>
    %86 = vector.multi_reduction <maximumf>, %85, %cst_38 [1] : vector<16x16xf32> to vector<16xf32>
    %87 = vector.shape_cast %86 : vector<16xf32> to vector<16x1xf32>
    %88 = vector.broadcast %87 : vector<16x1xf32> to vector<16x16xf32>
    %89 = arith.subf %85, %88 : vector<16x16xf32>
    %90 = math.exp %89 : vector<16x16xf32>
    %cst_39 = arith.constant dense<0.000000e+00> : vector<16xf32>
    %91 = vector.multi_reduction <add>, %90, %cst_39 [1] : vector<16x16xf32> to vector<16xf32>
    %92 = vector.shape_cast %91 : vector<16xf32> to vector<16x1xf32>
    %93 = tpu.reciprocal %92 {approx = true} : vector<16x1xf32> -> vector<16x1xf32>
    %94 = vector.broadcast %93 : vector<16x1xf32> to vector<16x16xf32>
    %95 = arith.mulf %90, %94 : vector<16x16xf32>
    %96 = vector.extract_strided_slice %2 {offsets = [0, 32], sizes = [16, 16], strides = [1, 1]} : vector<16x128xf32> to vector<16x16xf32>
    %cst_40 = arith.constant dense<0.000000e+00> : vector<16x16xf32>
    %97 = tpu.matmul %95, %96, %cst_40 {dimension_numbers = #tpu.dot_dimension_numbers<[1], [0], [0], [1], [0, 0, 1, 1], [], []>} : vector<16x16xf32>, vector<16x16xf32>, vector<16x16xf32> -> vector<16x16xf32>
    %98 = vector.extract_strided_slice %16 {offsets = [0, 32], sizes = [1, 16], strides = [1, 1]} : vector<1x128xf32> to vector<1x16xf32>
    %99 = vector.broadcast %98 : vector<1x16xf32> to vector<16x16xf32>
    %100 = arith.addf %97, %99 : vector<16x16xf32>
    %cst_41 = arith.constant 0.000000e+00 : f32
    %101 = vector.broadcast %cst_41 : f32 to vector<16x16xf32>
    %102 = arith.maximumf %100, %101 : vector<16x16xf32>
    %c0_42 = arith.constant 0 : index
    %c32 = arith.constant 32 : index
    %103 = vector.load %arg8[%c0_42, %c32] : memref<16x128xf32, #tpu.memory_space<vmem>>, vector<16x16xf32>
    tpu.vector_store %arg8[%c0_42, %c32], %102 {strides = array<i32>} : memref<16x128xf32, #tpu.memory_space<vmem>>, vector<16x16xf32>,
    %104 = vector.extract_strided_slice %7 {offsets = [0, 3], sizes = [16, 1], strides = [1, 1]} : vector<16x8xf32> to vector<16x1xf32>
    %105 = vector.extract_strided_slice %9 {offsets = [3, 0], sizes = [1, 16], strides = [1, 1]} : vector<8x16xf32> to vector<1x16xf32>
    %106 = vector.broadcast %104 : vector<16x1xf32> to vector<16x16xf32>
    %107 = vector.broadcast %105 : vector<1x16xf32> to vector<16x16xf32>
    %108 = arith.addf %106, %107 : vector<16x16xf32>
    %cst_43 = arith.constant 0.000000e+00 : f32
    %109 = vector.broadcast %cst_43 : f32 to vector<16x16xf32>
    %110 = arith.cmpf ogt, %108, %109 : vector<16x16xf32>
    %cst_44 = arith.constant 2.000000e-01 : f32
    %111 = vector.broadcast %cst_44 : f32 to vector<16x16xf32>
    %112 = arith.mulf %111, %108 : vector<16x16xf32>
    %113 = arith.select %110, %108, %112 : vector<16x16xi1>, vector<16x16xf32>
    %114 = arith.addf %113, %15 : vector<16x16xf32>
    %cst_45 = arith.constant dense<0xFF800000> : vector<16xf32>
    %115 = vector.multi_reduction <maximumf>, %114, %cst_45 [1] : vector<16x16xf32> to vector<16xf32>
    %116 = vector.shape_cast %115 : vector<16xf32> to vector<16x1xf32>
    %117 = vector.broadcast %116 : vector<16x1xf32> to vector<16x16xf32>
    %118 = arith.subf %114, %117 : vector<16x16xf32>
    %119 = math.exp %118 : vector<16x16xf32>
    %cst_46 = arith.constant dense<0.000000e+00> : vector<16xf32>
    %120 = vector.multi_reduction <add>, %119, %cst_46 [1] : vector<16x16xf32> to vector<16xf32>
    %121 = vector.shape_cast %120 : vector<16xf32> to vector<16x1xf32>
    %122 = tpu.reciprocal %121 {approx = true} : vector<16x1xf32> -> vector<16x1xf32>
    %123 = vector.broadcast %122 : vector<16x1xf32> to vector<16x16xf32>
    %124 = arith.mulf %119, %123 : vector<16x16xf32>
    %125 = vector.extract_strided_slice %2 {offsets = [0, 48], sizes = [16, 16], strides = [1, 1]} : vector<16x128xf32> to vector<16x16xf32>
    %cst_47 = arith.constant dense<0.000000e+00> : vector<16x16xf32>
    %126 = tpu.matmul %124, %125, %cst_47 {dimension_numbers = #tpu.dot_dimension_numbers<[1], [0], [0], [1], [0, 0, 1, 1], [], []>} : vector<16x16xf32>, vector<16x16xf32>, vector<16x16xf32> -> vector<16x16xf32>
    %127 = vector.extract_strided_slice %16 {offsets = [0, 48], sizes = [1, 16], strides = [1, 1]} : vector<1x128xf32> to vector<1x16xf32>
    %128 = vector.broadcast %127 : vector<1x16xf32> to vector<16x16xf32>
    %129 = arith.addf %126, %128 : vector<16x16xf32>
    %cst_48 = arith.constant 0.000000e+00 : f32
    %130 = vector.broadcast %cst_48 : f32 to vector<16x16xf32>
    %131 = arith.maximumf %129, %130 : vector<16x16xf32>
    %c0_49 = arith.constant 0 : index
    %c48 = arith.constant 48 : index
    %132 = vector.load %arg8[%c0_49, %c48] : memref<16x128xf32, #tpu.memory_space<vmem>>, vector<16x16xf32>
    tpu.vector_store %arg8[%c0_49, %c48], %131 {strides = array<i32>} : memref<16x128xf32, #tpu.memory_space<vmem>>, vector<16x16xf32>,
    %133 = vector.extract_strided_slice %7 {offsets = [0, 4], sizes = [16, 1], strides = [1, 1]} : vector<16x8xf32> to vector<16x1xf32>
    %134 = vector.extract_strided_slice %9 {offsets = [4, 0], sizes = [1, 16], strides = [1, 1]} : vector<8x16xf32> to vector<1x16xf32>
    %135 = vector.broadcast %133 : vector<16x1xf32> to vector<16x16xf32>
    %136 = vector.broadcast %134 : vector<1x16xf32> to vector<16x16xf32>
    %137 = arith.addf %135, %136 : vector<16x16xf32>
    %cst_50 = arith.constant 0.000000e+00 : f32
    %138 = vector.broadcast %cst_50 : f32 to vector<16x16xf32>
    %139 = arith.cmpf ogt, %137, %138 : vector<16x16xf32>
    %cst_51 = arith.constant 2.000000e-01 : f32
    %140 = vector.broadcast %cst_51 : f32 to vector<16x16xf32>
    %141 = arith.mulf %140, %137 : vector<16x16xf32>
    %142 = arith.select %139, %137, %141 : vector<16x16xi1>, vector<16x16xf32>
    %143 = arith.addf %142, %15 : vector<16x16xf32>
    %cst_52 = arith.constant dense<0xFF800000> : vector<16xf32>
    %144 = vector.multi_reduction <maximumf>, %143, %cst_52 [1] : vector<16x16xf32> to vector<16xf32>
    %145 = vector.shape_cast %144 : vector<16xf32> to vector<16x1xf32>
    %146 = vector.broadcast %145 : vector<16x1xf32> to vector<16x16xf32>
    %147 = arith.subf %143, %146 : vector<16x16xf32>
    %148 = math.exp %147 : vector<16x16xf32>
    %cst_53 = arith.constant dense<0.000000e+00> : vector<16xf32>
    %149 = vector.multi_reduction <add>, %148, %cst_53 [1] : vector<16x16xf32> to vector<16xf32>
    %150 = vector.shape_cast %149 : vector<16xf32> to vector<16x1xf32>
    %151 = tpu.reciprocal %150 {approx = true} : vector<16x1xf32> -> vector<16x1xf32>
    %152 = vector.broadcast %151 : vector<16x1xf32> to vector<16x16xf32>
    %153 = arith.mulf %148, %152 : vector<16x16xf32>
    %154 = vector.extract_strided_slice %2 {offsets = [0, 64], sizes = [16, 16], strides = [1, 1]} : vector<16x128xf32> to vector<16x16xf32>
    %cst_54 = arith.constant dense<0.000000e+00> : vector<16x16xf32>
    %155 = tpu.matmul %153, %154, %cst_54 {dimension_numbers = #tpu.dot_dimension_numbers<[1], [0], [0], [1], [0, 0, 1, 1], [], []>} : vector<16x16xf32>, vector<16x16xf32>, vector<16x16xf32> -> vector<16x16xf32>
    %156 = vector.extract_strided_slice %16 {offsets = [0, 64], sizes = [1, 16], strides = [1, 1]} : vector<1x128xf32> to vector<1x16xf32>
    %157 = vector.broadcast %156 : vector<1x16xf32> to vector<16x16xf32>
    %158 = arith.addf %155, %157 : vector<16x16xf32>
    %cst_55 = arith.constant 0.000000e+00 : f32
    %159 = vector.broadcast %cst_55 : f32 to vector<16x16xf32>
    %160 = arith.maximumf %158, %159 : vector<16x16xf32>
    %c0_56 = arith.constant 0 : index
    %c64 = arith.constant 64 : index
    %161 = vector.load %arg8[%c0_56, %c64] : memref<16x128xf32, #tpu.memory_space<vmem>>, vector<16x16xf32>
    tpu.vector_store %arg8[%c0_56, %c64], %160 {strides = array<i32>} : memref<16x128xf32, #tpu.memory_space<vmem>>, vector<16x16xf32>,
    %162 = vector.extract_strided_slice %7 {offsets = [0, 5], sizes = [16, 1], strides = [1, 1]} : vector<16x8xf32> to vector<16x1xf32>
    %163 = vector.extract_strided_slice %9 {offsets = [5, 0], sizes = [1, 16], strides = [1, 1]} : vector<8x16xf32> to vector<1x16xf32>
    %164 = vector.broadcast %162 : vector<16x1xf32> to vector<16x16xf32>
    %165 = vector.broadcast %163 : vector<1x16xf32> to vector<16x16xf32>
    %166 = arith.addf %164, %165 : vector<16x16xf32>
    %cst_57 = arith.constant 0.000000e+00 : f32
    %167 = vector.broadcast %cst_57 : f32 to vector<16x16xf32>
    %168 = arith.cmpf ogt, %166, %167 : vector<16x16xf32>
    %cst_58 = arith.constant 2.000000e-01 : f32
    %169 = vector.broadcast %cst_58 : f32 to vector<16x16xf32>
    %170 = arith.mulf %169, %166 : vector<16x16xf32>
    %171 = arith.select %168, %166, %170 : vector<16x16xi1>, vector<16x16xf32>
    %172 = arith.addf %171, %15 : vector<16x16xf32>
    %cst_59 = arith.constant dense<0xFF800000> : vector<16xf32>
    %173 = vector.multi_reduction <maximumf>, %172, %cst_59 [1] : vector<16x16xf32> to vector<16xf32>
    %174 = vector.shape_cast %173 : vector<16xf32> to vector<16x1xf32>
    %175 = vector.broadcast %174 : vector<16x1xf32> to vector<16x16xf32>
    %176 = arith.subf %172, %175 : vector<16x16xf32>
    %177 = math.exp %176 : vector<16x16xf32>
    %cst_60 = arith.constant dense<0.000000e+00> : vector<16xf32>
    %178 = vector.multi_reduction <add>, %177, %cst_60 [1] : vector<16x16xf32> to vector<16xf32>
    %179 = vector.shape_cast %178 : vector<16xf32> to vector<16x1xf32>
    %180 = tpu.reciprocal %179 {approx = true} : vector<16x1xf32> -> vector<16x1xf32>
    %181 = vector.broadcast %180 : vector<16x1xf32> to vector<16x16xf32>
    %182 = arith.mulf %177, %181 : vector<16x16xf32>
    %183 = vector.extract_strided_slice %2 {offsets = [0, 80], sizes = [16, 16], strides = [1, 1]} : vector<16x128xf32> to vector<16x16xf32>
    %cst_61 = arith.constant dense<0.000000e+00> : vector<16x16xf32>
    %184 = tpu.matmul %182, %183, %cst_61 {dimension_numbers = #tpu.dot_dimension_numbers<[1], [0], [0], [1], [0, 0, 1, 1], [], []>} : vector<16x16xf32>, vector<16x16xf32>, vector<16x16xf32> -> vector<16x16xf32>
    %185 = vector.extract_strided_slice %16 {offsets = [0, 80], sizes = [1, 16], strides = [1, 1]} : vector<1x128xf32> to vector<1x16xf32>
    %186 = vector.broadcast %185 : vector<1x16xf32> to vector<16x16xf32>
    %187 = arith.addf %184, %186 : vector<16x16xf32>
    %cst_62 = arith.constant 0.000000e+00 : f32
    %188 = vector.broadcast %cst_62 : f32 to vector<16x16xf32>
    %189 = arith.maximumf %187, %188 : vector<16x16xf32>
    %c0_63 = arith.constant 0 : index
    %c80 = arith.constant 80 : index
    %190 = vector.load %arg8[%c0_63, %c80] : memref<16x128xf32, #tpu.memory_space<vmem>>, vector<16x16xf32>
    tpu.vector_store %arg8[%c0_63, %c80], %189 {strides = array<i32>} : memref<16x128xf32, #tpu.memory_space<vmem>>, vector<16x16xf32>,
    %191 = vector.extract_strided_slice %7 {offsets = [0, 6], sizes = [16, 1], strides = [1, 1]} : vector<16x8xf32> to vector<16x1xf32>
    %192 = vector.extract_strided_slice %9 {offsets = [6, 0], sizes = [1, 16], strides = [1, 1]} : vector<8x16xf32> to vector<1x16xf32>
    %193 = vector.broadcast %191 : vector<16x1xf32> to vector<16x16xf32>
    %194 = vector.broadcast %192 : vector<1x16xf32> to vector<16x16xf32>
    %195 = arith.addf %193, %194 : vector<16x16xf32>
    %cst_64 = arith.constant 0.000000e+00 : f32
    %196 = vector.broadcast %cst_64 : f32 to vector<16x16xf32>
    %197 = arith.cmpf ogt, %195, %196 : vector<16x16xf32>
    %cst_65 = arith.constant 2.000000e-01 : f32
    %198 = vector.broadcast %cst_65 : f32 to vector<16x16xf32>
    %199 = arith.mulf %198, %195 : vector<16x16xf32>
    %200 = arith.select %197, %195, %199 : vector<16x16xi1>, vector<16x16xf32>
    %201 = arith.addf %200, %15 : vector<16x16xf32>
    %cst_66 = arith.constant dense<0xFF800000> : vector<16xf32>
    %202 = vector.multi_reduction <maximumf>, %201, %cst_66 [1] : vector<16x16xf32> to vector<16xf32>
    %203 = vector.shape_cast %202 : vector<16xf32> to vector<16x1xf32>
    %204 = vector.broadcast %203 : vector<16x1xf32> to vector<16x16xf32>
    %205 = arith.subf %201, %204 : vector<16x16xf32>
    %206 = math.exp %205 : vector<16x16xf32>
    %cst_67 = arith.constant dense<0.000000e+00> : vector<16xf32>
    %207 = vector.multi_reduction <add>, %206, %cst_67 [1] : vector<16x16xf32> to vector<16xf32>
    %208 = vector.shape_cast %207 : vector<16xf32> to vector<16x1xf32>
    %209 = tpu.reciprocal %208 {approx = true} : vector<16x1xf32> -> vector<16x1xf32>
    %210 = vector.broadcast %209 : vector<16x1xf32> to vector<16x16xf32>
    %211 = arith.mulf %206, %210 : vector<16x16xf32>
    %212 = vector.extract_strided_slice %2 {offsets = [0, 96], sizes = [16, 16], strides = [1, 1]} : vector<16x128xf32> to vector<16x16xf32>
    %cst_68 = arith.constant dense<0.000000e+00> : vector<16x16xf32>
    %213 = tpu.matmul %211, %212, %cst_68 {dimension_numbers = #tpu.dot_dimension_numbers<[1], [0], [0], [1], [0, 0, 1, 1], [], []>} : vector<16x16xf32>, vector<16x16xf32>, vector<16x16xf32> -> vector<16x16xf32>
    %214 = vector.extract_strided_slice %16 {offsets = [0, 96], sizes = [1, 16], strides = [1, 1]} : vector<1x128xf32> to vector<1x16xf32>
    %215 = vector.broadcast %214 : vector<1x16xf32> to vector<16x16xf32>
    %216 = arith.addf %213, %215 : vector<16x16xf32>
    %cst_69 = arith.constant 0.000000e+00 : f32
    %217 = vector.broadcast %cst_69 : f32 to vector<16x16xf32>
    %218 = arith.maximumf %216, %217 : vector<16x16xf32>
    %c0_70 = arith.constant 0 : index
    %c96 = arith.constant 96 : index
    %219 = vector.load %arg8[%c0_70, %c96] : memref<16x128xf32, #tpu.memory_space<vmem>>, vector<16x16xf32>
    tpu.vector_store %arg8[%c0_70, %c96], %218 {strides = array<i32>} : memref<16x128xf32, #tpu.memory_space<vmem>>, vector<16x16xf32>,
    %220 = vector.extract_strided_slice %7 {offsets = [0, 7], sizes = [16, 1], strides = [1, 1]} : vector<16x8xf32> to vector<16x1xf32>
    %221 = vector.extract_strided_slice %9 {offsets = [7, 0], sizes = [1, 16], strides = [1, 1]} : vector<8x16xf32> to vector<1x16xf32>
    %222 = vector.broadcast %220 : vector<16x1xf32> to vector<16x16xf32>
    %223 = vector.broadcast %221 : vector<1x16xf32> to vector<16x16xf32>
    %224 = arith.addf %222, %223 : vector<16x16xf32>
    %cst_71 = arith.constant 0.000000e+00 : f32
    %225 = vector.broadcast %cst_71 : f32 to vector<16x16xf32>
    %226 = arith.cmpf ogt, %224, %225 : vector<16x16xf32>
    %cst_72 = arith.constant 2.000000e-01 : f32
    %227 = vector.broadcast %cst_72 : f32 to vector<16x16xf32>
    %228 = arith.mulf %227, %224 : vector<16x16xf32>
    %229 = arith.select %226, %224, %228 : vector<16x16xi1>, vector<16x16xf32>
    %230 = arith.addf %229, %15 : vector<16x16xf32>
    %cst_73 = arith.constant dense<0xFF800000> : vector<16xf32>
    %231 = vector.multi_reduction <maximumf>, %230, %cst_73 [1] : vector<16x16xf32> to vector<16xf32>
    %232 = vector.shape_cast %231 : vector<16xf32> to vector<16x1xf32>
    %233 = vector.broadcast %232 : vector<16x1xf32> to vector<16x16xf32>
    %234 = arith.subf %230, %233 : vector<16x16xf32>
    %235 = math.exp %234 : vector<16x16xf32>
    %cst_74 = arith.constant dense<0.000000e+00> : vector<16xf32>
    %236 = vector.multi_reduction <add>, %235, %cst_74 [1] : vector<16x16xf32> to vector<16xf32>
    %237 = vector.shape_cast %236 : vector<16xf32> to vector<16x1xf32>
    %238 = tpu.reciprocal %237 {approx = true} : vector<16x1xf32> -> vector<16x1xf32>
    %239 = vector.broadcast %238 : vector<16x1xf32> to vector<16x16xf32>
    %240 = arith.mulf %235, %239 : vector<16x16xf32>
    %241 = vector.extract_strided_slice %2 {offsets = [0, 112], sizes = [16, 16], strides = [1, 1]} : vector<16x128xf32> to vector<16x16xf32>
    %cst_75 = arith.constant dense<0.000000e+00> : vector<16x16xf32>
    %242 = tpu.matmul %240, %241, %cst_75 {dimension_numbers = #tpu.dot_dimension_numbers<[1], [0], [0], [1], [0, 0, 1, 1], [], []>} : vector<16x16xf32>, vector<16x16xf32>, vector<16x16xf32> -> vector<16x16xf32>
    %243 = vector.extract_strided_slice %16 {offsets = [0, 112], sizes = [1, 16], strides = [1, 1]} : vector<1x128xf32> to vector<1x16xf32>
    %244 = vector.broadcast %243 : vector<1x16xf32> to vector<16x16xf32>
    %245 = arith.addf %242, %244 : vector<16x16xf32>
    %cst_76 = arith.constant 0.000000e+00 : f32
    %246 = vector.broadcast %cst_76 : f32 to vector<16x16xf32>
    %247 = arith.maximumf %245, %246 : vector<16x16xf32>
    %c0_77 = arith.constant 0 : index
    %c112 = arith.constant 112 : index
    %248 = vector.load %arg8[%c0_77, %c112] : memref<16x128xf32, #tpu.memory_space<vmem>>, vector<16x16xf32>
    tpu.vector_store %arg8[%c0_77, %c112], %247 {strides = array<i32>} : memref<16x128xf32, #tpu.memory_space<vmem>>, vector<16x16xf32>,
    return
  }
  func.func @transform_0(%arg0: i32) -> (i32, i32) {
    %c0_i32 = arith.constant 0 : i32
    %c0_i32_0 = arith.constant 0 : i32
    return %arg0, %c0_i32 : i32, i32
  }
  func.func @transform_1(%arg0: i32) -> (i32, i32) {
    %c0_i32 = arith.constant 0 : i32
    %c0_i32_0 = arith.constant 0 : i32
    %c0_i32_1 = arith.constant 0 : i32
    return %c0_i32, %c0_i32_0 : i32, i32
  }
  func.func @transform_2(%arg0: i32) -> (i32, i32) {
    %c0_i32 = arith.constant 0 : i32
    %c0_i32_0 = arith.constant 0 : i32
    %c0_i32_1 = arith.constant 0 : i32
    return %c0_i32, %c0_i32_0 : i32, i32
  }
  func.func @transform_3(%arg0: i32) -> (i32, i32) {
    %c0_i32 = arith.constant 0 : i32
    %c0_i32_0 = arith.constant 0 : i32
    %c0_i32_1 = arith.constant 0 : i32
    return %c0_i32, %c0_i32_0 : i32, i32
  }
  func.func @transform_4(%arg0: i32) -> (i32, i32) {
    %c0_i32 = arith.constant 0 : i32
    %c0_i32_0 = arith.constant 0 : i32
    %c0_i32_1 = arith.constant 0 : i32
    return %c0_i32, %c0_i32_0 : i32, i32
  }
  func.func @transform_5(%arg0: i32) -> (i32, i32) {
    %c0_i32 = arith.constant 0 : i32
    %c0_i32_0 = arith.constant 0 : i32
    %c0_i32_1 = arith.constant 0 : i32
    return %c0_i32, %c0_i32_0 : i32, i32
  }
  func.func @transform_6(%arg0: i32) -> (i32, i32) {
    %c0_i32 = arith.constant 0 : i32
    %c0_i32_0 = arith.constant 0 : i32
    return %arg0, %c0_i32 : i32, i32
  }
  func.func @transform_7(%arg0: i32) -> (i32, i32) {
    %c0_i32 = arith.constant 0 : i32
    %c0_i32_0 = arith.constant 0 : i32
    return %arg0, %c0_i32 : i32, i32
  }
}

module attributes {stable_mosaic.version = 11 : i64} {
  func.func @mlp2_kernel(%arg0: i32, %arg1: memref<16x128xf32, #tpu.memory_space<vmem>>, %arg2: memref<128x128xf32, #tpu.memory_space<vmem>>, %arg3: memref<3x128xf32, #tpu.memory_space<vmem>>, %arg4: memref<128x128xf32, #tpu.memory_space<vmem>>, %arg5: memref<3x128xf32, #tpu.memory_space<vmem>>, %arg6: memref<16x128xf32, #tpu.memory_space<vmem>>) attributes {dimension_semantics = [#tpu.dimension_semantics<parallel>], iteration_bounds = array<i64: 1>, scalar_prefetch = 0 : i64, scratch_operands = 0 : i64, tpu.core_type = #tpu.core_type<tc>, window_params = [{transform_indices = @transform_0, window_bounds = array<i64: 16, 128>}, {pipeline_mode = #tpu.pipeline_mode<synchronous>, transform_indices = @transform_1, window_bounds = array<i64: 128, 128>}, {pipeline_mode = #tpu.pipeline_mode<synchronous>, transform_indices = @transform_2, window_bounds = array<i64: 3, 128>}, {pipeline_mode = #tpu.pipeline_mode<synchronous>, transform_indices = @transform_3, window_bounds = array<i64: 128, 128>}, {pipeline_mode = #tpu.pipeline_mode<synchronous>, transform_indices = @transform_4, window_bounds = array<i64: 3, 128>}, {transform_indices = @transform_5, window_bounds = array<i64: 16, 128>}]} {
    %c0 = arith.constant 0 : index
    %c0_0 = arith.constant 0 : index
    %0 = vector.load %arg1[%c0, %c0_0] : memref<16x128xf32, #tpu.memory_space<vmem>>, vector<16x128xf32>
    %c0_1 = arith.constant 0 : index
    %c0_2 = arith.constant 0 : index
    %1 = vector.load %arg2[%c0_1, %c0_2] : memref<128x128xf32, #tpu.memory_space<vmem>>, vector<128x128xf32>
    %cst = arith.constant dense<0.000000e+00> : vector<16x128xf32>
    %2 = tpu.matmul %0, %1, %cst {dimension_numbers = #tpu.dot_dimension_numbers<[1], [0], [0], [1], [0, 0, 1, 1], [], []>} : vector<16x128xf32>, vector<128x128xf32>, vector<16x128xf32> -> vector<16x128xf32>
    %c0_3 = arith.constant 0 : index
    %c0_4 = arith.constant 0 : index
    %3 = vector.load %arg3[%c0_3, %c0_4] : memref<3x128xf32, #tpu.memory_space<vmem>>, vector<1x128xf32>
    %4 = vector.broadcast %3 : vector<1x128xf32> to vector<16x128xf32>
    %5 = arith.addf %2, %4 : vector<16x128xf32>
    %c1 = arith.constant 1 : index
    %c0_5 = arith.constant 0 : index
    %6 = vector.load %arg3[%c1, %c0_5] : memref<3x128xf32, #tpu.memory_space<vmem>>, vector<1x128xf32>
    %c2 = arith.constant 2 : index
    %c0_6 = arith.constant 0 : index
    %7 = vector.load %arg3[%c2, %c0_6] : memref<3x128xf32, #tpu.memory_space<vmem>>, vector<1x128xf32>
    %cst_7 = arith.constant dense<0.000000e+00> : vector<16xf32>
    %8 = vector.multi_reduction <add>, %5, %cst_7 [1] : vector<16x128xf32> to vector<16xf32>
    %9 = vector.shape_cast %8 : vector<16xf32> to vector<16x1xf32>
    %cst_8 = arith.constant 1.280000e+02 : f32
    %10 = vector.broadcast %cst_8 : f32 to vector<16x1xf32>
    %11 = arith.divf %9, %10 : vector<16x1xf32>
    %12 = vector.broadcast %11 : vector<16x1xf32> to vector<16x128xf32>
    %13 = arith.subf %5, %12 : vector<16x128xf32>
    %14 = arith.mulf %13, %13 : vector<16x128xf32>
    %cst_9 = arith.constant dense<0.000000e+00> : vector<16xf32>
    %15 = vector.multi_reduction <add>, %14, %cst_9 [1] : vector<16x128xf32> to vector<16xf32>
    %16 = vector.shape_cast %15 : vector<16xf32> to vector<16x1xf32>
    %cst_10 = arith.constant 1.280000e+02 : f32
    %17 = vector.broadcast %cst_10 : f32 to vector<16x1xf32>
    %18 = arith.divf %16, %17 : vector<16x1xf32>
    %19 = vector.broadcast %11 : vector<16x1xf32> to vector<16x128xf32>
    %20 = arith.subf %5, %19 : vector<16x128xf32>
    %cst_11 = arith.constant 9.99999974E-6 : f32
    %21 = vector.broadcast %cst_11 : f32 to vector<16x1xf32>
    %22 = arith.addf %18, %21 : vector<16x1xf32>
    %23 = math.rsqrt %22 : vector<16x1xf32>
    %24 = vector.broadcast %23 : vector<16x1xf32> to vector<16x128xf32>
    %25 = arith.mulf %20, %24 : vector<16x128xf32>
    %26 = vector.broadcast %6 : vector<1x128xf32> to vector<16x128xf32>
    %27 = arith.mulf %25, %26 : vector<16x128xf32>
    %28 = vector.broadcast %7 : vector<1x128xf32> to vector<16x128xf32>
    %29 = arith.addf %27, %28 : vector<16x128xf32>
    %cst_12 = arith.constant 0.000000e+00 : f32
    %30 = vector.broadcast %cst_12 : f32 to vector<16x128xf32>
    %31 = arith.maximumf %29, %30 : vector<16x128xf32>
    %c0_13 = arith.constant 0 : index
    %c0_14 = arith.constant 0 : index
    %32 = vector.load %arg4[%c0_13, %c0_14] : memref<128x128xf32, #tpu.memory_space<vmem>>, vector<128x128xf32>
    %cst_15 = arith.constant dense<0.000000e+00> : vector<16x128xf32>
    %33 = tpu.matmul %31, %32, %cst_15 {dimension_numbers = #tpu.dot_dimension_numbers<[1], [0], [0], [1], [0, 0, 1, 1], [], []>} : vector<16x128xf32>, vector<128x128xf32>, vector<16x128xf32> -> vector<16x128xf32>
    %c0_16 = arith.constant 0 : index
    %c0_17 = arith.constant 0 : index
    %34 = vector.load %arg5[%c0_16, %c0_17] : memref<3x128xf32, #tpu.memory_space<vmem>>, vector<1x128xf32>
    %35 = vector.broadcast %34 : vector<1x128xf32> to vector<16x128xf32>
    %36 = arith.addf %33, %35 : vector<16x128xf32>
    %c1_18 = arith.constant 1 : index
    %c0_19 = arith.constant 0 : index
    %37 = vector.load %arg5[%c1_18, %c0_19] : memref<3x128xf32, #tpu.memory_space<vmem>>, vector<1x128xf32>
    %c2_20 = arith.constant 2 : index
    %c0_21 = arith.constant 0 : index
    %38 = vector.load %arg5[%c2_20, %c0_21] : memref<3x128xf32, #tpu.memory_space<vmem>>, vector<1x128xf32>
    %cst_22 = arith.constant dense<0.000000e+00> : vector<16xf32>
    %39 = vector.multi_reduction <add>, %36, %cst_22 [1] : vector<16x128xf32> to vector<16xf32>
    %40 = vector.shape_cast %39 : vector<16xf32> to vector<16x1xf32>
    %cst_23 = arith.constant 1.280000e+02 : f32
    %41 = vector.broadcast %cst_23 : f32 to vector<16x1xf32>
    %42 = arith.divf %40, %41 : vector<16x1xf32>
    %43 = vector.broadcast %42 : vector<16x1xf32> to vector<16x128xf32>
    %44 = arith.subf %36, %43 : vector<16x128xf32>
    %45 = arith.mulf %44, %44 : vector<16x128xf32>
    %cst_24 = arith.constant dense<0.000000e+00> : vector<16xf32>
    %46 = vector.multi_reduction <add>, %45, %cst_24 [1] : vector<16x128xf32> to vector<16xf32>
    %47 = vector.shape_cast %46 : vector<16xf32> to vector<16x1xf32>
    %cst_25 = arith.constant 1.280000e+02 : f32
    %48 = vector.broadcast %cst_25 : f32 to vector<16x1xf32>
    %49 = arith.divf %47, %48 : vector<16x1xf32>
    %50 = vector.broadcast %42 : vector<16x1xf32> to vector<16x128xf32>
    %51 = arith.subf %36, %50 : vector<16x128xf32>
    %cst_26 = arith.constant 9.99999974E-6 : f32
    %52 = vector.broadcast %cst_26 : f32 to vector<16x1xf32>
    %53 = arith.addf %49, %52 : vector<16x1xf32>
    %54 = math.rsqrt %53 : vector<16x1xf32>
    %55 = vector.broadcast %54 : vector<16x1xf32> to vector<16x128xf32>
    %56 = arith.mulf %51, %55 : vector<16x128xf32>
    %57 = vector.broadcast %37 : vector<1x128xf32> to vector<16x128xf32>
    %58 = arith.mulf %56, %57 : vector<16x128xf32>
    %59 = vector.broadcast %38 : vector<1x128xf32> to vector<16x128xf32>
    %60 = arith.addf %58, %59 : vector<16x128xf32>
    %cst_27 = arith.constant 0.000000e+00 : f32
    %61 = vector.broadcast %cst_27 : f32 to vector<16x128xf32>
    %62 = arith.maximumf %60, %61 : vector<16x128xf32>
    %c0_28 = arith.constant 0 : index
    %c0_29 = arith.constant 0 : index
    %63 = vector.load %arg6[%c0_28, %c0_29] : memref<16x128xf32, #tpu.memory_space<vmem>>, vector<16x128xf32>
    tpu.vector_store %arg6[%c0_28, %c0_29], %62 {strides = array<i32>} : memref<16x128xf32, #tpu.memory_space<vmem>>, vector<16x128xf32>,
    return
  }
  func.func @transform_0(%arg0: i32) -> (i32, i32) {
    %c0_i32 = arith.constant 0 : i32
    %c0_i32_0 = arith.constant 0 : i32
    return %arg0, %c0_i32 : i32, i32
  }
  func.func @transform_1(%arg0: i32) -> (i32, i32) {
    %c0_i32 = arith.constant 0 : i32
    %c0_i32_0 = arith.constant 0 : i32
    %c0_i32_1 = arith.constant 0 : i32
    return %c0_i32, %c0_i32_0 : i32, i32
  }
  func.func @transform_2(%arg0: i32) -> (i32, i32) {
    %c0_i32 = arith.constant 0 : i32
    %c0_i32_0 = arith.constant 0 : i32
    %c0_i32_1 = arith.constant 0 : i32
    return %c0_i32, %c0_i32_0 : i32, i32
  }
  func.func @transform_3(%arg0: i32) -> (i32, i32) {
    %c0_i32 = arith.constant 0 : i32
    %c0_i32_0 = arith.constant 0 : i32
    %c0_i32_1 = arith.constant 0 : i32
    return %c0_i32, %c0_i32_0 : i32, i32
  }
  func.func @transform_4(%arg0: i32) -> (i32, i32) {
    %c0_i32 = arith.constant 0 : i32
    %c0_i32_0 = arith.constant 0 : i32
    %c0_i32_1 = arith.constant 0 : i32
    return %c0_i32, %c0_i32_0 : i32, i32
  }
  func.func @transform_5(%arg0: i32) -> (i32, i32) {
    %c0_i32 = arith.constant 0 : i32
    %c0_i32_0 = arith.constant 0 : i32
    return %arg0, %c0_i32 : i32, i32
  }
}

module attributes {stable_mosaic.version = 11 : i64} {
  func.func @out_head_kernel(%arg0: i32, %arg1: memref<16x128xf32, #tpu.memory_space<vmem>>, %arg2: memref<128x128xf32, #tpu.memory_space<vmem>>, %arg3: memref<3x128xf32, #tpu.memory_space<vmem>>, %arg4: memref<128x128xf32, #tpu.memory_space<vmem>>, %arg5: memref<1x128xf32, #tpu.memory_space<vmem>>, %arg6: memref<16x128xf32, #tpu.memory_space<vmem>>) attributes {dimension_semantics = [#tpu.dimension_semantics<parallel>], iteration_bounds = array<i64: 1>, scalar_prefetch = 0 : i64, scratch_operands = 0 : i64, tpu.core_type = #tpu.core_type<tc>, window_params = [{transform_indices = @transform_0, window_bounds = array<i64: 16, 128>}, {pipeline_mode = #tpu.pipeline_mode<synchronous>, transform_indices = @transform_1, window_bounds = array<i64: 128, 128>}, {pipeline_mode = #tpu.pipeline_mode<synchronous>, transform_indices = @transform_2, window_bounds = array<i64: 3, 128>}, {pipeline_mode = #tpu.pipeline_mode<synchronous>, transform_indices = @transform_3, window_bounds = array<i64: 128, 128>}, {pipeline_mode = #tpu.pipeline_mode<synchronous>, transform_indices = @transform_4, window_bounds = array<i64: 1, 128>}, {transform_indices = @transform_5, window_bounds = array<i64: 16, 128>}]} {
    %c0 = arith.constant 0 : index
    %c0_0 = arith.constant 0 : index
    %0 = vector.load %arg1[%c0, %c0_0] : memref<16x128xf32, #tpu.memory_space<vmem>>, vector<16x128xf32>
    %c0_1 = arith.constant 0 : index
    %c0_2 = arith.constant 0 : index
    %1 = vector.load %arg2[%c0_1, %c0_2] : memref<128x128xf32, #tpu.memory_space<vmem>>, vector<128x128xf32>
    %cst = arith.constant dense<0.000000e+00> : vector<16x128xf32>
    %2 = tpu.matmul %0, %1, %cst {dimension_numbers = #tpu.dot_dimension_numbers<[1], [0], [0], [1], [0, 0, 1, 1], [], []>} : vector<16x128xf32>, vector<128x128xf32>, vector<16x128xf32> -> vector<16x128xf32>
    %c0_3 = arith.constant 0 : index
    %c0_4 = arith.constant 0 : index
    %3 = vector.load %arg3[%c0_3, %c0_4] : memref<3x128xf32, #tpu.memory_space<vmem>>, vector<1x128xf32>
    %4 = vector.broadcast %3 : vector<1x128xf32> to vector<16x128xf32>
    %5 = arith.addf %2, %4 : vector<16x128xf32>
    %c1 = arith.constant 1 : index
    %c0_5 = arith.constant 0 : index
    %6 = vector.load %arg3[%c1, %c0_5] : memref<3x128xf32, #tpu.memory_space<vmem>>, vector<1x128xf32>
    %c2 = arith.constant 2 : index
    %c0_6 = arith.constant 0 : index
    %7 = vector.load %arg3[%c2, %c0_6] : memref<3x128xf32, #tpu.memory_space<vmem>>, vector<1x128xf32>
    %cst_7 = arith.constant dense<0.000000e+00> : vector<16xf32>
    %8 = vector.multi_reduction <add>, %5, %cst_7 [1] : vector<16x128xf32> to vector<16xf32>
    %9 = vector.shape_cast %8 : vector<16xf32> to vector<16x1xf32>
    %cst_8 = arith.constant 1.280000e+02 : f32
    %10 = vector.broadcast %cst_8 : f32 to vector<16x1xf32>
    %11 = arith.divf %9, %10 : vector<16x1xf32>
    %12 = vector.broadcast %11 : vector<16x1xf32> to vector<16x128xf32>
    %13 = arith.subf %5, %12 : vector<16x128xf32>
    %14 = arith.mulf %13, %13 : vector<16x128xf32>
    %cst_9 = arith.constant dense<0.000000e+00> : vector<16xf32>
    %15 = vector.multi_reduction <add>, %14, %cst_9 [1] : vector<16x128xf32> to vector<16xf32>
    %16 = vector.shape_cast %15 : vector<16xf32> to vector<16x1xf32>
    %cst_10 = arith.constant 1.280000e+02 : f32
    %17 = vector.broadcast %cst_10 : f32 to vector<16x1xf32>
    %18 = arith.divf %16, %17 : vector<16x1xf32>
    %19 = vector.broadcast %11 : vector<16x1xf32> to vector<16x128xf32>
    %20 = arith.subf %5, %19 : vector<16x128xf32>
    %cst_11 = arith.constant 9.99999974E-6 : f32
    %21 = vector.broadcast %cst_11 : f32 to vector<16x1xf32>
    %22 = arith.addf %18, %21 : vector<16x1xf32>
    %23 = math.rsqrt %22 : vector<16x1xf32>
    %24 = vector.broadcast %23 : vector<16x1xf32> to vector<16x128xf32>
    %25 = arith.mulf %20, %24 : vector<16x128xf32>
    %26 = vector.broadcast %6 : vector<1x128xf32> to vector<16x128xf32>
    %27 = arith.mulf %25, %26 : vector<16x128xf32>
    %28 = vector.broadcast %7 : vector<1x128xf32> to vector<16x128xf32>
    %29 = arith.addf %27, %28 : vector<16x128xf32>
    %cst_12 = arith.constant 0.000000e+00 : f32
    %30 = vector.broadcast %cst_12 : f32 to vector<16x128xf32>
    %31 = arith.maximumf %29, %30 : vector<16x128xf32>
    %c0_13 = arith.constant 0 : index
    %c0_14 = arith.constant 0 : index
    %32 = vector.load %arg4[%c0_13, %c0_14] : memref<128x128xf32, #tpu.memory_space<vmem>>, vector<128x128xf32>
    %cst_15 = arith.constant dense<0.000000e+00> : vector<16x128xf32>
    %33 = tpu.matmul %31, %32, %cst_15 {dimension_numbers = #tpu.dot_dimension_numbers<[1], [0], [0], [1], [0, 0, 1, 1], [], []>} : vector<16x128xf32>, vector<128x128xf32>, vector<16x128xf32> -> vector<16x128xf32>
    %c0_16 = arith.constant 0 : index
    %c0_17 = arith.constant 0 : index
    %34 = vector.load %arg5[%c0_16, %c0_17] : memref<1x128xf32, #tpu.memory_space<vmem>>, vector<1x128xf32>
    %35 = vector.broadcast %34 : vector<1x128xf32> to vector<16x128xf32>
    %36 = arith.addf %33, %35 : vector<16x128xf32>
    %c0_18 = arith.constant 0 : index
    %c0_19 = arith.constant 0 : index
    %37 = vector.load %arg6[%c0_18, %c0_19] : memref<16x128xf32, #tpu.memory_space<vmem>>, vector<16x128xf32>
    tpu.vector_store %arg6[%c0_18, %c0_19], %36 {strides = array<i32>} : memref<16x128xf32, #tpu.memory_space<vmem>>, vector<16x128xf32>,
    return
  }
  func.func @transform_0(%arg0: i32) -> (i32, i32) {
    %c0_i32 = arith.constant 0 : i32
    %c0_i32_0 = arith.constant 0 : i32
    return %arg0, %c0_i32 : i32, i32
  }
  func.func @transform_1(%arg0: i32) -> (i32, i32) {
    %c0_i32 = arith.constant 0 : i32
    %c0_i32_0 = arith.constant 0 : i32
    %c0_i32_1 = arith.constant 0 : i32
    return %c0_i32, %c0_i32_0 : i32, i32
  }
  func.func @transform_2(%arg0: i32) -> (i32, i32) {
    %c0_i32 = arith.constant 0 : i32
    %c0_i32_0 = arith.constant 0 : i32
    %c0_i32_1 = arith.constant 0 : i32
    return %c0_i32, %c0_i32_0 : i32, i32
  }
  func.func @transform_3(%arg0: i32) -> (i32, i32) {
    %c0_i32 = arith.constant 0 : i32
    %c0_i32_0 = arith.constant 0 : i32
    %c0_i32_1 = arith.constant 0 : i32
    return %c0_i32, %c0_i32_0 : i32, i32
  }
  func.func @transform_4(%arg0: i32) -> (i32, i32) {
    %c0_i32 = arith.constant 0 : i32
    %c0_i32_0 = arith.constant 0 : i32
    %c0_i32_1 = arith.constant 0 : i32
    return %c0_i32, %c0_i32_0 : i32, i32
  }
  func.func @transform_5(%arg0: i32) -> (i32, i32) {
    %c0_i32 = arith.constant 0 : i32
    %c0_i32_0 = arith.constant 0 : i32
    return %arg0, %c0_i32 : i32, i32
  }
}

module attributes {stable_mosaic.version = 11 : i64} {
  func.func @mlp2_2in_kernel(%arg0: i32, %arg1: memref<16x128xf32, #tpu.memory_space<vmem>>, %arg2: memref<16x128xf32, #tpu.memory_space<vmem>>, %arg3: memref<128x128xf32, #tpu.memory_space<vmem>>, %arg4: memref<128x128xf32, #tpu.memory_space<vmem>>, %arg5: memref<3x128xf32, #tpu.memory_space<vmem>>, %arg6: memref<128x128xf32, #tpu.memory_space<vmem>>, %arg7: memref<3x128xf32, #tpu.memory_space<vmem>>, %arg8: memref<16x128xf32, #tpu.memory_space<vmem>>) attributes {dimension_semantics = [#tpu.dimension_semantics<parallel>], iteration_bounds = array<i64: 1>, scalar_prefetch = 0 : i64, scratch_operands = 0 : i64, tpu.core_type = #tpu.core_type<tc>, window_params = [{transform_indices = @transform_0, window_bounds = array<i64: 16, 128>}, {transform_indices = @transform_1, window_bounds = array<i64: 16, 128>}, {pipeline_mode = #tpu.pipeline_mode<synchronous>, transform_indices = @transform_2, window_bounds = array<i64: 128, 128>}, {pipeline_mode = #tpu.pipeline_mode<synchronous>, transform_indices = @transform_3, window_bounds = array<i64: 128, 128>}, {pipeline_mode = #tpu.pipeline_mode<synchronous>, transform_indices = @transform_4, window_bounds = array<i64: 3, 128>}, {pipeline_mode = #tpu.pipeline_mode<synchronous>, transform_indices = @transform_5, window_bounds = array<i64: 128, 128>}, {pipeline_mode = #tpu.pipeline_mode<synchronous>, transform_indices = @transform_6, window_bounds = array<i64: 3, 128>}, {transform_indices = @transform_7, window_bounds = array<i64: 16, 128>}]} {
    %c0 = arith.constant 0 : index
    %c0_0 = arith.constant 0 : index
    %0 = vector.load %arg1[%c0, %c0_0] : memref<16x128xf32, #tpu.memory_space<vmem>>, vector<16x128xf32>
    %c0_1 = arith.constant 0 : index
    %c0_2 = arith.constant 0 : index
    %1 = vector.load %arg3[%c0_1, %c0_2] : memref<128x128xf32, #tpu.memory_space<vmem>>, vector<128x128xf32>
    %cst = arith.constant dense<0.000000e+00> : vector<16x128xf32>
    %2 = tpu.matmul %0, %1, %cst {dimension_numbers = #tpu.dot_dimension_numbers<[1], [0], [0], [1], [0, 0, 1, 1], [], []>} : vector<16x128xf32>, vector<128x128xf32>, vector<16x128xf32> -> vector<16x128xf32>
    %c0_3 = arith.constant 0 : index
    %c0_4 = arith.constant 0 : index
    %3 = vector.load %arg2[%c0_3, %c0_4] : memref<16x128xf32, #tpu.memory_space<vmem>>, vector<16x128xf32>
    %c0_5 = arith.constant 0 : index
    %c0_6 = arith.constant 0 : index
    %4 = vector.load %arg4[%c0_5, %c0_6] : memref<128x128xf32, #tpu.memory_space<vmem>>, vector<128x128xf32>
    %cst_7 = arith.constant dense<0.000000e+00> : vector<16x128xf32>
    %5 = tpu.matmul %3, %4, %cst_7 {dimension_numbers = #tpu.dot_dimension_numbers<[1], [0], [0], [1], [0, 0, 1, 1], [], []>} : vector<16x128xf32>, vector<128x128xf32>, vector<16x128xf32> -> vector<16x128xf32>
    %6 = arith.addf %2, %5 : vector<16x128xf32>
    %c0_8 = arith.constant 0 : index
    %c0_9 = arith.constant 0 : index
    %7 = vector.load %arg5[%c0_8, %c0_9] : memref<3x128xf32, #tpu.memory_space<vmem>>, vector<1x128xf32>
    %8 = vector.broadcast %7 : vector<1x128xf32> to vector<16x128xf32>
    %9 = arith.addf %6, %8 : vector<16x128xf32>
    %c1 = arith.constant 1 : index
    %c0_10 = arith.constant 0 : index
    %10 = vector.load %arg5[%c1, %c0_10] : memref<3x128xf32, #tpu.memory_space<vmem>>, vector<1x128xf32>
    %c2 = arith.constant 2 : index
    %c0_11 = arith.constant 0 : index
    %11 = vector.load %arg5[%c2, %c0_11] : memref<3x128xf32, #tpu.memory_space<vmem>>, vector<1x128xf32>
    %cst_12 = arith.constant dense<0.000000e+00> : vector<16xf32>
    %12 = vector.multi_reduction <add>, %9, %cst_12 [1] : vector<16x128xf32> to vector<16xf32>
    %13 = vector.shape_cast %12 : vector<16xf32> to vector<16x1xf32>
    %cst_13 = arith.constant 1.280000e+02 : f32
    %14 = vector.broadcast %cst_13 : f32 to vector<16x1xf32>
    %15 = arith.divf %13, %14 : vector<16x1xf32>
    %16 = vector.broadcast %15 : vector<16x1xf32> to vector<16x128xf32>
    %17 = arith.subf %9, %16 : vector<16x128xf32>
    %18 = arith.mulf %17, %17 : vector<16x128xf32>
    %cst_14 = arith.constant dense<0.000000e+00> : vector<16xf32>
    %19 = vector.multi_reduction <add>, %18, %cst_14 [1] : vector<16x128xf32> to vector<16xf32>
    %20 = vector.shape_cast %19 : vector<16xf32> to vector<16x1xf32>
    %cst_15 = arith.constant 1.280000e+02 : f32
    %21 = vector.broadcast %cst_15 : f32 to vector<16x1xf32>
    %22 = arith.divf %20, %21 : vector<16x1xf32>
    %23 = vector.broadcast %15 : vector<16x1xf32> to vector<16x128xf32>
    %24 = arith.subf %9, %23 : vector<16x128xf32>
    %cst_16 = arith.constant 9.99999974E-6 : f32
    %25 = vector.broadcast %cst_16 : f32 to vector<16x1xf32>
    %26 = arith.addf %22, %25 : vector<16x1xf32>
    %27 = math.rsqrt %26 : vector<16x1xf32>
    %28 = vector.broadcast %27 : vector<16x1xf32> to vector<16x128xf32>
    %29 = arith.mulf %24, %28 : vector<16x128xf32>
    %30 = vector.broadcast %10 : vector<1x128xf32> to vector<16x128xf32>
    %31 = arith.mulf %29, %30 : vector<16x128xf32>
    %32 = vector.broadcast %11 : vector<1x128xf32> to vector<16x128xf32>
    %33 = arith.addf %31, %32 : vector<16x128xf32>
    %cst_17 = arith.constant 0.000000e+00 : f32
    %34 = vector.broadcast %cst_17 : f32 to vector<16x128xf32>
    %35 = arith.maximumf %33, %34 : vector<16x128xf32>
    %c0_18 = arith.constant 0 : index
    %c0_19 = arith.constant 0 : index
    %36 = vector.load %arg6[%c0_18, %c0_19] : memref<128x128xf32, #tpu.memory_space<vmem>>, vector<128x128xf32>
    %cst_20 = arith.constant dense<0.000000e+00> : vector<16x128xf32>
    %37 = tpu.matmul %35, %36, %cst_20 {dimension_numbers = #tpu.dot_dimension_numbers<[1], [0], [0], [1], [0, 0, 1, 1], [], []>} : vector<16x128xf32>, vector<128x128xf32>, vector<16x128xf32> -> vector<16x128xf32>
    %c0_21 = arith.constant 0 : index
    %c0_22 = arith.constant 0 : index
    %38 = vector.load %arg7[%c0_21, %c0_22] : memref<3x128xf32, #tpu.memory_space<vmem>>, vector<1x128xf32>
    %39 = vector.broadcast %38 : vector<1x128xf32> to vector<16x128xf32>
    %40 = arith.addf %37, %39 : vector<16x128xf32>
    %c1_23 = arith.constant 1 : index
    %c0_24 = arith.constant 0 : index
    %41 = vector.load %arg7[%c1_23, %c0_24] : memref<3x128xf32, #tpu.memory_space<vmem>>, vector<1x128xf32>
    %c2_25 = arith.constant 2 : index
    %c0_26 = arith.constant 0 : index
    %42 = vector.load %arg7[%c2_25, %c0_26] : memref<3x128xf32, #tpu.memory_space<vmem>>, vector<1x128xf32>
    %cst_27 = arith.constant dense<0.000000e+00> : vector<16xf32>
    %43 = vector.multi_reduction <add>, %40, %cst_27 [1] : vector<16x128xf32> to vector<16xf32>
    %44 = vector.shape_cast %43 : vector<16xf32> to vector<16x1xf32>
    %cst_28 = arith.constant 1.280000e+02 : f32
    %45 = vector.broadcast %cst_28 : f32 to vector<16x1xf32>
    %46 = arith.divf %44, %45 : vector<16x1xf32>
    %47 = vector.broadcast %46 : vector<16x1xf32> to vector<16x128xf32>
    %48 = arith.subf %40, %47 : vector<16x128xf32>
    %49 = arith.mulf %48, %48 : vector<16x128xf32>
    %cst_29 = arith.constant dense<0.000000e+00> : vector<16xf32>
    %50 = vector.multi_reduction <add>, %49, %cst_29 [1] : vector<16x128xf32> to vector<16xf32>
    %51 = vector.shape_cast %50 : vector<16xf32> to vector<16x1xf32>
    %cst_30 = arith.constant 1.280000e+02 : f32
    %52 = vector.broadcast %cst_30 : f32 to vector<16x1xf32>
    %53 = arith.divf %51, %52 : vector<16x1xf32>
    %54 = vector.broadcast %46 : vector<16x1xf32> to vector<16x128xf32>
    %55 = arith.subf %40, %54 : vector<16x128xf32>
    %cst_31 = arith.constant 9.99999974E-6 : f32
    %56 = vector.broadcast %cst_31 : f32 to vector<16x1xf32>
    %57 = arith.addf %53, %56 : vector<16x1xf32>
    %58 = math.rsqrt %57 : vector<16x1xf32>
    %59 = vector.broadcast %58 : vector<16x1xf32> to vector<16x128xf32>
    %60 = arith.mulf %55, %59 : vector<16x128xf32>
    %61 = vector.broadcast %41 : vector<1x128xf32> to vector<16x128xf32>
    %62 = arith.mulf %60, %61 : vector<16x128xf32>
    %63 = vector.broadcast %42 : vector<1x128xf32> to vector<16x128xf32>
    %64 = arith.addf %62, %63 : vector<16x128xf32>
    %cst_32 = arith.constant 0.000000e+00 : f32
    %65 = vector.broadcast %cst_32 : f32 to vector<16x128xf32>
    %66 = arith.maximumf %64, %65 : vector<16x128xf32>
    %c0_33 = arith.constant 0 : index
    %c0_34 = arith.constant 0 : index
    %67 = vector.load %arg8[%c0_33, %c0_34] : memref<16x128xf32, #tpu.memory_space<vmem>>, vector<16x128xf32>
    tpu.vector_store %arg8[%c0_33, %c0_34], %66 {strides = array<i32>} : memref<16x128xf32, #tpu.memory_space<vmem>>, vector<16x128xf32>,
    return
  }
  func.func @transform_0(%arg0: i32) -> (i32, i32) {
    %c0_i32 = arith.constant 0 : i32
    %c0_i32_0 = arith.constant 0 : i32
    return %arg0, %c0_i32 : i32, i32
  }
  func.func @transform_1(%arg0: i32) -> (i32, i32) {
    %c0_i32 = arith.constant 0 : i32
    %c0_i32_0 = arith.constant 0 : i32
    return %arg0, %c0_i32 : i32, i32
  }
  func.func @transform_2(%arg0: i32) -> (i32, i32) {
    %c0_i32 = arith.constant 0 : i32
    %c0_i32_0 = arith.constant 0 : i32
    %c0_i32_1 = arith.constant 0 : i32
    return %c0_i32, %c0_i32_0 : i32, i32
  }
  func.func @transform_3(%arg0: i32) -> (i32, i32) {
    %c0_i32 = arith.constant 0 : i32
    %c0_i32_0 = arith.constant 0 : i32
    %c0_i32_1 = arith.constant 0 : i32
    return %c0_i32, %c0_i32_0 : i32, i32
  }
  func.func @transform_4(%arg0: i32) -> (i32, i32) {
    %c0_i32 = arith.constant 0 : i32
    %c0_i32_0 = arith.constant 0 : i32
    %c0_i32_1 = arith.constant 0 : i32
    return %c0_i32, %c0_i32_0 : i32, i32
  }
  func.func @transform_5(%arg0: i32) -> (i32, i32) {
    %c0_i32 = arith.constant 0 : i32
    %c0_i32_0 = arith.constant 0 : i32
    %c0_i32_1 = arith.constant 0 : i32
    return %c0_i32, %c0_i32_0 : i32, i32
  }
  func.func @transform_6(%arg0: i32) -> (i32, i32) {
    %c0_i32 = arith.constant 0 : i32
    %c0_i32_0 = arith.constant 0 : i32
    %c0_i32_1 = arith.constant 0 : i32
    return %c0_i32, %c0_i32_0 : i32, i32
  }
  func.func @transform_7(%arg0: i32) -> (i32, i32) {
    %c0_i32 = arith.constant 0 : i32
    %c0_i32_0 = arith.constant 0 : i32
    return %arg0, %c0_i32 : i32, i32
  }
}

</mosaic_0001>

<bundles_post_ra>
// kernel: _lambda_.7
= control target key start
LH: loop header
LB: loop body
LE: loop exit
PB: predicated region body
PF: predicated region fallthrough
CT: control target
= control target key end

     0   :  { %12 = vsyncpa [#allocation3], 0  ;;  %s617_s0 = inlined_call_operand.hbm [shape: f32[16,128], index: 0, kind: input, shape index: {}]   ;;  %s618_s1 = inlined_call_operand.vmem [shape: f32[128,128], index: 1, kind: input, shape index: {}]   ;;  %s619_s2 = inlined_call_operand.vmem [shape: f32[3,128], index: 2, kind: input, shape index: {}]   ;;  %s620_s3 = inlined_call_operand.hbm [shape: f32[128,128], index: 3, kind: input, shape index: {}]   ;;  %s621_s4 = inlined_call_operand.hbm [shape: f32[3,128], index: 4, kind: input, shape index: {}]   ;;  %s622_s5 = inlined_call_operand.hbm [shape: f32[128,128], index: 5, kind: input, shape index: {}]   ;;  %s623_s6 = inlined_call_operand.vmem [shape: f32[1,128], index: 6, kind: input, shape index: {}]   ;;  %s624_s7 = inlined_call_operand.vmem [shape: f32[16,128], index: 7, kind: output, shape index: {}]  }
   0x1   :  { %13 = vsyncpa [#allocation5], 0 }
   0x2   :  { %14 = vsyncpa [#allocation8], 0  ;;  %s36_s26 = sshll.u32 %s620_s3, 4  ;;  %s472_s27 = smov [#allocation4]   ;;  %s37_s26 = int_to_ptr.hbm [resolvable:$true] %s36_s26 }
   0x3   :  { %s38_s28 = sshll.u32 %s472_s27, 4  ;;  %s19_s8 = sshll.u32 %s617_s0, 4  ;;  %s39_s28 = int_to_ptr.vmem [resolvable:$true] %s38_s28  ;;  %s20_s8 = int_to_ptr.hbm [resolvable:$true] %s19_s8 }
   0x4   :  { %s473_s9 = smov 128   ;;  %s474_s10 = smov 8  }
   0x5   :  { %44 = dma.hbm_to_vmem [thread:$0]  %s37_s26, 2048, %s39_s28, [#allocation5], %s473_s9, %s473_s9, %s474_s10  }
   0x6   :  { %s475_s11 = smov [#allocation2]   ;;  %s50_s15 = sshll.u32 %s621_s4, 4  ;;  %s51_s15 = int_to_ptr.hbm [resolvable:$true] %s50_s15 }
   0x7   :  { %s21_s12 = sshll.u32 %s475_s11, 4  ;;  %s60_s17 = sshll.u32 %s622_s5, 4  ;;  %s22_s12 = int_to_ptr.vmem [resolvable:$true] %s21_s12  ;;  %s61_s17 = int_to_ptr.hbm [resolvable:$true] %s60_s17 }
   0x8   :  { %27 = dma.hbm_to_vmem [thread:$0]  %s20_s8, 256, %s22_s12, [#allocation3], %s473_s9, %s473_s9, %s474_s10  }
   0x9   :  { %s476_s18 = smov [#allocation6]   ;;  %s477_s0 = smov [#allocation7]  }
   0xa   :  { %s52_s19 = sshll.u32 %s476_s18, 4  ;;  %s62_s20 = sshll.u32 %s477_s0, 4  ;;  %s53_s19 = int_to_ptr.vmem [resolvable:$true] %s52_s19  ;;  %s63_s20 = int_to_ptr.vmem [resolvable:$true] %s62_s20 }
   0xb   :  { %55 = dma.hbm_to_vmem [thread:$0]  %s51_s15, 64, %s53_s19, [#allocation5]  }
   0xc   :  { %68 = dma.hbm_to_vmem [thread:$0]  %s61_s17, 2048, %s63_s20, [#allocation8], %s473_s9, %s473_s9, %s474_s10  }
   0xd   :  { %466 = dma.done.wait [#allocation3], 256  }
   0xe   :  { %467 = vsyncadd [#allocation3], 4294967040 }
   0xf   :  { %468 = dma.done.wait [#allocation5], 2112  }
  0x10   :  { %469 = vsyncadd [#allocation5], 4294965184 }
  0x11   :  { %470 = dma.done.wait [#allocation8], 2048  }
  0x12   :  { %471 = vsyncadd [#allocation8], 4294965248  ;;  %v104_v0 = vld [vmem:[%s618_s1 + $0x78] sm:$0xff]  ;;  %v103_v1 = vld [vmem:[%s618_s1 + $0x70] sm:$0xff]  ;;  %v478_v23 = vmov 128.0  }
  0x13   :  { %107 = vmatpush.msra.mxu0 %v104_v0  ;;  %330 = vmatpush.msra.mxu3 %v104_v0  ;;  %v102_v2 = vld [vmem:[%s618_s1 + $0x68] sm:$0xff]  ;;  %v101_v3 = vld [vmem:[%s618_s1 + $0x60] sm:$0xff]  ;;  %v100_v4 = vld [vmem:[%s618_s1 + $0x58] sm:$0xff]  ;;  %360 = vrcp.f32 %v478_v23 }
  0x14   :  { %v99_v5 = vld [vmem:[%s618_s1 + $0x50] sm:$0xff]  ;;  %v98_v6 = vld [vmem:[%s618_s1 + $0x48] sm:$0xff]  ;;  %v97_v7 = vld [vmem:[%s618_s1 + $0x40] sm:$0xff] }
  0x15   :  { %108 = vmatpush.msra.mxu0 %v103_v1  ;;  %331 = vmatpush.msra.mxu3 %v103_v1  ;;  %v96_v8 = vld [vmem:[%s618_s1 + $0x38] sm:$0xff]  ;;  %v95_v9 = vld [vmem:[%s618_s1 + $0x30] sm:$0xff]  ;;  %v94_v10 = vld [vmem:[%s618_s1 + $0x28] sm:$0xff] }
  0x16   :  { %v93_v11 = vld [vmem:[%s618_s1 + $0x20] sm:$0xff]  ;;  %v92_v12 = vld [vmem:[%s618_s1 + $0x18] sm:$0xff]  ;;  %v91_v13 = vld [vmem:[%s618_s1 + $0x10] sm:$0xff] }
  0x17   :  { %109 = vmatpush.msra.mxu0 %v102_v2  ;;  %332 = vmatpush.msra.mxu3 %v102_v2  ;;  %v90_v14 = vld [vmem:[%s618_s1 + $0x8] sm:$0xff]  ;;  %v89_v15 = vld [vmem:[%s618_s1] sm:$0xff]  ;;  %v200_v40 = vld [vmem:[#allocation4 + $0x68] sm:$0xff] }
  0x18   :  { %v87_v16 = vld [vmem:[#allocation2] sm:$0xff]  ;;  %v88_v17 = vld [vmem:[#allocation2 + $0x8] sm:$0xff]  ;;  %v199_v41 = vld [vmem:[#allocation4 + $0x60] sm:$0xff] }
  0x19   :  { %110 = vmatpush.msra.mxu0 %v101_v3  ;;  %333 = vmatpush.msra.mxu3 %v101_v3  ;;  %v353_v18 = vld [vmem:[%s619_s2] ss:$0 sm:$0xff]  ;;  %v361_v24 = vpop.eup %360  ;;  %v202_v26 = vld [vmem:[#allocation4 + $0x78] sm:$0xff]  ;;  %v196_v44 = vld [vmem:[#allocation4 + $0x48] sm:$0xff] }
  0x1a   :  { %v137_v25 = vmul.f32 128.0, %v361_v24  ;;  %205 = vmatpush.msra.mxu1 %v202_v26  ;;  %vm141_vm0 = vweird.f32 %v361_v24  ;;  %v201_v39 = vld [vmem:[#allocation4 + $0x70] sm:$0xff]  ;;  %v198_v42 = vld [vmem:[#allocation4 + $0x58] sm:$0xff]  ;;  %v195_v45 = vld [vmem:[#allocation4 + $0x40] sm:$0xff] }
  0x1b   :  { %111 = vmatpush.msra.mxu0 %v100_v4  ;;  %334 = vmatpush.msra.mxu3 %v100_v4  ;;  %v197_v43 = vld [vmem:[#allocation4 + $0x50] sm:$0xff]  ;;  %v194_v46 = vld [vmem:[#allocation4 + $0x38] sm:$0xff]  ;;  %v192_v48 = vld [vmem:[#allocation4 + $0x28] sm:$0xff] }
  0x1c   :  { %v138_v27 = vsub.f32 1.0, %v137_v25  ;;  %206 = vmatpush.msra.mxu1 %v201_v39  ;;  %v193_v47 = vld [vmem:[#allocation4 + $0x30] sm:$0xff]  ;;  %v191_v49 = vld [vmem:[#allocation4 + $0x20] sm:$0xff]  ;;  %v190_v50 = vld [vmem:[#allocation4 + $0x18] sm:$0xff] }
  0x1d   :  { %112 = vmatpush.msra.mxu0 %v99_v5  ;;  %335 = vmatpush.msra.mxu3 %v99_v5  ;;  %v189_v51 = vld [vmem:[#allocation4 + $0x10] sm:$0xff]  ;;  %v188_v52 = vld [vmem:[#allocation4 + $0x8] sm:$0xff]  ;;  %v187_v53 = vld [vmem:[#allocation4] sm:$0xff] }
  0x1e   :  { %v139_v28 = vmul.f32 %v361_v24, %v138_v27  ;;  %207 = vmatpush.msra.mxu1 %v200_v40  ;;  %v354_v4 = vld [vmem:[%s619_s2 + $0x1] ss:$0 sm:$0xff]  ;;  %v293_v25 = vld [vmem:[#allocation7 + $0x78] sm:$0xff]  ;;  %v288_v39 = vld [vmem:[#allocation7 + $0x50] sm:$0xff] }
  0x1f   :  { %113 = vmatpush.msra.mxu0 %v98_v6  ;;  %336 = vmatpush.msra.mxu3 %v98_v6  ;;  %v287_v40 = vld [vmem:[#allocation7 + $0x48] sm:$0xff] }
  0x20   :  { %v140_v29 = vadd.f32 %v361_v24, %v139_v28  ;;  %208 = vmatpush.msra.mxu1 %v199_v41  ;;  %298 = vmatpush.msra.mxu2 %v293_v25  ;;  %v286_v41 = vld [vmem:[#allocation7 + $0x40] sm:$0xff] }
  0x21   :  { %114 = vmatpush.msra.mxu0 %v97_v7  ;;  %337 = vmatpush.msra.mxu3 %v97_v7 }
  0x22   :  { %v582_v30 = vsel %vm141_vm0, %v361_v24, %v140_v29  ;;  %209 = vmatpush.msra.mxu1 %v198_v42  ;;  %v285_v42 = vld [vmem:[#allocation7 + $0x38] sm:$0xff] }
  0x23   :  { %115 = vmatpush.msra.mxu0 %v96_v8  ;;  %338 = vmatpush.msra.mxu3 %v96_v8  ;;  %v355_v8 = vld [vmem:[%s619_s2 + $0x2] ss:$0 sm:$0xff] }
  0x24   :  { %210 = vmatpush.msra.mxu1 %v197_v43  ;;  %v284_v43 = vld [vmem:[#allocation7 + $0x30] sm:$0xff] }
  0x25   :  { %116 = vmatpush.msra.mxu0 %v95_v9  ;;  %339 = vmatpush.msra.mxu3 %v95_v9 }
  0x26   :  { %211 = vmatpush.msra.mxu1 %v196_v44  ;;  %v283_v44 = vld [vmem:[#allocation7 + $0x28] sm:$0xff] }
  0x27   :  { %117 = vmatpush.msra.mxu0 %v94_v10  ;;  %340 = vmatpush.msra.mxu3 %v94_v10 }
  0x28   :  { %212 = vmatpush.msra.mxu1 %v195_v45  ;;  %v282_v45 = vld [vmem:[#allocation7 + $0x20] sm:$0xff] }
  0x29   :  { %118 = vmatpush.msra.mxu0 %v93_v11  ;;  %341 = vmatpush.msra.mxu3 %v93_v11 }
  0x2a   :  { %213 = vmatpush.msra.mxu1 %v194_v46  ;;  %v281_v46 = vld [vmem:[#allocation7 + $0x18] sm:$0xff] }
  0x2b   :  { %119 = vmatpush.msra.mxu0 %v92_v12  ;;  %342 = vmatpush.msra.mxu3 %v92_v12 }
  0x2c   :  { %214 = vmatpush.msra.mxu1 %v193_v47  ;;  %v280_v47 = vld [vmem:[#allocation7 + $0x10] sm:$0xff] }
  0x2d   :  { %120 = vmatpush.msra.mxu0 %v91_v13  ;;  %343 = vmatpush.msra.mxu3 %v91_v13 }
  0x2e   :  { %215 = vmatpush.msra.mxu1 %v192_v48  ;;  %v279_v48 = vld [vmem:[#allocation7 + $0x8] sm:$0xff] }
  0x2f   :  { %121 = vmatpush.msra.mxu0 %v90_v14  ;;  %344 = vmatpush.msra.mxu3 %v90_v14 }
  0x30   :  { %216 = vmatpush.msra.mxu1 %v191_v49  ;;  %v278_v49 = vld [vmem:[#allocation7] sm:$0xff] }
  0x31   :  { %122 = vmatpush.msra.mxu0 %v89_v15  ;;  %345 = vmatpush.msra.mxu3 %v89_v15 }
  0x32   :  { %123 = vmatmul.f32.vlgmr.msra.gmra.mxu0 %v87_v16  ;;  %126 = vmatmul.f32.vlgmr.msra.gmra.mxu3 %v88_v17 }
  0x33   :  { %217 = vmatpush.msra.mxu1 %v190_v50 }
  0x35   :  { %218 = vmatpush.msra.mxu1 %v189_v51 }
  0x37   :  { %219 = vmatpush.msra.mxu1 %v188_v52 }
  0x39   :  { %220 = vmatpush.msra.mxu1 %v187_v53 }
  0xaf   :  { %v124_v19 = vpop.f32.mrf.mxu0 }
  0xb0   :  { %v125_v20 = vadd.f32 %v353_v18, %v124_v19 }
  0xb2   :  { %132 = vadd.xlane.f32.xlu0 %v125_v20 }
  0xb5   :  { %v127_v21 = vpop.f32.mrf.mxu3 }
  0xb6   :  { %v128_v22 = vadd.f32 %v353_v18, %v127_v21 }
  0xba   :  { %134 = vadd.xlane.f32.xlu0 %v128_v22 }
 0x125   :  { %v133_v31 = vpop.xlane.xlu0 %132 }
 0x126   :  { %v143_v32 = vmul.f32 %v582_v30, %v133_v31 }
 0x128   :  { %v145_v33 = vsub.f32 %v125_v20, %v143_v32  ;;  %v356_v20 = vld [vmem:[#allocation6] ss:$0 sm:$0xff] }
 0x12a   :  { %v147_v34 = vmul.f32 %v145_v33, %v145_v33 }
 0x12c   :  { %149 = vadd.xlane.f32.xlu1 %v147_v34 }
 0x12d   :  { %v135_v35 = vpop.xlane.xlu0 %134 }
 0x12e   :  { %v144_v36 = vmul.f32 %v582_v30, %v135_v35  ;;  %v292_v35 = vld [vmem:[#allocation7 + $0x70] sm:$0xff] }
 0x12f   :  { %299 = vmatpush.msra.mxu2 %v292_v35 }
 0x130   :  { %v586_v37 = vsub.f32 %v128_v22, %v144_v36  ;;  %v291_v36 = vld [vmem:[#allocation7 + $0x68] sm:$0xff] }
 0x131   :  { %300 = vmatpush.msra.mxu2 %v291_v36 }
 0x132   :  { %v148_v38 = vmul.f32 %v586_v37, %v586_v37 }
 0x134   :  { %151 = vadd.xlane.f32.xlu1 %v148_v38  ;;  %v289_v38 = vld [vmem:[#allocation7 + $0x58] sm:$0xff] }
 0x19f   :  { %v150_v54 = vpop.xlane.xlu1 %149 }
 0x1a0   :  { %v153_v55 = vmul.f32 %v150_v54, %v582_v30 }
 0x1a2   :  { %v155_v56 = vadd.f32 1e-05, %v153_v55 }
 0x1a4   :  { %362 = vrsqrt.f32 %v155_v56  ;;  %vm163_vm2 = vweird.f32 %v155_v56 }
 0x1a7   :  { %v152_v57 = vpop.xlane.xlu1 %151 }
 0x1a8   :  { %v154_v58 = vmul.f32 %v152_v57, %v582_v30 }
 0x1aa   :  { %v363_v59 = vpop.eup %362  ;;  %v156_v60 = vadd.f32 1e-05, %v154_v58 }
 0x1ab   :  { %v158_v61 = vmul.f32 %v363_v59, %v155_v56  ;;  %vm164_vm1 = vweird.f32 %v363_v59 }
 0x1ac   :  { %364 = vrsqrt.f32 %v156_v60  ;;  %vm165_vm3 = vmor %vm163_vm2, %vm164_vm1  ;;  %vm173_vm5 = vweird.f32 %v156_v60 }
 0x1ad   :  { %v159_v62 = vmul.f32 %v363_v59, %v158_v61 }
 0x1af   :  { %v160_v63 = vmul.f32 0.5, %v159_v62 }
 0x1b1   :  { %v161_v0 = vsub.f32 1.5, %v160_v63 }
 0x1b2   :  { %v365_v1 = vpop.eup %364 }
 0x1b3   :  { %v162_v2 = vmul.f32 %v363_v59, %v161_v0  ;;  %v168_v3 = vmul.f32 %v365_v1, %v156_v60  ;;  %vm174_vm4 = vweird.f32 %v365_v1  ;;  %v357_v0 = vld [vmem:[#allocation6 + $0x1] ss:$0 sm:$0xff] }
 0x1b4   :  { %vm175_vm6 = vmor %vm173_vm5, %vm174_vm4 }
 0x1b5   :  { %v169_v5 = vmul.f32 %v365_v1, %v168_v3  ;;  %v166_v6 = vsel %vm165_vm3, %v363_v59, %v162_v2 }
 0x1b6   :  { %v177_v7 = vmul.f32 %v166_v6, %v145_v33 }
 0x1b7   :  { %v170_v9 = vmul.f32 0.5, %v169_v5 }
 0x1b8   :  { %v180_v10 = vmul.f32 %v354_v4, %v177_v7 }
 0x1b9   :  { %v171_v11 = vsub.f32 1.5, %v170_v9 }
 0x1ba   :  { %v183_v12 = vadd.f32 %v355_v8, %v180_v10 }
 0x1bb   :  { %v172_v13 = vmul.f32 %v365_v1, %v171_v11 }
 0x1bc   :  { %v185_v14 = vmax.f32 %v183_v12, 0.0 }
 0x1bd   :  { %v176_v15 = vsel %vm175_vm6, %v365_v1, %v172_v13 }
 0x1be   :  { %221 = vmatmul.f32.vlgmr.msra.gmra.mxu1 %v185_v14  ;;  %v178_v16 = vmul.f32 %v176_v15, %v586_v37  ;;  %v290_v37 = vld [vmem:[#allocation7 + $0x60] sm:$0xff]  ;;  %v359_v15 = vld [vmem:[%s623_s6] ss:$0 sm:$0xff] }
 0x1bf   :  { %301 = vmatpush.msra.mxu2 %v290_v37 }
 0x1c0   :  { %v181_v17 = vmul.f32 %v354_v4, %v178_v16  ;;  %v358_v4 = vld [vmem:[#allocation6 + $0x2] ss:$0 sm:$0xff] }
 0x1c1   :  { %302 = vmatpush.msra.mxu2 %v289_v38 }
 0x1c2   :  { %v184_v18 = vadd.f32 %v355_v8, %v181_v17 }
 0x1c3   :  { %303 = vmatpush.msra.mxu2 %v288_v39 }
 0x1c4   :  { %v186_v19 = vmax.f32 %v184_v18, 0.0 }
 0x1c5   :  { %304 = vmatpush.msra.mxu2 %v287_v40 }
 0x1c6   :  { %224 = vmatmul.f32.gmra.mxu1 %v186_v19 }
 0x1c7   :  { %305 = vmatpush.msra.mxu2 %v286_v41 }
 0x1c9   :  { %306 = vmatpush.msra.mxu2 %v285_v42 }
 0x1cb   :  { %307 = vmatpush.msra.mxu2 %v284_v43 }
 0x1cd   :  { %308 = vmatpush.msra.mxu2 %v283_v44 }
 0x1cf   :  { %309 = vmatpush.msra.mxu2 %v282_v45 }
 0x1d1   :  { %310 = vmatpush.msra.mxu2 %v281_v46 }
 0x1d3   :  { %311 = vmatpush.msra.mxu2 %v280_v47 }
 0x1d5   :  { %312 = vmatpush.msra.mxu2 %v279_v48 }
 0x1d7   :  { %313 = vmatpush.msra.mxu2 %v278_v49 }
 0x23b   :  { %v222_v21 = vpop.f32.mrf.mxu1 }
 0x23c   :  { %v223_v22 = vadd.f32 %v356_v20, %v222_v21 }
 0x23e   :  { %230 = vadd.xlane.f32.xlu2 %v223_v22 }
 0x243   :  { %v225_v23 = vpop.f32.mrf.mxu1 }
 0x244   :  { %v226_v24 = vadd.f32 %v356_v20, %v225_v23 }
 0x246   :  { %232 = vadd.xlane.f32.xlu2 %v226_v24 }
 0x2b1   :  { %v231_v26 = vpop.xlane.xlu2 %230 }
 0x2b2   :  { %v234_v27 = vmul.f32 %v231_v26, %v582_v30 }
 0x2b4   :  { %v236_v28 = vsub.f32 %v223_v22, %v234_v27 }
 0x2b6   :  { %v238_v29 = vmul.f32 %v236_v28, %v236_v28 }
 0x2b8   :  { %240 = vadd.xlane.f32.xlu0 %v238_v29 }
 0x2b9   :  { %v233_v31 = vpop.xlane.xlu2 %232 }
 0x2ba   :  { %v235_v32 = vmul.f32 %v233_v31, %v582_v30 }
 0x2bc   :  { %v601_v33 = vsub.f32 %v226_v24, %v235_v32 }
 0x2be   :  { %v239_v34 = vmul.f32 %v601_v33, %v601_v33 }
 0x2c0   :  { %242 = vadd.xlane.f32.xlu1 %v239_v34 }
 0x32b   :  { %v241_v50 = vpop.xlane.xlu0 %240 }
 0x32c   :  { %v244_v51 = vmul.f32 %v241_v50, %v582_v30 }
 0x32e   :  { %v246_v52 = vadd.f32 1e-05, %v244_v51 }
 0x330   :  { %366 = vrsqrt.f32 %v246_v52  ;;  %vm254_vm8 = vweird.f32 %v246_v52 }
 0x333   :  { %v243_v53 = vpop.xlane.xlu1 %242 }
 0x334   :  { %v245_v54 = vmul.f32 %v243_v53, %v582_v30 }
 0x336   :  { %v367_v55 = vpop.eup %366  ;;  %v247_v56 = vadd.f32 1e-05, %v245_v54 }
 0x337   :  { %v249_v57 = vmul.f32 %v367_v55, %v246_v52  ;;  %vm255_vm7 = vweird.f32 %v367_v55 }
 0x338   :  { %368 = vrsqrt.f32 %v247_v56  ;;  %vm256_vm9 = vmor %vm254_vm8, %vm255_vm7  ;;  %vm264_vm11 = vweird.f32 %v247_v56 }
 0x339   :  { %v250_v58 = vmul.f32 %v367_v55, %v249_v57 }
 0x33b   :  { %v251_v59 = vmul.f32 0.5, %v250_v58 }
 0x33d   :  { %v252_v60 = vsub.f32 1.5, %v251_v59 }
 0x33e   :  { %v369_v61 = vpop.eup %368 }
 0x33f   :  { %v253_v62 = vmul.f32 %v367_v55, %v252_v60  ;;  %v259_v63 = vmul.f32 %v369_v61, %v247_v56  ;;  %vm265_vm10 = vweird.f32 %v369_v61 }
 0x340   :  { %vm266_vm12 = vmor %vm264_vm11, %vm265_vm10 }
 0x341   :  { %v260_v1 = vmul.f32 %v369_v61, %v259_v63  ;;  %v257_v2 = vsel %vm256_vm9, %v367_v55, %v253_v62 }
 0x342   :  { %v268_v3 = vmul.f32 %v257_v2, %v236_v28 }
 0x343   :  { %v261_v5 = vmul.f32 0.5, %v260_v1 }
 0x344   :  { %v271_v30 = vmul.f32 %v357_v0, %v268_v3 }
 0x345   :  { %v262_v6 = vsub.f32 1.5, %v261_v5 }
 0x346   :  { %v274_v7 = vadd.f32 %v358_v4, %v271_v30 }
 0x347   :  { %v263_v8 = vmul.f32 %v369_v61, %v262_v6 }
 0x348   :  { %v276_v9 = vmax.f32 %v274_v7, 0.0 }
 0x349   :  { %v267_v10 = vsel %vm266_vm12, %v369_v61, %v263_v8 }
 0x34a   :  { %314 = vmatmul.f32.vlgmr.msra.gmra.mxu2 %v276_v9  ;;  %v269_v11 = vmul.f32 %v267_v10, %v601_v33 }
 0x34c   :  { %v272_v12 = vmul.f32 %v357_v0, %v269_v11 }
 0x34e   :  { %v275_v13 = vadd.f32 %v358_v4, %v272_v12 }
 0x350   :  { %v277_v14 = vmax.f32 %v275_v13, 0.0 }
 0x352   :  { %317 = vmatmul.f32.gmra.mxu2 %v277_v14 }
 0x3cd   :  { %v315_v16 = vpop.f32.mrf.mxu2 }
 0x3ce   :  { %v316_v17 = vadd.f32 %v359_v15, %v315_v16 }
 0x3d0   :  { %321 = vst [vmem:[%s624_s7] sm:$0xff] %v316_v17 }
 0x3d5   :  { %v318_v18 = vpop.f32.mrf.mxu2 }
 0x3d6   :  { %v319_v19 = vadd.f32 %v359_v15, %v318_v18 }
 0x3d8   :  { %322 = vst [vmem:[%s624_s7 + $0x8] sm:$0xff] %v319_v19 }
 0x3d9   :  { %327 = vsyncpa [#allocation3], 1 }
 0x3da   :  { %328 = vsyncpa [#allocation5], 1 }
 0x3db   :  { %329 = vsyncpa [#allocation8], 1 }

// kernel: _lambda_.10
= control target key start
LH: loop header
LB: loop body
LE: loop exit
PB: predicated region body
PF: predicated region fallthrough
CT: control target
= control target key end

     0   :  { %12 = vsyncpa [#allocation3], 0  ;;  %s1692_s0 = inlined_call_operand.vmem [shape: f32[16,128], index: 0, kind: input, shape index: {}, may-alias: {0,1}]   ;;  %s1693_s1 = inlined_call_operand.vmem [shape: f32[16,128], index: 1, kind: input, shape index: {}, may-alias: {0,1}]   ;;  %s1694_s2 = inlined_call_operand.vmem [shape: f32[128,128], index: 2, kind: input, shape index: {}]   ;;  %s1695_s3 = inlined_call_operand.vmem [shape: f32[128,8], index: 3, kind: input, shape index: {}]   ;;  %s1696_s4 = inlined_call_operand.hbm [shape: f32[8,128], index: 4, kind: input, shape index: {}]   ;;  %s1697_s5 = inlined_call_operand.hbm [shape: f32[1,128], index: 5, kind: input, shape index: {}]   ;;  %s1698_s6 = inlined_call_operand.hbm [shape: f32[16,16], index: 6, kind: input, shape index: {}]   ;;  %s1699_s7 = inlined_call_operand.vmem [shape: f32[16,128], index: 7, kind: output, shape index: {}]  }
   0x1   :  { %13 = vsyncpa [#allocation5], 0  ;;  %s38_s26 = sshll.u32 %s1697_s5, 4  ;;  %s1167_s27 = smov [#allocation4]   ;;  %s39_s26 = int_to_ptr.hbm [resolvable:$true] %s38_s26 }
   0x2   :  { %s40_s28 = sshll.u32 %s1167_s27, 4  ;;  %s27_s8 = sshll.u32 %s1696_s4, 4  ;;  %s41_s28 = int_to_ptr.vmem [resolvable:$true] %s40_s28  ;;  %s28_s8 = int_to_ptr.hbm [resolvable:$true] %s27_s8 }
   0x3   :  { %43 = dma.hbm_to_vmem [thread:$0]  %s39_s26, 16, %s41_s28, [#allocation5]  }
   0x4   :  { %s1168_s9 = smov [#allocation2]   ;;  %s48_s13 = sshll.u32 %s1698_s6, 4  ;;  %s49_s13 = int_to_ptr.hbm [resolvable:$true] %s48_s13 }
   0x5   :  { %s29_s10 = sshll.u32 %s1168_s9, 4  ;;  %s1169_s5 = smov [#allocation6]   ;;  %s30_s10 = int_to_ptr.vmem [resolvable:$true] %s29_s10 }
   0x6   :  { %32 = dma.hbm_to_vmem [thread:$0]  %s28_s8, 128, %s30_s10, [#allocation3]  }
   0x7   :  { %s50_s14 = sshll.u32 %s1169_s5, 4  ;;  %s1170_s15 = smov 128   ;;  %s51_s14 = int_to_ptr.vmem [resolvable:$true] %s50_s14 }
   0x8   :  { %s1171_s16 = smov 8  }
   0x9   :  { %56 = dma.hbm_to_vmem [thread:$0]  %s49_s13, 256, %s51_s14, [#allocation5], %s1170_s15, %s1170_s15, %s1171_s16  }
   0xa   :  { %1163 = dma.done.wait [#allocation3], 128  }
   0xb   :  { %1164 = vsyncadd [#allocation3], 4294967168 }
   0xc   :  { %1165 = dma.done.wait [#allocation5], 272  }
   0xd   :  { %1166 = vsyncadd [#allocation5], 4294967024  ;;  %v86_v0 = vld [vmem:[%s1694_s2 + $0x78] sm:$0xff]  ;;  %v85_v1 = vld [vmem:[%s1694_s2 + $0x70] sm:$0xff]  ;;  %v1172_v36 = vmov 4   ;;  %v1173_v37 = vmov 2  }
   0xe   :  { %112 = vmatpush.msra.mxu1 %v86_v0  ;;  %87 = vmatpush.msra.mxu0 %v86_v0  ;;  %v84_v2 = vld [vmem:[%s1694_s2 + $0x68] sm:$0xff]  ;;  %v83_v3 = vld [vmem:[%s1694_s2 + $0x60] sm:$0xff]  ;;  %v82_v4 = vld [vmem:[%s1694_s2 + $0x58] sm:$0xff]  ;;  %v1174_v38 = vmov 0   ;;  %v1178_v47 = vmov 1   ;;  %v1179_v48 = vmov 3  }
   0xf   :  { %v81_v5 = vld [vmem:[%s1694_s2 + $0x50] sm:$0xff]  ;;  %v150_v6 = vld [vmem:[%s1695_s3 + $0x78] sm:$0xff]  ;;  %v80_v8 = vld [vmem:[%s1694_s2 + $0x48] sm:$0xff]  ;;  %993 = vset.pattern.permute.xlu2 %v1172_v36  ;;  %992 = vset.pattern.permute.xlu1 %v1173_v37  ;;  %v1180_v49 = vmov 5   ;;  %v1181_v51 = vmov 6   ;;  %v1182_v52 = vmov 7  }
  0x10   :  { %113 = vmatpush.msra.mxu1 %v85_v1  ;;  %88 = vmatpush.msra.mxu0 %v85_v1  ;;  %v149_v7 = vld [vmem:[%s1695_s3 + $0x70] sm:$0xff]  ;;  %v148_v9 = vld [vmem:[%s1695_s3 + $0x68] sm:$0xff]  ;;  %v79_v10 = vld [vmem:[%s1694_s2 + $0x40] sm:$0xff]  ;;  %vm223_vm3 = vcmask 130048   ;;  %s1184_s11 = smov 64   ;;  %s1185_s12 = smov 32  }
  0x11   :  { %151 = vmatpush.msra.mxu2 %v150_v6  ;;  %v147_v11 = vld [vmem:[%s1695_s3 + $0x60] sm:$0xff]  ;;  %v78_v12 = vld [vmem:[%s1694_s2 + $0x38] sm:$0xff]  ;;  %v77_v14 = vld [vmem:[%s1694_s2 + $0x30] sm:$0xff]  ;;  %990 = vset.pattern.permute.xlu0 %v1174_v38  ;;  %s1186_s13 = smov 48   ;;  %s1187_s5 = smov 16  }
  0x12   :  { %114 = vmatpush.msra.mxu1 %v84_v2  ;;  %89 = vmatpush.msra.mxu0 %v84_v2  ;;  %v146_v13 = vld [vmem:[%s1695_s3 + $0x58] sm:$0xff]  ;;  %v145_v15 = vld [vmem:[%s1695_s3 + $0x50] sm:$0xff]  ;;  %v76_v16 = vld [vmem:[%s1694_s2 + $0x28] sm:$0xff] }
  0x13   :  { %152 = vmatpush.msra.mxu2 %v149_v7  ;;  %v144_v17 = vld [vmem:[%s1695_s3 + $0x48] sm:$0xff]  ;;  %v75_v18 = vld [vmem:[%s1694_s2 + $0x20] sm:$0xff]  ;;  %v74_v20 = vld [vmem:[%s1694_s2 + $0x18] sm:$0xff] }
  0x14   :  { %115 = vmatpush.msra.mxu1 %v83_v3  ;;  %90 = vmatpush.msra.mxu0 %v83_v3  ;;  %v143_v19 = vld [vmem:[%s1695_s3 + $0x40] sm:$0xff]  ;;  %v142_v21 = vld [vmem:[%s1695_s3 + $0x38] sm:$0xff]  ;;  %v73_v22 = vld [vmem:[%s1694_s2 + $0x10] sm:$0xff] }
  0x15   :  { %153 = vmatpush.msra.mxu2 %v148_v9  ;;  %v141_v23 = vld [vmem:[%s1695_s3 + $0x30] sm:$0xff]  ;;  %v72_v24 = vld [vmem:[%s1694_s2 + $0x8] sm:$0xff]  ;;  %v71_v26 = vld [vmem:[%s1694_s2] sm:$0xff]  ;;  %v1183_v9 = vmov -1e+30  }
  0x16   :  { %116 = vmatpush.msra.mxu1 %v82_v4  ;;  %91 = vmatpush.msra.mxu0 %v82_v4  ;;  %v140_v25 = vld [vmem:[%s1695_s3 + $0x28] sm:$0xff]  ;;  %v110_v27 = vld [vmem:[%s1692_s0] sm:$0xff]  ;;  %v138_v30 = vld [vmem:[%s1695_s3 + $0x18] sm:$0xff] }
  0x17   :  { %154 = vmatpush.msra.mxu2 %v147_v11  ;;  %v69_v28 = vld [vmem:[%s1693_s1] sm:$0xff]  ;;  %v137_v31 = vld [vmem:[%s1695_s3 + $0x10] sm:$0xff]  ;;  %v136_v32 = vld [vmem:[%s1695_s3 + $0x8] sm:$0xff] }
  0x18   :  { %117 = vmatpush.msra.mxu1 %v81_v5  ;;  %92 = vmatpush.msra.mxu0 %v81_v5  ;;  %v139_v29 = vld [vmem:[%s1695_s3 + $0x20] sm:$0xff]  ;;  %v111_v33 = vld [vmem:[%s1692_s0 + $0x8] sm:$0xff]  ;;  %s1175_s0 = smov 112  }
  0x19   :  { %155 = vmatpush.msra.mxu2 %v146_v13  ;;  %v70_v34 = vld [vmem:[%s1693_s1 + $0x8] sm:$0xff]  ;;  %v135_v35 = vld [vmem:[%s1695_s3] sm:$0xff]  ;;  %s1176_s1 = smov 96   ;;  %s1177_s3 = smov 80  }
  0x1a   :  { %118 = vmatpush.msra.mxu1 %v80_v8  ;;  %93 = vmatpush.msra.mxu0 %v80_v8  ;;  %v174_v45 = vld [vmem:[#allocation2] sm:$0xff]  ;;  %v195_v1 = vld [vmem:[#allocation6] sm:$0xff] }
  0x1b   :  { %156 = vmatpush.msra.mxu2 %v145_v15  ;;  %vm197_vm0 = vcmp.gt.f32.partialorder %v195_v1, 0.0 }
  0x1c   :  { %119 = vmatpush.msra.mxu1 %v79_v10  ;;  %94 = vmatpush.msra.mxu0 %v79_v10  ;;  %v1371_v10 = vsel %vm197_vm0, 0.0, %v1183_v9 }
  0x1d   :  { %157 = vmatpush.msra.mxu2 %v144_v17 }
  0x1e   :  { %120 = vmatpush.msra.mxu1 %v78_v12  ;;  %95 = vmatpush.msra.mxu0 %v78_v12 }
  0x1f   :  { %158 = vmatpush.msra.mxu2 %v143_v19 }
  0x20   :  { %121 = vmatpush.msra.mxu1 %v77_v14  ;;  %96 = vmatpush.msra.mxu0 %v77_v14 }
  0x21   :  { %159 = vmatpush.msra.mxu2 %v142_v21 }
  0x22   :  { %122 = vmatpush.msra.mxu1 %v76_v16  ;;  %97 = vmatpush.msra.mxu0 %v76_v16 }
  0x23   :  { %160 = vmatpush.msra.mxu2 %v141_v23 }
  0x24   :  { %123 = vmatpush.msra.mxu1 %v75_v18  ;;  %98 = vmatpush.msra.mxu0 %v75_v18 }
  0x25   :  { %161 = vmatpush.msra.mxu2 %v140_v25 }
  0x26   :  { %124 = vmatpush.msra.mxu1 %v74_v20  ;;  %99 = vmatpush.msra.mxu0 %v74_v20 }
  0x27   :  { %162 = vmatpush.msra.mxu2 %v139_v29 }
  0x28   :  { %125 = vmatpush.msra.mxu1 %v73_v22  ;;  %100 = vmatpush.msra.mxu0 %v73_v22 }
  0x29   :  { %163 = vmatpush.msra.mxu2 %v138_v30 }
  0x2a   :  { %126 = vmatpush.msra.mxu1 %v72_v24  ;;  %101 = vmatpush.msra.mxu0 %v72_v24 }
  0x2b   :  { %164 = vmatpush.msra.mxu2 %v137_v31 }
  0x2c   :  { %127 = vmatpush.msra.mxu1 %v71_v26  ;;  %102 = vmatpush.msra.mxu0 %v71_v26 }
  0x2d   :  { %128 = vmatmul.f32.vlgmr.msra.gmra.mxu1 %v110_v27  ;;  %103 = vmatmul.f32.vlgmr.msra.gmra.mxu0 %v69_v28 }
  0x2e   :  { %165 = vmatpush.msra.mxu2 %v136_v32 }
  0x30   :  { %166 = vmatpush.msra.mxu2 %v135_v35 }
  0x35   :  { %131 = vmatmul.f32.gmra.mxu1 %v111_v33  ;;  %106 = vmatmul.f32.gmra.mxu0 %v70_v34 }
  0xaa   :  { %v129_v39 = vpop.f32.mrf.mxu1  ;;  %v104_v40 = vpop.f32.mrf.mxu0 }
  0xab   :  { %167 = vmatmul.f32.vlgmr.msra.gmra.mxu2 %v129_v39 }
  0xb2   :  { %v132_v41 = vpop.f32.mrf.mxu1  ;;  %v107_v42 = vpop.f32.mrf.mxu0 }
  0xb3   :  { %170 = vmatmul.f32.gmra.mxu2 %v132_v41  ;;  %189 = vmatpush.xpose.msra.mxu3 %v107_v42  ;;  %v975_v43 = vpack.i.bf16 %v107_v42, %v104_v40  ;;  %v1346_v44 = vpack.i.bf16 %v104_v40, %v107_v42 }
  0xb5   :  { %976 = vrot.lane.b32.xlu2 %v975_v43, %s1175_s0  ;;  %981 = vrot.lane.b32.xlu1 %v1346_v44, %s1176_s1 }
  0xb7   :  { %190 = vmatpush.xpose.msra.mxu3 %v104_v40 }
  0xba   :  { %191 = vmatmul.f32.vlgmr.msra.gmra.mxu3 %v174_v45 }
  0xbb   :  { %269 = vmatpush.msrb.mxu3 %v107_v42 }
  0xbd   :  { %270 = vmatpush.msrb.mxu3 %v104_v40  ;;  %986 = vrot.lane.b32.xlu2 %v1346_v44, %s1177_s3 }
 0x10f   :  { %v977_v53 = vpop.permute.xlu2 %976 }
 0x110   :  { %v979_v54 = vunpack.i.h.bf16 %v977_v53  ;;  %v978_v55 = vunpack.i.l.bf16 %v977_v53  ;;  %v196_v53 = vld [vmem:[#allocation6 + $0x8] sm:$0xff] }
 0x111   :  { %vm198_vm9 = vcmp.gt.f32.partialorder %v196_v53, 0.0 }
 0x112   :  { %354 = vmatpush.msra.mxu3 %v979_v54 }
 0x114   :  { %355 = vmatpush.msra.mxu3 %v978_v55 }
 0x117   :  { %v1353_v56 = vpop.permute.xlu2 %986 }
 0x118   :  { %v988_v57 = vunpack.i.l.bf16 %v1353_v56  ;;  %v989_v58 = vunpack.i.h.bf16 %v1353_v56 }
 0x11a   :  { %538 = vmatpush.msrb.mxu1 %v988_v57 }
 0x11c   :  { %539 = vmatpush.msrb.mxu1 %v989_v58 }
 0x127   :  { %v982_v59 = vpop.permute.xlu1 %981 }
 0x128   :  { %v983_v60 = vunpack.i.l.bf16 %v982_v59  ;;  %v984_v61 = vunpack.i.h.bf16 %v982_v59 }
 0x12a   :  { %446 = vmatpush.msrb.mxu0 %v983_v60  ;;  %950 = vmatpush.msrb.mxu2 %v983_v60 }
 0x12c   :  { %447 = vmatpush.msrb.mxu0 %v984_v61  ;;  %951 = vmatpush.msrb.mxu2 %v984_v61 }
 0x12e   :  { %v168_v46 = vpop.f32.mrf.mxu2 }
 0x12f   :  { %204 = vperm.xlu0 %990, %v168_v46   ;;  %377 = vperm.xlu1 %992, %v168_v46  }
 0x130   :  { %561 = vperm.xlu2 %993, %v168_v46  }
 0x136   :  { %v171_v50 = vpop.f32.mrf.mxu2 }
 0x137   :  { %991 = vset.pattern.permute.xlu0 %v1178_v47  ;;  %994 = vset.pattern.permute.xlu1 %v1179_v48 }
 0x138   :  { %995 = vset.pattern.permute.xlu2 %v1180_v49  ;;  %283 = vperm.xlu0 %991, %v168_v46  }
 0x139   :  { %469 = vperm.xlu1 %994, %v168_v46   ;;  %653 = vperm.xlu2 %995, %v168_v46  }
 0x13d   :  { %v1362_v62 = vpop.f32.mrf.mxu3 }
 0x13e   :  { %v212_v63 = vperm.slane %v1362_v62, 0  ;;  %v384_v0 = vperm.slane %v1362_v62, 2  ;;  %v568_v13 = vperm.slane %v1362_v62, 4  ;;  %v290_v14 = vperm.slane %v1362_v62, 1 }
 0x13f   :  { %v476_v17 = vperm.slane %v1362_v62, 3  ;;  %v660_v28 = vperm.slane %v1362_v62, 5 }
 0x140   :  { %996 = vset.pattern.permute.xlu0 %v1181_v51 }
 0x141   :  { %997 = vset.pattern.permute.xlu1 %v1182_v52  ;;  %657 = vperm.xlu2 %995, %v171_v50  }
 0x142   :  { %745 = vperm.xlu0 %996, %v168_v46   ;;  %837 = vperm.xlu1 %997, %v168_v46   ;;  %v752_v46 = vperm.slane %v1362_v62, 6 }
 0x149   :  { %1003 = vset.pattern.permute.xlu2 %v1181_v51 }
 0x14a   :  { %998 = vset.pattern.permute.xlu0 %v1174_v38  ;;  %999 = vset.pattern.permute.xlu1 %v1178_v47 }
 0x14b   :  { %749 = vperm.xlu2 %1003, %v171_v50   ;;  %209 = vperm.xlu0 %998, %v171_v50  }
 0x14c   :  { %287 = vperm.xlu1 %999, %v171_v50  }
 0x153   :  { %1025 = vset.pattern.permute.xlu0 %v1182_v52 }
 0x154   :  { %1000 = vset.pattern.permute.xlu1 %v1173_v37 }
 0x155   :  { %381 = vperm.xlu1 %1000, %v171_v50  }
 0x15d   :  { %1001 = vset.pattern.permute.xlu1 %v1179_v48 }
 0x15e   :  { %473 = vperm.xlu1 %1001, %v171_v50  }
 0x166   :  { %1002 = vset.pattern.permute.xlu1 %v1172_v36  ;;  %v844_v36 = vperm.slane %v1362_v62, 7 }
 0x167   :  { %565 = vperm.xlu1 %1002, %v171_v50  }
 0x16f   :  { %1004 = vset.pattern.permute.xlu1 %v1182_v52 }
 0x170   :  { %841 = vperm.xlu1 %1004, %v171_v50  }
 0x18a   :  { %v562_v8 = vpop.permute.xlu2 %561 }
 0x18b   :  { %v569_v21 = vadd.f32 %v568_v13, %v562_v8 }
 0x18d   :  { %v573_v27 = vmul.f32 0.2, %v569_v21  ;;  %vm571_vm6 = vcmp.gt.f32.partialorder %v569_v21, 0.0 }
 0x18f   :  { %v575_v38 = vsel %vm571_vm6, %v569_v21, %v573_v27  ;;  %vm649_vm6 = vcmask 654848  }
 0x190   :  { %v1409_v42 = vadd.f32 %v575_v38, %v1371_v10 }
 0x192   :  { %v579_v48 = vsel %vm223_vm3, %v1409_v42, -inf }
 0x193   :  { %v654_v30 = vpop.permute.xlu2 %653 }
 0x194   :  { %v661_v35 = vadd.f32 %v660_v28, %v654_v30 }
 0x196   :  { %v665_v43 = vmul.f32 0.2, %v661_v35  ;;  %vm663_vm8 = vcmp.gt.f32.partialorder %v661_v35, 0.0 }
 0x198   :  { %v667_v51 = vsel %vm663_vm8, %v661_v35, %v665_v43  ;;  %vm833_vm8 = vcmask 917248  }
 0x199   :  { %v1422_v60 = vadd.f32 %v667_v51, %v1371_v10 }
 0x19b   :  { %v658_v8 = vpop.permute.xlu2 %657 }
 0x1a1   :  { %v205_v2 = vpop.permute.xlu0 %204  ;;  %v378_v3 = vpop.permute.xlu1 %377 }
 0x1a2   :  { %v213_v4 = vadd.f32 %v212_v63, %v205_v2  ;;  %v385_v5 = vadd.f32 %v384_v0, %v378_v3  ;;  %v671_v2 = vsel %vm223_vm3, %v1422_v60, -inf  ;;  %v1427_v3 = vsel %vm198_vm9, 0.0, %v1183_v9 }
 0x1a3   :  { %vm925_vm9 = vcmask 1048448  }
 0x1a4   :  { %vm215_vm1 = vcmp.gt.f32.partialorder %v213_v4, 0.0  ;;  %v217_v6 = vmul.f32 0.2, %v213_v4  ;;  %vm387_vm2 = vcmp.gt.f32.partialorder %v385_v5, 0.0  ;;  %v389_v7 = vmul.f32 0.2, %v385_v5 }
 0x1a6   :  { %v391_v11 = vsel %vm387_vm2, %v385_v5, %v389_v7  ;;  %v219_v12 = vsel %vm215_vm1, %v213_v4, %v217_v6 }
 0x1a7   :  { %v1376_v15 = vadd.f32 %v391_v11, %v1371_v10  ;;  %v1379_v16 = vadd.f32 %v219_v12, %v1371_v10 }
 0x1a9   :  { %v395_v18 = vsel %vm223_vm3, %v1376_v15, -inf  ;;  %v224_v19 = vsel %vm223_vm3, %v1379_v16, -inf }
 0x1aa   :  { %v284_v20 = vpop.permute.xlu0 %283  ;;  %396 = vmax.xlane.f32.xlu0 %v395_v18  ;;  %225 = vmax.xlane.f32.xlu1 %v224_v19 }
 0x1ab   :  { %v291_v22 = vadd.f32 %v290_v14, %v284_v20  ;;  %v470_v23 = vpop.permute.xlu1 %469 }
 0x1ac   :  { %v477_v24 = vadd.f32 %v476_v17, %v470_v23 }
 0x1ad   :  { %vm293_vm4 = vcmp.gt.f32.partialorder %v291_v22, 0.0  ;;  %v295_v25 = vmul.f32 0.2, %v291_v22 }
 0x1ae   :  { %vm479_vm5 = vcmp.gt.f32.partialorder %v477_v24, 0.0  ;;  %v481_v26 = vmul.f32 0.2, %v477_v24 }
 0x1af   :  { %v297_v29 = vsel %vm293_vm4, %v291_v22, %v295_v25  ;;  %v750_v22 = vpop.permute.xlu2 %749  ;;  %vm465_vm4 = vcmask 392448  }
 0x1b0   :  { %v1394_v31 = vadd.f32 %v297_v29, %v1371_v10  ;;  %v483_v32 = vsel %vm479_vm5, %v477_v24, %v481_v26  ;;  %v754_v23 = vadd.f32 %v752_v46, %v750_v22  ;;  %vm557_vm5 = vcmask 523648  }
 0x1b1   :  { %v1397_v33 = vadd.f32 %v483_v32, %v1371_v10 }
 0x1b2   :  { %v301_v34 = vsel %vm223_vm3, %v1394_v31, -inf  ;;  %v758_v26 = vmul.f32 0.2, %v754_v23  ;;  %vm756_vm14 = vcmp.gt.f32.partialorder %v754_v23, 0.0 }
 0x1b3   :  { %302 = vmax.xlane.f32.xlu2 %v301_v34  ;;  %v487_v37 = vsel %vm223_vm3, %v1397_v33, -inf }
 0x1b4   :  { %v746_v39 = vpop.permute.xlu0 %745  ;;  %v838_v40 = vpop.permute.xlu1 %837  ;;  %488 = vmax.xlane.f32.xlu1 %v487_v37  ;;  %v760_v27 = vsel %vm756_vm14, %v754_v23, %v758_v26 }
 0x1b5   :  { %v845_v41 = vadd.f32 %v844_v36, %v838_v40  ;;  %v753_v50 = vadd.f32 %v752_v46, %v746_v39  ;;  %v1454_v29 = vadd.f32 %v760_v27, %v1427_v3 }
 0x1b7   :  { %vm847_vm7 = vcmp.gt.f32.partialorder %v845_v41, 0.0  ;;  %v849_v45 = vmul.f32 0.2, %v845_v41  ;;  %v757_v61 = vmul.f32 0.2, %v753_v50  ;;  %vm755_vm10 = vcmp.gt.f32.partialorder %v753_v50, 0.0 }
 0x1b8   :  { %v766_v30 = vsel %vm223_vm3, %v1454_v29, -inf }
 0x1b9   :  { %v851_v47 = vsel %vm847_vm7, %v845_v41, %v849_v45  ;;  %v759_v6 = vsel %vm755_vm10, %v753_v50, %v757_v61  ;;  %v662_v45 = vadd.f32 %v660_v28, %v658_v8  ;;  %vm741_vm7 = vcmask 786048  }
 0x1ba   :  { %v1415_v49 = vadd.f32 %v851_v47, %v1371_v10  ;;  %v1437_v11 = vadd.f32 %v759_v6, %v1371_v10 }
 0x1bb   :  { %580 = vmax.xlane.f32.xlu2 %v579_v48  ;;  %v666_v47 = vmul.f32 0.2, %v662_v45  ;;  %vm664_vm1 = vcmp.gt.f32.partialorder %v662_v45, 0.0 }
 0x1bc   :  { %v855_v52 = vsel %vm223_vm3, %v1415_v49, -inf  ;;  %v763_v18 = vsel %vm223_vm3, %v1437_v11, -inf }
 0x1bd   :  { %v210_v54 = vpop.permute.xlu0 %209  ;;  %856 = vmax.xlane.f32.xlu0 %v855_v52  ;;  %v668_v51 = vsel %vm664_vm1, %v662_v45, %v666_v47 }
 0x1be   :  { %v214_v55 = vadd.f32 %v212_v63, %v210_v54  ;;  %v288_v59 = vpop.permute.xlu1 %287  ;;  %v1479_v52 = vadd.f32 %v668_v51, %v1427_v3 }
 0x1bf   :  { %v292_v5 = vadd.f32 %v290_v14, %v288_v59 }
 0x1c0   :  { %vm216_vm11 = vcmp.gt.f32.partialorder %v214_v55, 0.0  ;;  %v218_v1 = vmul.f32 0.2, %v214_v55  ;;  %v674_v53 = vsel %vm223_vm3, %v1479_v52, -inf }
 0x1c1   :  { %v296_v12 = vmul.f32 0.2, %v292_v5  ;;  %vm294_vm12 = vcmp.gt.f32.partialorder %v292_v5, 0.0 }
 0x1c2   :  { %v220_v4 = vsel %vm216_vm11, %v214_v55, %v218_v1 }
 0x1c3   :  { %672 = vmax.xlane.f32.xlu2 %v671_v2  ;;  %v1432_v63 = vadd.f32 %v220_v4, %v1427_v3  ;;  %v298_v19 = vsel %vm294_vm12, %v292_v5, %v296_v12 }
 0x1c4   :  { %v1444_v20 = vadd.f32 %v298_v19, %v1427_v3 }
 0x1c5   :  { %v227_v7 = vsel %vm223_vm3, %v1432_v63, -inf }
 0x1c6   :  { %228 = vmax.xlane.f32.xlu1 %v227_v7  ;;  %v304_v10 = vsel %vm223_vm3, %v1444_v20, -inf }
 0x1c7   :  { %v382_v9 = vpop.permute.xlu1 %381 }
 0x1c8   :  { %v386_v14 = vadd.f32 %v384_v0, %v382_v9 }
 0x1ca   :  { %v390_v21 = vmul.f32 0.2, %v386_v14  ;;  %vm388_vm13 = vcmp.gt.f32.partialorder %v386_v14, 0.0 }
 0x1cb   :  { %764 = vmax.xlane.f32.xlu2 %v763_v18 }
 0x1cc   :  { %v392_v24 = vsel %vm388_vm13, %v386_v14, %v390_v21 }
 0x1cd   :  { %v1449_v25 = vadd.f32 %v392_v24, %v1427_v3 }
 0x1cf   :  { %v398_v0 = vsel %vm223_vm3, %v1449_v25, -inf }
 0x1d0   :  { %v474_v32 = vpop.permute.xlu1 %473 }
 0x1d1   :  { %v478_v34 = vadd.f32 %v476_v17, %v474_v32 }
 0x1d3   :  { %305 = vmax.xlane.f32.xlu2 %v304_v10  ;;  %v482_v35 = vmul.f32 0.2, %v478_v34  ;;  %vm480_vm15 = vcmp.gt.f32.partialorder %v478_v34, 0.0 }
 0x1d5   :  { %v484_v39 = vsel %vm480_vm15, %v478_v34, %v482_v35 }
 0x1d6   :  { %v1465_v40 = vadd.f32 %v484_v39, %v1427_v3 }
 0x1d8   :  { %v490_v43 = vsel %vm223_vm3, %v1465_v40, -inf }
 0x1d9   :  { %v566_v37 = vpop.permute.xlu1 %565 }
 0x1da   :  { %v570_v38 = vadd.f32 %v568_v13, %v566_v37 }
 0x1db   :  { %399 = vmax.xlane.f32.xlu2 %v398_v0 }
 0x1dc   :  { %v574_v41 = vmul.f32 0.2, %v570_v38  ;;  %vm572_vm0 = vcmp.gt.f32.partialorder %v570_v38, 0.0 }
 0x1de   :  { %v576_v17 = vsel %vm572_vm0, %v570_v38, %v574_v41 }
 0x1df   :  { %1006 = vrot.lane.b32.xlu1 %v1346_v44, %s1184_s11  ;;  %v1472_v46 = vadd.f32 %v576_v17, %v1427_v3 }
 0x1e1   :  { %v582_v48 = vsel %vm223_vm3, %v1472_v46, -inf }
 0x1e2   :  { %v842_v13 = vpop.permute.xlu1 %841 }
 0x1e3   :  { %767 = vmax.xlane.f32.xlu2 %v766_v30  ;;  %v846_v50 = vadd.f32 %v844_v36, %v842_v13 }
 0x1e5   :  { %v850_v28 = vmul.f32 0.2, %v846_v50  ;;  %vm848_vm2 = vcmp.gt.f32.partialorder %v846_v50, 0.0 }
 0x1e7   :  { %v852_v54 = vsel %vm848_vm2, %v846_v50, %v850_v28 }
 0x1e8   :  { %v1484_v55 = vadd.f32 %v852_v54, %v1427_v3 }
 0x1ea   :  { %v858_v36 = vsel %vm223_vm3, %v1484_v55, -inf }
 0x209   :  { %491 = vmax.xlane.f32.xlu1 %v490_v43 }
 0x211   :  { %583 = vmax.xlane.f32.xlu1 %v582_v48 }
 0x219   :  { %675 = vmax.xlane.f32.xlu1 %v674_v53 }
 0x21d   :  { %v226_v59 = vpop.xlane.xlu1 %225  ;;  %v397_v1 = vpop.xlane.xlu0 %396 }
 0x21e   :  { %v230_v61 = vsub.f32 %v1379_v16, %v226_v59  ;;  %v401_v6 = vsub.f32 %v1376_v15, %v397_v1 }
 0x220   :  { %v232_v62 = vmul.f32 1.442695, %v230_v61  ;;  %v403_v16 = vmul.f32 1.442695, %v401_v6 }
 0x221   :  { %859 = vmax.xlane.f32.xlu1 %v858_v36 }
 0x222   :  { %1027 = vpow2.f32 %v232_v62 }
 0x226   :  { %v303_v2 = vpop.xlane.xlu2 %302 }
 0x227   :  { %v307_v4 = vsub.f32 %v1394_v31, %v303_v2  ;;  %v489_v9 = vpop.xlane.xlu1 %488 }
 0x228   :  { %v1490_v5 = vpop.eup %1027  ;;  %v493_v21 = vsub.f32 %v1397_v33, %v489_v9 }
 0x229   :  { %v309_v7 = vmul.f32 1.442695, %v307_v4  ;;  %v236_v3 = vsel %vm223_vm3, %v1490_v5, 0.0 }
 0x22a   :  { %237 = vadd.xlane.f32.xlu2 %v236_v3 }
 0x22b   :  { %1029 = vpow2.f32 %v309_v7 }
 0x22c   :  { %1031 = vpow2.f32 %v403_v16 }
 0x22e   :  { %v581_v8 = vpop.xlane.xlu2 %580 }
 0x22f   :  { %v585_v18 = vsub.f32 %v1409_v42, %v581_v8  ;;  %v495_v42 = vmul.f32 1.442695, %v493_v21 }
 0x230   :  { %v857_v37 = vpop.xlane.xlu0 %856 }
 0x231   :  { %v1495_v12 = vpop.eup %1029  ;;  %v587_v14 = vmul.f32 1.442695, %v585_v18  ;;  %v861_v41 = vsub.f32 %v1415_v49, %v857_v37 }
 0x232   :  { %v313_v31 = vsel %vm223_vm3, %v1495_v12, 0.0  ;;  %v1500_v19 = vpop.eup %1031 }
 0x233   :  { %314 = vadd.xlane.f32.xlu0 %v313_v31  ;;  %1033 = vpow2.f32 %v587_v14  ;;  %v407_v23 = vsel %vm223_vm3, %v1500_v19, 0.0  ;;  %v863_v47 = vmul.f32 1.442695, %v861_v41 }
 0x236   :  { %v673_v15 = vpop.xlane.xlu2 %672 }
 0x237   :  { %v677_v30 = vsub.f32 %v1422_v60, %v673_v15 }
 0x239   :  { %v229_v22 = vpop.xlane.xlu1 %228  ;;  %v1506_v0 = vpop.eup %1033  ;;  %v679_v34 = vmul.f32 1.442695, %v677_v30 }
 0x23a   :  { %v231_v10 = vsub.f32 %v1432_v63, %v229_v22  ;;  %v591_v32 = vsel %vm223_vm3, %v1506_v0, 0.0 }
 0x23b   :  { %408 = vadd.xlane.f32.xlu0 %v407_v23 }
 0x23c   :  { %v234_v24 = vmul.f32 1.442695, %v231_v10 }
 0x23e   :  { %1035 = vpow2.f32 %v234_v24  ;;  %v765_v26 = vpop.xlane.xlu2 %764 }
 0x23f   :  { %v769_v27 = vsub.f32 %v1437_v11, %v765_v26  ;;  %1037 = vpow2.f32 %v495_v42 }
 0x241   :  { %v771_v33 = vmul.f32 1.442695, %v769_v27 }
 0x243   :  { %1039 = vpow2.f32 %v771_v33  ;;  %592 = vadd.xlane.f32.xlu0 %v591_v32 }
 0x244   :  { %v1512_v63 = vpop.eup %1035  ;;  %1041 = vpow2.f32 %v679_v34 }
 0x245   :  { %v239_v35 = vsel %vm223_vm3, %v1512_v63, 0.0  ;;  %v1516_v39 = vpop.eup %1037 }
 0x246   :  { %240 = vadd.xlane.f32.xlu2 %v239_v35  ;;  %v306_v38 = vpop.xlane.xlu2 %305  ;;  %v499_v17 = vsel %vm223_vm3, %v1516_v39, 0.0 }
 0x247   :  { %v308_v11 = vsub.f32 %v1444_v20, %v306_v38 }
 0x249   :  { %v1519_v60 = vpop.eup %1039  ;;  %v311_v43 = vmul.f32 1.442695, %v308_v11 }
 0x24a   :  { %v775_v45 = vsel %vm223_vm3, %v1519_v60, 0.0  ;;  %v1526_v48 = vpop.eup %1041 }
 0x24b   :  { %1043 = vpow2.f32 %v311_v43  ;;  %776 = vadd.xlane.f32.xlu1 %v775_v45  ;;  %500 = vadd.xlane.f32.xlu0 %v499_v17  ;;  %v683_v53 = vsel %vm223_vm3, %v1526_v48, 0.0 }
 0x24c   :  { %1045 = vpow2.f32 %v863_v47 }
 0x24e   :  { %v400_v13 = vpop.xlane.xlu2 %399 }
 0x24f   :  { %v402_v20 = vsub.f32 %v1449_v25, %v400_v13 }
 0x251   :  { %v1529_v50 = vpop.eup %1043  ;;  %v405_v49 = vmul.f32 1.442695, %v402_v20  ;;  %v1007_v51 = vpop.permute.xlu1 %1006 }
 0x252   :  { %v1008_v28 = vunpack.i.l.bf16 %v1007_v51  ;;  %v316_v54 = vsel %vm223_vm3, %v1529_v50, 0.0  ;;  %v1009_v59 = vunpack.i.h.bf16 %v1007_v51  ;;  %v1535_v61 = vpop.eup %1045 }
 0x253   :  { %1047 = vpow2.f32 %v405_v49  ;;  %684 = vadd.xlane.f32.xlu0 %v683_v53  ;;  %317 = vadd.xlane.f32.xlu2 %v316_v54  ;;  %v867_v36 = vsel %vm223_vm3, %v1535_v61, 0.0 }
 0x254   :  { %630 = vmatpush.msra.mxu2 %v1008_v28 }
 0x256   :  { %631 = vmatpush.msra.mxu2 %v1009_v59  ;;  %v768_v6 = vpop.xlane.xlu2 %767 }
 0x257   :  { %v770_v8 = vsub.f32 %v1454_v29, %v768_v6 }
 0x259   :  { %v1537_v25 = vpop.eup %1047  ;;  %v773_v31 = vmul.f32 1.442695, %v770_v8 }
 0x25a   :  { %v410_v62 = vsel %vm223_vm3, %v1537_v25, 0.0 }
 0x25b   :  { %411 = vadd.xlane.f32.xlu0 %v410_v62  ;;  %868 = vadd.xlane.f32.xlu2 %v867_v36 }
 0x264   :  { %1016 = vrot.lane.b32.xlu1 %v1346_v44, %s1185_s12 }
 0x26f   :  { %1011 = vrot.lane.b32.xlu0 %v1346_v44, %s1186_s13 }
 0x27c   :  { %v492_v1 = vpop.xlane.xlu1 %491 }
 0x27d   :  { %v494_v2 = vsub.f32 %v1465_v40, %v492_v1 }
 0x27f   :  { %v497_v4 = vmul.f32 1.442695, %v494_v2 }
 0x281   :  { %1049 = vpow2.f32 %v497_v4 }
 0x284   :  { %v584_v7 = vpop.xlane.xlu1 %583 }
 0x285   :  { %v586_v3 = vsub.f32 %v1472_v46, %v584_v7 }
 0x287   :  { %v1549_v16 = vpop.eup %1049  ;;  %v589_v9 = vmul.f32 1.442695, %v586_v3 }
 0x288   :  { %v502_v18 = vsel %vm223_vm3, %v1549_v16, 0.0 }
 0x289   :  { %1051 = vpow2.f32 %v589_v9  ;;  %503 = vadd.xlane.f32.xlu2 %v502_v18 }
 0x28a   :  { %1053 = vpow2.f32 %v773_v31 }
 0x28c   :  { %v676_v14 = vpop.xlane.xlu1 %675 }
 0x28d   :  { %v678_v40 = vsub.f32 %v1479_v52, %v676_v14 }
 0x28f   :  { %v1555_v15 = vpop.eup %1051  ;;  %v681_v21 = vmul.f32 1.442695, %v678_v40 }
 0x290   :  { %v594_v46 = vsel %vm223_vm3, %v1555_v15, 0.0  ;;  %v1559_v22 = vpop.eup %1053 }
 0x291   :  { %1055 = vpow2.f32 %v681_v21  ;;  %595 = vadd.xlane.f32.xlu2 %v594_v46  ;;  %v778_v52 = vsel %vm223_vm3, %v1559_v22, 0.0 }
 0x294   :  { %v860_v29 = vpop.xlane.xlu1 %859 }
 0x295   :  { %v862_v10 = vsub.f32 %v1484_v55, %v860_v29  ;;  %v1572_v55 = vld [vmem:[#allocation4] ss:$0 sm:$0xff] }
 0x296   :  { %331 = vrot.lane.b32.xlu1 %v1572_v55, %s1175_s0 }
 0x297   :  { %v1562_v23 = vpop.eup %1055  ;;  %v865_v24 = vmul.f32 1.442695, %v862_v10 }
 0x298   :  { %v686_v42 = vsel %vm223_vm3, %v1562_v23, 0.0 }
 0x299   :  { %1057 = vpow2.f32 %v865_v24  ;;  %779 = vadd.xlane.f32.xlu2 %v778_v52  ;;  %687 = vadd.xlane.f32.xlu0 %v686_v42 }
 0x29d   :  { %v238_v26 = vpop.xlane.xlu2 %237 }
 0x29e   :  { %1059 = vrcp.f32 %v238_v26  ;;  %515 = vrot.lane.b32.xlu1 %v1572_v55, %s1177_s3 }
 0x29f   :  { %v1568_v27 = vpop.eup %1057 }
 0x2a0   :  { %v870_v30 = vsel %vm223_vm3, %v1568_v27, 0.0 }
 0x2a1   :  { %871 = vadd.xlane.f32.xlu0 %v870_v30 }
 0x2a4   :  { %v1060_v33 = vpop.eup %1059 }
 0x2a5   :  { %v244_v34 = vmul.f32 %v1060_v33, %v1490_v5 }
 0x2a6   :  { %v315_v32 = vpop.xlane.xlu0 %314  ;;  %699 = vrot.lane.b32.xlu1 %v1572_v55, %s1186_s13 }
 0x2a7   :  { %934 = vmatmul.msk.f32.vlgmr.msrb.gmra.mxu3 %vm223_vm3, %v244_v34 }
 0x2a8   :  { %952 = vmatpush.msrb.mxu3 %v988_v57 }
 0x2aa   :  { %953 = vmatpush.msrb.mxu3 %v989_v58 }
 0x2ae   :  { %v409_v35 = vpop.xlane.xlu0 %408 }
 0x2af   :  { %1061 = vrcp.f32 %v409_v35 }
 0x2b1   :  { %1021 = vrot.lane.b32.xlu2 %v1346_v44, %s1187_s5 }
 0x2b5   :  { %v1062_v37 = vpop.eup %1061  ;;  %423 = vrot.lane.b32.xlu0 %v1572_v55, %s1176_s1 }
 0x2b6   :  { %v593_v57 = vpop.xlane.xlu0 %592  ;;  %v415_v56 = vmul.f32 %v1062_v37, %v1500_v19 }
 0x2b8   :  { %938 = vmatmul.msk.f32.vlgmr.msrb.gmra.mxu0 %vm223_vm3, %v415_v56 }
 0x2b9   :  { %v241_v58 = vpop.xlane.xlu2 %240  ;;  %607 = vrot.lane.b32.xlu2 %v1572_v55, %s1184_s11 }
 0x2ba   :  { %1063 = vrcp.f32 %v241_v58 }
 0x2bd   :  { %883 = vrot.lane.b32.xlu0 %v1572_v55, %s1187_s5 }
 0x2be   :  { %v501_v44 = vpop.xlane.xlu0 %500 }
 0x2bf   :  { %1065 = vrcp.f32 %v501_v44 }
 0x2c0   :  { %v1064_v5 = vpop.eup %1063  ;;  %1067 = vrcp.f32 %v315_v32 }
 0x2c1   :  { %v245_v38 = vmul.f32 %v1064_v5, %v1512_v63  ;;  %791 = vrot.lane.b32.xlu2 %v1572_v55, %s1185_s12  ;;  %v777_v63 = vpop.xlane.xlu1 %776 }
 0x2c3   :  { %935 = vmatmul.msk.f32.gmra.mxu3 %vm223_vm3, %v245_v38 }
 0x2c5   :  { %v1066_v19 = vpop.eup %1065 }
 0x2c6   :  { %v1068_v11 = vpop.eup %1067  ;;  %v685_v41 = vpop.xlane.xlu0 %684  ;;  %v507_v45 = vmul.f32 %v1066_v19, %v1516_v39 }
 0x2c7   :  { %v318_v43 = vpop.xlane.xlu2 %317  ;;  %v321_v17 = vmul.f32 %v1068_v11, %v1495_v12 }
 0x2c8   :  { %1069 = vrcp.f32 %v318_v43  ;;  %940 = vmatmul.msk.f32.vlgmr.msrb.gmra.mxu1 %vm223_vm3, %v507_v45 }
 0x2cb   :  { %936 = vmatmul.msk.f32.vlgmr.msra.gmra.mxu3 %vm223_vm3, %v321_v17 }
 0x2ce   :  { %v1070_v47 = vpop.eup %1069  ;;  %v412_v13 = vpop.xlane.xlu0 %411 }
 0x2cf   :  { %1071 = vrcp.f32 %v412_v13  ;;  %v322_v20 = vmul.f32 %v1070_v47, %v1529_v50 }
 0x2d0   :  { %1073 = vrcp.f32 %v777_v63 }
 0x2d1   :  { %1075 = vrcp.f32 %v593_v57 }
 0x2d3   :  { %937 = vmatmul.msk.f32.gmra.mxu3 %vm223_vm3, %v322_v20 }
 0x2d5   :  { %v1072_v49 = vpop.eup %1071 }
 0x2d6   :  { %v1017_v51 = vpop.permute.xlu1 %1016  ;;  %v416_v39 = vmul.f32 %v1072_v49, %v1537_v25  ;;  %v1074_v28 = vpop.eup %1073 }
 0x2d7   :  { %v1018_v53 = vunpack.i.l.bf16 %v1017_v51  ;;  %v1019_v12 = vunpack.i.h.bf16 %v1017_v51  ;;  %v783_v54 = vmul.f32 %v1074_v28, %v1519_v60  ;;  %v1076_v59 = vpop.eup %1075  ;;  %v869_v25 = vpop.xlane.xlu2 %868 }
 0x2d8   :  { %939 = vmatmul.msk.f32.vlgmr.msrb.gmra.mxu2 %vm223_vm3, %v416_v39  ;;  %v599_v50 = vmul.f32 %v1076_v59, %v1506_v0 }
 0x2d9   :  { %814 = vmatpush.msra.mxu0 %v1018_v53 }
 0x2db   :  { %815 = vmatpush.msra.mxu0 %v1019_v12 }
 0x2dc   :  { %946 = vmatmul.msk.f32.vlgmr.msra.gmra.mxu0 %vm223_vm3, %v783_v54 }
 0x2e0   :  { %942 = vmatmul.msk.f32.vlgmr.msra.gmra.mxu2 %vm223_vm3, %v599_v50 }
 0x2e1   :  { %v1012_v62 = vpop.permute.xlu0 %1011 }
 0x2e2   :  { %v1013_v36 = vunpack.i.l.bf16 %v1012_v62  ;;  %v1014_v1 = vunpack.i.h.bf16 %v1012_v62 }
 0x2e4   :  { %722 = vmatpush.msra.mxu3 %v1013_v36 }
 0x2e6   :  { %723 = vmatpush.msra.mxu3 %v1014_v1 }
 0x2fc   :  { %v504_v2 = vpop.xlane.xlu2 %503 }
 0x2fd   :  { %1077 = vrcp.f32 %v504_v2 }
 0x2fe   :  { %1079 = vrcp.f32 %v685_v41 }
 0x303   :  { %v1078_v4 = vpop.eup %1077 }
 0x304   :  { %v508_v60 = vmul.f32 %v1078_v4, %v1549_v16  ;;  %v596_v6 = vpop.xlane.xlu2 %595  ;;  %v1080_v7 = vpop.eup %1079 }
 0x305   :  { %1081 = vrcp.f32 %v596_v6  ;;  %v691_v3 = vmul.f32 %v1080_v7, %v1526_v48 }
 0x306   :  { %941 = vmatmul.msk.f32.vlgmr.msrb.gmra.mxu3 %vm223_vm3, %v508_v60 }
 0x308   :  { %v332_v32 = vpop.permute.xlu1 %331 }
 0x30b   :  { %v1082_v0 = vpop.eup %1081 }
 0x30c   :  { %v780_v8 = vpop.xlane.xlu2 %779  ;;  %v688_v9 = vpop.xlane.xlu0 %687  ;;  %v600_v18 = vmul.f32 %v1082_v0, %v1555_v15 }
 0x30d   :  { %1083 = vrcp.f32 %v780_v8 }
 0x30e   :  { %1085 = vrcp.f32 %v688_v9  ;;  %943 = vmatmul.msk.f32.gmra.mxu2 %vm223_vm3, %v600_v18  ;;  %944 = vmatmul.msk.f32.vlgmr.msra.gmra.mxu3 %vm223_vm3, %v691_v3 }
 0x30f   :  { %1087 = vrcp.f32 %v869_v25 }
 0x310   :  { %v516_v34 = vpop.permute.xlu1 %515 }
 0x313   :  { %v1084_v16 = vpop.eup %1083 }
 0x314   :  { %v1086_v31 = vpop.eup %1085  ;;  %v1022_v14 = vpop.permute.xlu2 %1021  ;;  %v784_v21 = vmul.f32 %v1084_v16, %v1559_v22 }
 0x315   :  { %v872_v40 = vpop.xlane.xlu0 %871  ;;  %v1088_v46 = vpop.eup %1087  ;;  %v1023_v29 = vunpack.i.l.bf16 %v1022_v14  ;;  %v692_v48 = vmul.f32 %v1086_v31, %v1562_v23  ;;  %v1024_v15 = vunpack.i.h.bf16 %v1022_v14 }
 0x316   :  { %947 = vmatmul.msk.f32.gmra.mxu0 %vm223_vm3, %v784_v21  ;;  %1089 = vrcp.f32 %v872_v40  ;;  %v875_v10 = vmul.f32 %v1088_v46, %v1535_v61 }
 0x317   :  { %945 = vmatmul.msk.f32.gmra.mxu3 %vm223_vm3, %v692_v48  ;;  %906 = vmatpush.msra.mxu1 %v1023_v29 }
 0x318   :  { %v700_v54 = vpop.permute.xlu1 %699 }
 0x319   :  { %907 = vmatpush.msra.mxu1 %v1024_v15 }
 0x31a   :  { %948 = vmatmul.msk.f32.vlgmr.msra.gmra.mxu1 %vm223_vm3, %v875_v10 }
 0x31c   :  { %v1090_v24 = vpop.eup %1089  ;;  %v608_v44 = vpop.permute.xlu2 %607 }
 0x31d   :  { %v876_v52 = vmul.f32 %v1090_v24, %v1568_v27 }
 0x322   :  { %949 = vmatmul.msk.f32.gmra.mxu1 %vm223_vm3, %v876_v52 }
 0x324   :  { %v792_v38 = vpop.permute.xlu2 %791 }
 0x327   :  { %v424_v26 = vpop.permute.xlu0 %423 }
 0x32a   :  { %v272_v22 = vpop.f32.mrf.mxu3 }
 0x32b   :  { %v273_v23 = vadd.f32 %v1572_v55, %v272_v22 }
 0x32d   :  { %v278_v42 = vmax.f32 %v273_v23, 0.0 }
 0x32f   :  { %280 = vst.msk [vmem:[%s1699_s7] sm:$0xff] %vm223_vm3, %v278_v42  ;;  %v884_v8 = vpop.permute.xlu0 %883 }
 0x335   :  { %v449_v30 = vpop.f32.mrf.mxu0 }
 0x336   :  { %v450_v61 = vadd.f32 %v449_v30, %v424_v26 }
 0x338   :  { %v455_v33 = vmax.f32 %v450_v61, 0.0 }
 0x33a   :  { %459 = vrot.lane.b32.xlu0 %v455_v33, %s1185_s12 }
 0x345   :  { %v541_v27 = vpop.f32.mrf.mxu1 }
 0x346   :  { %v275_v35 = vpop.f32.mrf.mxu3  ;;  %v542_v37 = vadd.f32 %v541_v27, %v516_v34 }
 0x347   :  { %v276_v57 = vadd.f32 %v1572_v55, %v275_v35 }
 0x348   :  { %v547_v56 = vmax.f32 %v542_v37, 0.0 }
 0x349   :  { %v279_v58 = vmax.f32 %v276_v57, 0.0 }
 0x34a   :  { %551 = vrot.lane.b32.xlu2 %v547_v56, %s1186_s13 }
 0x34b   :  { %281 = vst.msk [vmem:[%s1699_s7 + $0x8] sm:$0xff] %vm223_vm3, %v279_v58  ;;  %vm373_vm3 = vcmask 261248  }
 0x34e   :  { %v357_v5 = vpop.f32.mrf.mxu3 }
 0x34f   :  { %v358_v63 = vadd.f32 %v357_v5, %v332_v32 }
 0x351   :  { %v363_v20 = vmax.f32 %v358_v63, 0.0 }
 0x356   :  { %v360_v17 = vpop.f32.mrf.mxu3 }
 0x357   :  { %v361_v55 = vadd.f32 %v360_v17, %v332_v32 }
 0x359   :  { %v817_v19 = vpop.f32.mrf.mxu0  ;;  %v364_v13 = vmax.f32 %v361_v55, 0.0 }
 0x35a   :  { %v818_v11 = vadd.f32 %v817_v19, %v792_v38 }
 0x35b   :  { %v452_v41 = vpop.f32.mrf.mxu2 }
 0x35c   :  { %v823_v43 = vmax.f32 %v818_v11, 0.0  ;;  %v453_v45 = vadd.f32 %v452_v41, %v424_v26 }
 0x35e   :  { %v456_v47 = vmax.f32 %v453_v45, 0.0  ;;  %827 = vrot.lane.b32.xlu2 %v823_v43, %s1176_s1 }
 0x360   :  { %461 = vrot.lane.b32.xlu1 %v456_v47, %s1185_s12 }
 0x363   :  { %v633_v49 = vpop.f32.mrf.mxu2 }
 0x364   :  { %v634_v51 = vadd.f32 %v633_v49, %v608_v44 }
 0x366   :  { %369 = vrot.lane.b32.xlu2 %v364_v13, %s1187_s5  ;;  %v639_v39 = vmax.f32 %v634_v51, 0.0 }
 0x368   :  { %367 = vrot.lane.b32.xlu1 %v363_v20, %s1187_s5 }
 0x370   :  { %643 = vrot.lane.b32.xlu1 %v639_v39, %s1184_s11 }
 0x389   :  { %v544_v28 = vpop.f32.mrf.mxu3 }
 0x38a   :  { %v545_v53 = vadd.f32 %v544_v28, %v516_v34 }
 0x38c   :  { %v548_v12 = vmax.f32 %v545_v53, 0.0 }
 0x38e   :  { %553 = vrot.lane.b32.xlu0 %v548_v12, %s1186_s13 }
 0x391   :  { %v725_v59 = vpop.f32.mrf.mxu3  ;;  %v636_v50 = vpop.f32.mrf.mxu2 }
 0x392   :  { %v726_v62 = vadd.f32 %v725_v59, %v700_v54  ;;  %v637_v36 = vadd.f32 %v636_v50, %v608_v44 }
 0x393   :  { %v820_v2 = vpop.f32.mrf.mxu0 }
 0x394   :  { %v731_v1 = vmax.f32 %v726_v62, 0.0  ;;  %v640_v25 = vmax.f32 %v637_v36, 0.0  ;;  %v821_v60 = vadd.f32 %v820_v2, %v792_v38 }
 0x396   :  { %735 = vrot.lane.b32.xlu0 %v731_v1, %s1177_s3  ;;  %645 = vrot.lane.b32.xlu2 %v640_v25, %s1184_s11  ;;  %v824_v0 = vmax.f32 %v821_v60, 0.0 }
 0x397   :  { %v909_v4 = vpop.f32.mrf.mxu1 }
 0x398   :  { %v910_v16 = vadd.f32 %v909_v4, %v884_v8 }
 0x39a   :  { %v728_v6 = vpop.f32.mrf.mxu3  ;;  %v915_v14 = vmax.f32 %v910_v16, 0.0 }
 0x39b   :  { %v729_v7 = vadd.f32 %v728_v6, %v700_v54 }
 0x39d   :  { %v732_v3 = vmax.f32 %v729_v7, 0.0 }
 0x39e   :  { %829 = vrot.lane.b32.xlu0 %v824_v0, %s1176_s1 }
 0x39f   :  { %v912_v9 = vpop.f32.mrf.mxu1  ;;  %737 = vrot.lane.b32.xlu1 %v732_v3, %s1177_s3 }
 0x3a0   :  { %v913_v18 = vadd.f32 %v912_v9, %v884_v8 }
 0x3a2   :  { %v916_v31 = vmax.f32 %v913_v18, 0.0 }
 0x3a4   :  { %921 = vrot.lane.b32.xlu2 %v916_v31, %s1175_s0  ;;  %v552_v40 = vpop.permute.xlu2 %551 }
 0x3a7   :  { %919 = vrot.lane.b32.xlu1 %v915_v14, %s1175_s0 }
 0x3ac   :  { %v460_v15 = vpop.permute.xlu0 %459 }
 0x3b8   :  { %v828_v21 = vpop.permute.xlu2 %827 }
 0x3c0   :  { %v370_v46 = vpop.permute.xlu2 %369 }
 0x3c1   :  { %375 = vst.msk [vmem:[%s1699_s7 + $0x8] sm:$0xff] %vm373_vm3, %v370_v46 }
 0x3d2   :  { %v462_v29 = vpop.permute.xlu1 %461 }
 0x3d3   :  { %467 = vst.msk [vmem:[%s1699_s7 + $0x8] sm:$0xff] %vm465_vm4, %v462_v29 }
 0x3da   :  { %v368_v48 = vpop.permute.xlu1 %367 }
 0x3db   :  { %374 = vst.msk [vmem:[%s1699_s7] sm:$0xff] %vm373_vm3, %v368_v48 }
 0x3dc   :  { %466 = vst.msk [vmem:[%s1699_s7] sm:$0xff] %vm465_vm4, %v460_v15 }
 0x3dd   :  { %558 = vst.msk [vmem:[%s1699_s7] sm:$0xff] %vm557_vm5, %v552_v40 }
 0x3e2   :  { %v644_v10 = vpop.permute.xlu1 %643 }
 0x3e3   :  { %650 = vst.msk [vmem:[%s1699_s7] sm:$0xff] %vm649_vm6, %v644_v10 }
 0x3f0   :  { %v646_v52 = vpop.permute.xlu2 %645 }
 0x3fe   :  { %v922_v26 = vpop.permute.xlu2 %921 }
 0x400   :  { %v554_v24 = vpop.permute.xlu0 %553 }
 0x401   :  { %559 = vst.msk [vmem:[%s1699_s7 + $0x8] sm:$0xff] %vm557_vm5, %v554_v24 }
 0x402   :  { %651 = vst.msk [vmem:[%s1699_s7 + $0x8] sm:$0xff] %vm649_vm6, %v646_v52 }
 0x408   :  { %v736_v22 = vpop.permute.xlu0 %735 }
 0x409   :  { %742 = vst.msk [vmem:[%s1699_s7] sm:$0xff] %vm741_vm7, %v736_v22 }
 0x40a   :  { %834 = vst.msk [vmem:[%s1699_s7] sm:$0xff] %vm833_vm8, %v828_v21 }
 0x410   :  { %v830_v42 = vpop.permute.xlu0 %829 }
 0x411   :  { %v738_v23 = vpop.permute.xlu1 %737 }
 0x412   :  { %743 = vst.msk [vmem:[%s1699_s7 + $0x8] sm:$0xff] %vm741_vm7, %v738_v23 }
 0x413   :  { %835 = vst.msk [vmem:[%s1699_s7 + $0x8] sm:$0xff] %vm833_vm8, %v830_v42 }
 0x414   :  { %927 = vst.msk [vmem:[%s1699_s7 + $0x8] sm:$0xff] %vm925_vm9, %v922_v26 }
 0x419   :  { %v920_v30 = vpop.permute.xlu1 %919 }
 0x41a   :  { %926 = vst.msk [vmem:[%s1699_s7] sm:$0xff] %vm925_vm9, %v920_v30 }
 0x41b   :  { %932 = vsyncpa [#allocation3], 1 }
 0x41c   :  { %933 = vsyncpa [#allocation5], 1 }

// kernel: _lambda_.8
= control target key start
LH: loop header
LB: loop body
LE: loop exit
PB: predicated region body
PF: predicated region fallthrough
CT: control target
= control target key end

     0   :  { %10 = vsyncpa [#allocation3], 0  ;;  %s447_s0 = inlined_call_operand.vmem [shape: f32[16,128], index: 0, kind: input, shape index: {}]   ;;  %s448_s1 = inlined_call_operand.hbm [shape: f32[128,128], index: 1, kind: input, shape index: {}]   ;;  %s449_s2 = inlined_call_operand.vmem [shape: f32[3,128], index: 2, kind: input, shape index: {}]   ;;  %s450_s3 = inlined_call_operand.hbm [shape: f32[128,128], index: 3, kind: input, shape index: {}]   ;;  %s451_s4 = inlined_call_operand.vmem [shape: f32[3,128], index: 4, kind: input, shape index: {}]   ;;  %s452_s5 = inlined_call_operand.vmem [shape: f32[16,128], index: 5, kind: output, shape index: {}]  }
   0x1   :  { %s18_s20 = sshll.u32 %s448_s1, 4  ;;  %s19_s20 = int_to_ptr.hbm [resolvable:$true] %s18_s20 }
   0x2   :  { %11 = vsyncpa [#allocation5], 0  ;;  %s356_s21 = smov [#allocation2]   ;;  %s33_s25 = sshll.u32 %s450_s3, 4  ;;  %s34_s25 = int_to_ptr.hbm [resolvable:$true] %s33_s25 }
   0x3   :  { %s20_s22 = sshll.u32 %s356_s21, 4  ;;  %s357_s26 = smov 128   ;;  %s21_s22 = int_to_ptr.vmem [resolvable:$true] %s20_s22 }
   0x4   :  { %s358_s27 = smov 8   ;;  %s359_s28 = smov [#allocation4]  }
   0x5   :  { %26 = dma.hbm_to_vmem [thread:$0]  %s19_s20, 2048, %s21_s22, [#allocation3], %s357_s26, %s357_s26, %s358_s27  }
   0x6   :  { %s35_s29 = sshll.u32 %s359_s28, 4  ;;  %s36_s29 = int_to_ptr.vmem [resolvable:$true] %s35_s29 }
   0x7   :  { %41 = dma.hbm_to_vmem [thread:$0]  %s34_s25, 2048, %s36_s29, [#allocation5], %s357_s26, %s357_s26, %s358_s27  }
   0x8   :  { %352 = dma.done.wait [#allocation3], 2048  }
   0x9   :  { %353 = vsyncadd [#allocation3], 4294965248 }
   0xa   :  { %354 = dma.done.wait [#allocation5], 2048  }
   0xb   :  { %355 = vsyncadd [#allocation5], 4294965248  ;;  %v69_v0 = vld [vmem:[#allocation2 + $0x78] sm:$0xff]  ;;  %v68_v1 = vld [vmem:[#allocation2 + $0x70] sm:$0xff]  ;;  %v360_v23 = vmov 128.0  }
   0xc   :  { %251 = vmatpush.msra.mxu2 %v69_v0  ;;  %72 = vmatpush.msra.mxu0 %v69_v0  ;;  %v67_v2 = vld [vmem:[#allocation2 + $0x68] sm:$0xff]  ;;  %v66_v3 = vld [vmem:[#allocation2 + $0x60] sm:$0xff]  ;;  %v65_v4 = vld [vmem:[#allocation2 + $0x58] sm:$0xff]  ;;  %294 = vrcp.f32 %v360_v23 }
   0xd   :  { %v64_v5 = vld [vmem:[#allocation2 + $0x50] sm:$0xff]  ;;  %v63_v6 = vld [vmem:[#allocation2 + $0x48] sm:$0xff]  ;;  %v62_v7 = vld [vmem:[#allocation2 + $0x40] sm:$0xff] }
   0xe   :  { %252 = vmatpush.msra.mxu2 %v68_v1  ;;  %73 = vmatpush.msra.mxu0 %v68_v1  ;;  %v61_v8 = vld [vmem:[#allocation2 + $0x38] sm:$0xff]  ;;  %v60_v9 = vld [vmem:[#allocation2 + $0x30] sm:$0xff]  ;;  %v59_v10 = vld [vmem:[#allocation2 + $0x28] sm:$0xff] }
   0xf   :  { %v58_v11 = vld [vmem:[#allocation2 + $0x20] sm:$0xff]  ;;  %v57_v12 = vld [vmem:[#allocation2 + $0x18] sm:$0xff]  ;;  %v56_v13 = vld [vmem:[#allocation2 + $0x10] sm:$0xff] }
  0x10   :  { %253 = vmatpush.msra.mxu2 %v67_v2  ;;  %74 = vmatpush.msra.mxu0 %v67_v2  ;;  %v55_v14 = vld [vmem:[#allocation2 + $0x8] sm:$0xff]  ;;  %v54_v15 = vld [vmem:[#allocation2] sm:$0xff]  ;;  %v167_v26 = vld [vmem:[#allocation4 + $0x78] sm:$0xff] }
  0x11   :  { %v53_v16 = vld [vmem:[%s447_s0 + $0x8] sm:$0xff]  ;;  %v52_v17 = vld [vmem:[%s447_s0] sm:$0xff]  ;;  %267 = vmatpush.msra.mxu3 %v167_v26  ;;  %170 = vmatpush.msra.mxu1 %v167_v26  ;;  %v166_v39 = vld [vmem:[#allocation4 + $0x70] sm:$0xff] }
  0x12   :  { %254 = vmatpush.msra.mxu2 %v66_v3  ;;  %75 = vmatpush.msra.mxu0 %v66_v3  ;;  %v288_v18 = vld [vmem:[%s449_s2] ss:$0 sm:$0xff]  ;;  %v295_v24 = vpop.eup %294  ;;  %v165_v40 = vld [vmem:[#allocation4 + $0x68] sm:$0xff]  ;;  %v163_v42 = vld [vmem:[#allocation4 + $0x58] sm:$0xff] }
  0x13   :  { %v102_v25 = vmul.f32 128.0, %v295_v24  ;;  %vm106_vm0 = vweird.f32 %v295_v24  ;;  %268 = vmatpush.msra.mxu3 %v166_v39  ;;  %171 = vmatpush.msra.mxu1 %v166_v39  ;;  %v164_v41 = vld [vmem:[#allocation4 + $0x60] sm:$0xff]  ;;  %v162_v43 = vld [vmem:[#allocation4 + $0x50] sm:$0xff]  ;;  %v161_v44 = vld [vmem:[#allocation4 + $0x48] sm:$0xff] }
  0x14   :  { %255 = vmatpush.msra.mxu2 %v65_v4  ;;  %76 = vmatpush.msra.mxu0 %v65_v4  ;;  %v160_v45 = vld [vmem:[#allocation4 + $0x40] sm:$0xff]  ;;  %v159_v46 = vld [vmem:[#allocation4 + $0x38] sm:$0xff]  ;;  %v158_v47 = vld [vmem:[#allocation4 + $0x30] sm:$0xff] }
  0x15   :  { %v103_v27 = vsub.f32 1.0, %v102_v25  ;;  %269 = vmatpush.msra.mxu3 %v165_v40  ;;  %172 = vmatpush.msra.mxu1 %v165_v40  ;;  %v157_v48 = vld [vmem:[#allocation4 + $0x28] sm:$0xff]  ;;  %v156_v49 = vld [vmem:[#allocation4 + $0x20] sm:$0xff]  ;;  %v155_v50 = vld [vmem:[#allocation4 + $0x18] sm:$0xff] }
  0x16   :  { %256 = vmatpush.msra.mxu2 %v64_v5  ;;  %77 = vmatpush.msra.mxu0 %v64_v5  ;;  %v154_v51 = vld [vmem:[#allocation4 + $0x10] sm:$0xff]  ;;  %v153_v52 = vld [vmem:[#allocation4 + $0x8] sm:$0xff]  ;;  %v152_v53 = vld [vmem:[#allocation4] sm:$0xff] }
  0x17   :  { %v104_v28 = vmul.f32 %v295_v24, %v103_v27  ;;  %270 = vmatpush.msra.mxu3 %v164_v41  ;;  %173 = vmatpush.msra.mxu1 %v164_v41  ;;  %v289_v4 = vld [vmem:[%s449_s2 + $0x1] ss:$0 sm:$0xff] }
  0x18   :  { %257 = vmatpush.msra.mxu2 %v63_v6  ;;  %78 = vmatpush.msra.mxu0 %v63_v6 }
  0x19   :  { %v105_v29 = vadd.f32 %v295_v24, %v104_v28  ;;  %271 = vmatpush.msra.mxu3 %v163_v42  ;;  %174 = vmatpush.msra.mxu1 %v163_v42 }
  0x1a   :  { %258 = vmatpush.msra.mxu2 %v62_v7  ;;  %79 = vmatpush.msra.mxu0 %v62_v7 }
  0x1b   :  { %v406_v30 = vsel %vm106_vm0, %v295_v24, %v105_v29  ;;  %272 = vmatpush.msra.mxu3 %v162_v43  ;;  %175 = vmatpush.msra.mxu1 %v162_v43 }
  0x1c   :  { %259 = vmatpush.msra.mxu2 %v61_v8  ;;  %80 = vmatpush.msra.mxu0 %v61_v8  ;;  %v290_v8 = vld [vmem:[%s449_s2 + $0x2] ss:$0 sm:$0xff] }
  0x1d   :  { %273 = vmatpush.msra.mxu3 %v161_v44  ;;  %176 = vmatpush.msra.mxu1 %v161_v44 }
  0x1e   :  { %260 = vmatpush.msra.mxu2 %v60_v9  ;;  %81 = vmatpush.msra.mxu0 %v60_v9 }
  0x1f   :  { %274 = vmatpush.msra.mxu3 %v160_v45  ;;  %177 = vmatpush.msra.mxu1 %v160_v45 }
  0x20   :  { %261 = vmatpush.msra.mxu2 %v59_v10  ;;  %82 = vmatpush.msra.mxu0 %v59_v10 }
  0x21   :  { %275 = vmatpush.msra.mxu3 %v159_v46  ;;  %178 = vmatpush.msra.mxu1 %v159_v46 }
  0x22   :  { %262 = vmatpush.msra.mxu2 %v58_v11  ;;  %83 = vmatpush.msra.mxu0 %v58_v11 }
  0x23   :  { %276 = vmatpush.msra.mxu3 %v158_v47  ;;  %179 = vmatpush.msra.mxu1 %v158_v47 }
  0x24   :  { %263 = vmatpush.msra.mxu2 %v57_v12  ;;  %84 = vmatpush.msra.mxu0 %v57_v12 }
  0x25   :  { %277 = vmatpush.msra.mxu3 %v157_v48  ;;  %180 = vmatpush.msra.mxu1 %v157_v48  ;;  %v292_v48 = vld [vmem:[%s451_s4 + $0x1] ss:$0 sm:$0xff] }
  0x26   :  { %264 = vmatpush.msra.mxu2 %v56_v13  ;;  %85 = vmatpush.msra.mxu0 %v56_v13 }
  0x27   :  { %278 = vmatpush.msra.mxu3 %v156_v49  ;;  %181 = vmatpush.msra.mxu1 %v156_v49 }
  0x28   :  { %265 = vmatpush.msra.mxu2 %v55_v14  ;;  %86 = vmatpush.msra.mxu0 %v55_v14 }
  0x29   :  { %279 = vmatpush.msra.mxu3 %v155_v50  ;;  %182 = vmatpush.msra.mxu1 %v155_v50 }
  0x2a   :  { %266 = vmatpush.msra.mxu2 %v54_v15  ;;  %87 = vmatpush.msra.mxu0 %v54_v15 }
  0x2b   :  { %91 = vmatmul.f32.vlgmr.msra.gmra.mxu2 %v53_v16  ;;  %88 = vmatmul.f32.vlgmr.msra.gmra.mxu0 %v52_v17 }
  0x2c   :  { %280 = vmatpush.msra.mxu3 %v154_v51  ;;  %183 = vmatpush.msra.mxu1 %v154_v51 }
  0x2e   :  { %281 = vmatpush.msra.mxu3 %v153_v52  ;;  %184 = vmatpush.msra.mxu1 %v153_v52 }
  0x30   :  { %282 = vmatpush.msra.mxu3 %v152_v53  ;;  %185 = vmatpush.msra.mxu1 %v152_v53 }
  0xa8   :  { %v89_v21 = vpop.f32.mrf.mxu0 }
  0xa9   :  { %v90_v22 = vadd.f32 %v288_v18, %v89_v21 }
  0xae   :  { %v92_v19 = vpop.f32.mrf.mxu2 }
  0xaf   :  { %v93_v20 = vadd.f32 %v288_v18, %v92_v19 }
  0xb1   :  { %99 = vadd.xlane.f32.xlu0 %v93_v20 }
  0xb9   :  { %97 = vadd.xlane.f32.xlu0 %v90_v22 }
 0x124   :  { %v100_v31 = vpop.xlane.xlu0 %99 }
 0x125   :  { %v109_v32 = vmul.f32 %v406_v30, %v100_v31 }
 0x127   :  { %v409_v33 = vsub.f32 %v93_v20, %v109_v32  ;;  %v291_v20 = vld [vmem:[%s451_s4] ss:$0 sm:$0xff] }
 0x129   :  { %v113_v34 = vmul.f32 %v409_v33, %v409_v33 }
 0x12b   :  { %116 = vadd.xlane.f32.xlu1 %v113_v34 }
 0x12c   :  { %v98_v35 = vpop.xlane.xlu0 %97 }
 0x12d   :  { %v108_v36 = vmul.f32 %v406_v30, %v98_v35 }
 0x12f   :  { %v414_v37 = vsub.f32 %v90_v22, %v108_v36 }
 0x131   :  { %v112_v38 = vmul.f32 %v414_v37, %v414_v37 }
 0x133   :  { %114 = vadd.xlane.f32.xlu1 %v112_v38 }
 0x19e   :  { %v117_v54 = vpop.xlane.xlu1 %116 }
 0x19f   :  { %v119_v55 = vmul.f32 %v117_v54, %v406_v30 }
 0x1a1   :  { %v121_v56 = vadd.f32 1e-05, %v119_v55 }
 0x1a3   :  { %296 = vrsqrt.f32 %v121_v56  ;;  %vm138_vm2 = vweird.f32 %v121_v56 }
 0x1a6   :  { %v115_v57 = vpop.xlane.xlu1 %114 }
 0x1a7   :  { %v118_v58 = vmul.f32 %v115_v57, %v406_v30 }
 0x1a9   :  { %v297_v59 = vpop.eup %296  ;;  %v120_v60 = vadd.f32 1e-05, %v118_v58 }
 0x1aa   :  { %v133_v61 = vmul.f32 %v297_v59, %v121_v56  ;;  %vm139_vm1 = vweird.f32 %v297_v59 }
 0x1ab   :  { %298 = vrsqrt.f32 %v120_v60  ;;  %vm140_vm3 = vmor %vm138_vm2, %vm139_vm1  ;;  %vm128_vm5 = vweird.f32 %v120_v60 }
 0x1ac   :  { %v134_v62 = vmul.f32 %v297_v59, %v133_v61 }
 0x1ae   :  { %v135_v63 = vmul.f32 0.5, %v134_v62 }
 0x1b0   :  { %v136_v0 = vsub.f32 1.5, %v135_v63 }
 0x1b1   :  { %v299_v1 = vpop.eup %298 }
 0x1b2   :  { %v137_v2 = vmul.f32 %v297_v59, %v136_v0  ;;  %v123_v3 = vmul.f32 %v299_v1, %v120_v60  ;;  %vm129_vm4 = vweird.f32 %v299_v1 }
 0x1b3   :  { %vm130_vm6 = vmor %vm128_vm5, %vm129_vm4 }
 0x1b4   :  { %v124_v5 = vmul.f32 %v299_v1, %v123_v3  ;;  %v141_v6 = vsel %vm140_vm3, %v297_v59, %v137_v2 }
 0x1b5   :  { %v143_v7 = vmul.f32 %v141_v6, %v409_v33 }
 0x1b6   :  { %v125_v9 = vmul.f32 0.5, %v124_v5 }
 0x1b7   :  { %v146_v10 = vmul.f32 %v289_v4, %v143_v7 }
 0x1b8   :  { %v126_v11 = vsub.f32 1.5, %v125_v9 }
 0x1b9   :  { %v149_v12 = vadd.f32 %v290_v8, %v146_v10 }
 0x1ba   :  { %v127_v13 = vmul.f32 %v299_v1, %v126_v11 }
 0x1bb   :  { %v151_v14 = vmax.f32 %v149_v12, 0.0 }
 0x1bc   :  { %v131_v15 = vsel %vm130_vm6, %v299_v1, %v127_v13 }
 0x1bd   :  { %189 = vmatmul.f32.vlgmr.msra.gmra.mxu3 %v151_v14  ;;  %v142_v16 = vmul.f32 %v131_v15, %v414_v37 }
 0x1bf   :  { %v145_v17 = vmul.f32 %v289_v4, %v142_v16 }
 0x1c1   :  { %v148_v18 = vadd.f32 %v290_v8, %v145_v17 }
 0x1c3   :  { %v150_v19 = vmax.f32 %v148_v18, 0.0 }
 0x1c5   :  { %186 = vmatmul.f32.vlgmr.msra.gmra.mxu1 %v150_v19 }
 0x240   :  { %v190_v23 = vpop.f32.mrf.mxu3 }
 0x241   :  { %v191_v24 = vadd.f32 %v291_v20, %v190_v23 }
 0x242   :  { %v187_v21 = vpop.f32.mrf.mxu1 }
 0x243   :  { %v188_v22 = vadd.f32 %v291_v20, %v187_v21 }
 0x245   :  { %195 = vadd.xlane.f32.xlu2 %v188_v22 }
 0x24d   :  { %197 = vadd.xlane.f32.xlu2 %v191_v24 }
 0x2b8   :  { %v196_v25 = vpop.xlane.xlu2 %195 }
 0x2b9   :  { %v199_v26 = vmul.f32 %v196_v25, %v406_v30 }
 0x2bb   :  { %v201_v27 = vsub.f32 %v188_v22, %v199_v26 }
 0x2bd   :  { %v203_v28 = vmul.f32 %v201_v27, %v201_v27 }
 0x2bf   :  { %205 = vadd.xlane.f32.xlu0 %v203_v28 }
 0x2c0   :  { %v198_v29 = vpop.xlane.xlu2 %197 }
 0x2c1   :  { %v200_v31 = vmul.f32 %v198_v29, %v406_v30 }
 0x2c3   :  { %v202_v32 = vsub.f32 %v191_v24, %v200_v31 }
 0x2c5   :  { %v204_v33 = vmul.f32 %v202_v32, %v202_v32 }
 0x2c7   :  { %207 = vadd.xlane.f32.xlu1 %v204_v33 }
 0x332   :  { %v206_v34 = vpop.xlane.xlu0 %205 }
 0x333   :  { %v209_v35 = vmul.f32 %v206_v34, %v406_v30 }
 0x335   :  { %v211_v36 = vadd.f32 1e-05, %v209_v35 }
 0x337   :  { %300 = vrsqrt.f32 %v211_v36  ;;  %vm219_vm8 = vweird.f32 %v211_v36 }
 0x33a   :  { %v208_v37 = vpop.xlane.xlu1 %207 }
 0x33b   :  { %v210_v38 = vmul.f32 %v208_v37, %v406_v30  ;;  %v293_v30 = vld [vmem:[%s451_s4 + $0x2] ss:$0 sm:$0xff] }
 0x33d   :  { %v301_v39 = vpop.eup %300  ;;  %v212_v40 = vadd.f32 1e-05, %v210_v38 }
 0x33e   :  { %v214_v41 = vmul.f32 %v301_v39, %v211_v36  ;;  %vm220_vm7 = vweird.f32 %v301_v39 }
 0x33f   :  { %302 = vrsqrt.f32 %v212_v40  ;;  %vm221_vm9 = vmor %vm219_vm8, %vm220_vm7  ;;  %vm229_vm11 = vweird.f32 %v212_v40 }
 0x340   :  { %v215_v42 = vmul.f32 %v301_v39, %v214_v41 }
 0x342   :  { %v216_v43 = vmul.f32 0.5, %v215_v42 }
 0x344   :  { %v217_v44 = vsub.f32 1.5, %v216_v43 }
 0x345   :  { %v303_v45 = vpop.eup %302 }
 0x346   :  { %v218_v46 = vmul.f32 %v301_v39, %v217_v44  ;;  %v224_v47 = vmul.f32 %v303_v45, %v212_v40  ;;  %vm230_vm10 = vweird.f32 %v303_v45 }
 0x347   :  { %vm231_vm12 = vmor %vm229_vm11, %vm230_vm10 }
 0x348   :  { %v222_v49 = vsel %vm221_vm9, %v301_v39, %v218_v46  ;;  %v225_v50 = vmul.f32 %v303_v45, %v224_v47 }
 0x349   :  { %v233_v51 = vmul.f32 %v222_v49, %v201_v27 }
 0x34a   :  { %v226_v52 = vmul.f32 0.5, %v225_v50 }
 0x34b   :  { %v236_v53 = vmul.f32 %v292_v48, %v233_v51 }
 0x34c   :  { %v227_v54 = vsub.f32 1.5, %v226_v52 }
 0x34d   :  { %v239_v55 = vadd.f32 %v293_v30, %v236_v53 }
 0x34e   :  { %v228_v56 = vmul.f32 %v303_v45, %v227_v54 }
 0x34f   :  { %v241_v57 = vmax.f32 %v239_v55, 0.0 }
 0x350   :  { %v232_v58 = vsel %vm231_vm12, %v303_v45, %v228_v56 }
 0x351   :  { %243 = vst [vmem:[%s452_s5] sm:$0xff] %v241_v57  ;;  %v234_v59 = vmul.f32 %v232_v58, %v202_v32 }
 0x353   :  { %v237_v60 = vmul.f32 %v292_v48, %v234_v59 }
 0x355   :  { %v240_v61 = vadd.f32 %v293_v30, %v237_v60 }
 0x357   :  { %v242_v62 = vmax.f32 %v240_v61, 0.0 }
 0x359   :  { %244 = vst [vmem:[%s452_s5 + $0x8] sm:$0xff] %v242_v62 }
 0x35a   :  { %249 = vsyncpa [#allocation3], 1 }
 0x35b   :  { %250 = vsyncpa [#allocation5], 1 }

// kernel: _lambda_.9
= control target key start
LH: loop header
LB: loop body
LE: loop exit
PB: predicated region body
PF: predicated region fallthrough
CT: control target
= control target key end

     0   :  { %12 = vsyncpa [#allocation3], 0  ;;  %s1649_s0 = inlined_call_operand.vmem [shape: f32[16,128], index: 0, kind: input, shape index: {}, may-alias: {0,1}]   ;;  %s1650_s1 = inlined_call_operand.vmem [shape: f32[16,128], index: 1, kind: input, shape index: {}, may-alias: {0,1}]   ;;  %s1651_s2 = inlined_call_operand.hbm [shape: f32[128,128], index: 2, kind: input, shape index: {}]   ;;  %s1652_s3 = inlined_call_operand.vmem [shape: f32[128,8], index: 3, kind: input, shape index: {}]   ;;  %s1653_s4 = inlined_call_operand.vmem [shape: f32[8,128], index: 4, kind: input, shape index: {}]   ;;  %s1654_s5 = inlined_call_operand.hbm [shape: f32[1,128], index: 5, kind: input, shape index: {}]   ;;  %s1655_s6 = inlined_call_operand.hbm [shape: f32[16,16], index: 6, kind: input, shape index: {}]   ;;  %s1656_s7 = inlined_call_operand.vmem [shape: f32[16,128], index: 7, kind: output, shape index: {}]  }
   0x1   :  { %13 = vsyncpa [#allocation5], 0  ;;  %s40_s26 = sshll.u32 %s1654_s5, 4  ;;  %s1169_s27 = smov [#allocation4]   ;;  %s41_s26 = int_to_ptr.hbm [resolvable:$true] %s40_s26 }
   0x2   :  { %s42_s28 = sshll.u32 %s1169_s27, 4  ;;  %s22_s8 = sshll.u32 %s1651_s2, 4  ;;  %s43_s28 = int_to_ptr.vmem [resolvable:$true] %s42_s28  ;;  %s23_s8 = int_to_ptr.hbm [resolvable:$true] %s22_s8 }
   0x3   :  { %45 = dma.hbm_to_vmem [thread:$0]  %s41_s26, 16, %s43_s28, [#allocation5]  }
   0x4   :  { %s1170_s9 = smov [#allocation2]   ;;  %s1171_s11 = smov 128  }
   0x5   :  { %s24_s10 = sshll.u32 %s1170_s9, 4  ;;  %s1172_s12 = smov 8   ;;  %s25_s10 = int_to_ptr.vmem [resolvable:$true] %s24_s10 }
   0x6   :  { %30 = dma.hbm_to_vmem [thread:$0]  %s23_s8, 2048, %s25_s10, [#allocation3], %s1171_s11, %s1171_s11, %s1172_s12  }
   0x7   :  { %s50_s5 = sshll.u32 %s1655_s6, 4  ;;  %s1173_s15 = smov [#allocation6]   ;;  %s51_s5 = int_to_ptr.hbm [resolvable:$true] %s50_s5 }
   0x8   :  { %s52_s16 = sshll.u32 %s1173_s15, 4  ;;  %s53_s16 = int_to_ptr.vmem [resolvable:$true] %s52_s16 }
   0x9   :  { %58 = dma.hbm_to_vmem [thread:$0]  %s51_s5, 256, %s53_s16, [#allocation5], %s1171_s11, %s1171_s11, %s1172_s12  }
   0xa   :  { %1165 = dma.done.wait [#allocation3], 2048  }
   0xb   :  { %1166 = vsyncadd [#allocation3], 4294965248 }
   0xc   :  { %1167 = dma.done.wait [#allocation5], 272  }
   0xd   :  { %1168 = vsyncadd [#allocation5], 4294967024  ;;  %v88_v0 = vld [vmem:[#allocation2 + $0x78] sm:$0xff]  ;;  %v87_v1 = vld [vmem:[#allocation2 + $0x70] sm:$0xff]  ;;  %v1174_v36 = vmov 4   ;;  %v1175_v37 = vmov 2  }
   0xe   :  { %114 = vmatpush.msra.mxu1 %v88_v0  ;;  %89 = vmatpush.msra.mxu0 %v88_v0  ;;  %v86_v2 = vld [vmem:[#allocation2 + $0x68] sm:$0xff]  ;;  %v85_v3 = vld [vmem:[#allocation2 + $0x60] sm:$0xff]  ;;  %v84_v4 = vld [vmem:[#allocation2 + $0x58] sm:$0xff]  ;;  %v1176_v38 = vmov 0   ;;  %s1179_s30 = smov 80   ;;  %v1180_v47 = vmov 1  }
   0xf   :  { %v83_v5 = vld [vmem:[#allocation2 + $0x50] sm:$0xff]  ;;  %v152_v6 = vld [vmem:[%s1652_s3 + $0x78] sm:$0xff]  ;;  %v82_v8 = vld [vmem:[#allocation2 + $0x48] sm:$0xff]  ;;  %995 = vset.pattern.permute.xlu2 %v1174_v36  ;;  %994 = vset.pattern.permute.xlu1 %v1175_v37  ;;  %v1181_v48 = vmov 3   ;;  %v1182_v49 = vmov 5   ;;  %v1183_v51 = vmov 6  }
  0x10   :  { %115 = vmatpush.msra.mxu1 %v87_v1  ;;  %90 = vmatpush.msra.mxu0 %v87_v1  ;;  %v151_v7 = vld [vmem:[%s1652_s3 + $0x70] sm:$0xff]  ;;  %v150_v9 = vld [vmem:[%s1652_s3 + $0x68] sm:$0xff]  ;;  %v81_v10 = vld [vmem:[#allocation2 + $0x40] sm:$0xff]  ;;  %v1184_v52 = vmov 7   ;;  %vm225_vm3 = vcmask 130048   ;;  %s1187_s8 = smov 32  }
  0x11   :  { %153 = vmatpush.msra.mxu2 %v152_v6  ;;  %v149_v11 = vld [vmem:[%s1652_s3 + $0x60] sm:$0xff]  ;;  %v80_v12 = vld [vmem:[#allocation2 + $0x38] sm:$0xff]  ;;  %v79_v14 = vld [vmem:[#allocation2 + $0x30] sm:$0xff]  ;;  %992 = vset.pattern.permute.xlu0 %v1176_v38  ;;  %s1188_s9 = smov 48   ;;  %s1189_s10 = smov 16  }
  0x12   :  { %116 = vmatpush.msra.mxu1 %v86_v2  ;;  %91 = vmatpush.msra.mxu0 %v86_v2  ;;  %v148_v13 = vld [vmem:[%s1652_s3 + $0x58] sm:$0xff]  ;;  %v147_v15 = vld [vmem:[%s1652_s3 + $0x50] sm:$0xff]  ;;  %v78_v16 = vld [vmem:[#allocation2 + $0x28] sm:$0xff] }
  0x13   :  { %154 = vmatpush.msra.mxu2 %v151_v7  ;;  %v146_v17 = vld [vmem:[%s1652_s3 + $0x48] sm:$0xff]  ;;  %v77_v18 = vld [vmem:[#allocation2 + $0x20] sm:$0xff]  ;;  %v76_v20 = vld [vmem:[#allocation2 + $0x18] sm:$0xff] }
  0x14   :  { %117 = vmatpush.msra.mxu1 %v85_v3  ;;  %92 = vmatpush.msra.mxu0 %v85_v3  ;;  %v145_v19 = vld [vmem:[%s1652_s3 + $0x40] sm:$0xff]  ;;  %v144_v21 = vld [vmem:[%s1652_s3 + $0x38] sm:$0xff]  ;;  %v75_v22 = vld [vmem:[#allocation2 + $0x10] sm:$0xff] }
  0x15   :  { %155 = vmatpush.msra.mxu2 %v150_v9  ;;  %v143_v23 = vld [vmem:[%s1652_s3 + $0x30] sm:$0xff]  ;;  %v74_v24 = vld [vmem:[#allocation2 + $0x8] sm:$0xff]  ;;  %v73_v26 = vld [vmem:[#allocation2] sm:$0xff]  ;;  %v1185_v9 = vmov -1e+30  }
  0x16   :  { %118 = vmatpush.msra.mxu1 %v84_v4  ;;  %93 = vmatpush.msra.mxu0 %v84_v4  ;;  %v142_v25 = vld [vmem:[%s1652_s3 + $0x28] sm:$0xff]  ;;  %v112_v27 = vld [vmem:[%s1649_s0] sm:$0xff]  ;;  %v140_v30 = vld [vmem:[%s1652_s3 + $0x18] sm:$0xff] }
  0x17   :  { %156 = vmatpush.msra.mxu2 %v149_v11  ;;  %v71_v28 = vld [vmem:[%s1650_s1] sm:$0xff]  ;;  %v139_v31 = vld [vmem:[%s1652_s3 + $0x10] sm:$0xff]  ;;  %v138_v32 = vld [vmem:[%s1652_s3 + $0x8] sm:$0xff] }
  0x18   :  { %119 = vmatpush.msra.mxu1 %v83_v5  ;;  %94 = vmatpush.msra.mxu0 %v83_v5  ;;  %v141_v29 = vld [vmem:[%s1652_s3 + $0x20] sm:$0xff]  ;;  %v113_v33 = vld [vmem:[%s1649_s0 + $0x8] sm:$0xff]  ;;  %s1177_s0 = smov 112  }
  0x19   :  { %157 = vmatpush.msra.mxu2 %v148_v13  ;;  %v72_v34 = vld [vmem:[%s1650_s1 + $0x8] sm:$0xff]  ;;  %v137_v35 = vld [vmem:[%s1652_s3] sm:$0xff]  ;;  %s1178_s1 = smov 96  }
  0x1a   :  { %120 = vmatpush.msra.mxu1 %v82_v8  ;;  %95 = vmatpush.msra.mxu0 %v82_v8  ;;  %v176_v45 = vld [vmem:[%s1653_s4] sm:$0xff]  ;;  %s1186_s4 = smov 64  }
  0x1b   :  { %158 = vmatpush.msra.mxu2 %v147_v15  ;;  %v197_v1 = vld [vmem:[#allocation6] sm:$0xff] }
  0x1c   :  { %121 = vmatpush.msra.mxu1 %v81_v10  ;;  %96 = vmatpush.msra.mxu0 %v81_v10  ;;  %vm199_vm0 = vcmp.gt.f32.partialorder %v197_v1, 0.0 }
  0x1d   :  { %159 = vmatpush.msra.mxu2 %v146_v17  ;;  %v1328_v10 = vsel %vm199_vm0, 0.0, %v1185_v9 }
  0x1e   :  { %122 = vmatpush.msra.mxu1 %v80_v12  ;;  %97 = vmatpush.msra.mxu0 %v80_v12 }
  0x1f   :  { %160 = vmatpush.msra.mxu2 %v145_v19 }
  0x20   :  { %123 = vmatpush.msra.mxu1 %v79_v14  ;;  %98 = vmatpush.msra.mxu0 %v79_v14 }
  0x21   :  { %161 = vmatpush.msra.mxu2 %v144_v21 }
  0x22   :  { %124 = vmatpush.msra.mxu1 %v78_v16  ;;  %99 = vmatpush.msra.mxu0 %v78_v16 }
  0x23   :  { %162 = vmatpush.msra.mxu2 %v143_v23 }
  0x24   :  { %125 = vmatpush.msra.mxu1 %v77_v18  ;;  %100 = vmatpush.msra.mxu0 %v77_v18 }
  0x25   :  { %163 = vmatpush.msra.mxu2 %v142_v25 }
  0x26   :  { %126 = vmatpush.msra.mxu1 %v76_v20  ;;  %101 = vmatpush.msra.mxu0 %v76_v20 }
  0x27   :  { %164 = vmatpush.msra.mxu2 %v141_v29 }
  0x28   :  { %127 = vmatpush.msra.mxu1 %v75_v22  ;;  %102 = vmatpush.msra.mxu0 %v75_v22 }
  0x29   :  { %165 = vmatpush.msra.mxu2 %v140_v30 }
  0x2a   :  { %128 = vmatpush.msra.mxu1 %v74_v24  ;;  %103 = vmatpush.msra.mxu0 %v74_v24 }
  0x2b   :  { %166 = vmatpush.msra.mxu2 %v139_v31 }
  0x2c   :  { %129 = vmatpush.msra.mxu1 %v73_v26  ;;  %104 = vmatpush.msra.mxu0 %v73_v26 }
  0x2d   :  { %130 = vmatmul.f32.vlgmr.msra.gmra.mxu1 %v112_v27  ;;  %105 = vmatmul.f32.vlgmr.msra.gmra.mxu0 %v71_v28 }
  0x2e   :  { %167 = vmatpush.msra.mxu2 %v138_v32 }
  0x30   :  { %168 = vmatpush.msra.mxu2 %v137_v35 }
  0x35   :  { %133 = vmatmul.f32.gmra.mxu1 %v113_v33  ;;  %108 = vmatmul.f32.gmra.mxu0 %v72_v34 }
  0xaa   :  { %v131_v39 = vpop.f32.mrf.mxu1  ;;  %v106_v40 = vpop.f32.mrf.mxu0 }
  0xab   :  { %169 = vmatmul.f32.vlgmr.msra.gmra.mxu2 %v131_v39 }
  0xb2   :  { %v134_v41 = vpop.f32.mrf.mxu1  ;;  %v109_v42 = vpop.f32.mrf.mxu0 }
  0xb3   :  { %172 = vmatmul.f32.gmra.mxu2 %v134_v41  ;;  %191 = vmatpush.xpose.msra.mxu3 %v109_v42  ;;  %v977_v43 = vpack.i.bf16 %v109_v42, %v106_v40  ;;  %v1300_v44 = vpack.i.bf16 %v106_v40, %v109_v42 }
  0xb5   :  { %978 = vrot.lane.b32.xlu2 %v977_v43, %s1177_s0  ;;  %983 = vrot.lane.b32.xlu1 %v1300_v44, %s1178_s1 }
  0xb7   :  { %192 = vmatpush.xpose.msra.mxu3 %v106_v40 }
  0xba   :  { %193 = vmatmul.f32.vlgmr.msra.gmra.mxu3 %v176_v45 }
  0xbb   :  { %271 = vmatpush.msrb.mxu3 %v109_v42 }
  0xbd   :  { %272 = vmatpush.msrb.mxu3 %v106_v40  ;;  %988 = vrot.lane.b32.xlu2 %v1300_v44, %s1179_s30 }
 0x10f   :  { %v979_v53 = vpop.permute.xlu2 %978 }
 0x110   :  { %v981_v54 = vunpack.i.h.bf16 %v979_v53  ;;  %v980_v55 = vunpack.i.l.bf16 %v979_v53  ;;  %v198_v53 = vld [vmem:[#allocation6 + $0x8] sm:$0xff] }
 0x111   :  { %vm200_vm9 = vcmp.gt.f32.partialorder %v198_v53, 0.0 }
 0x112   :  { %356 = vmatpush.msra.mxu3 %v981_v54 }
 0x114   :  { %357 = vmatpush.msra.mxu3 %v980_v55 }
 0x117   :  { %v1310_v56 = vpop.permute.xlu2 %988 }
 0x118   :  { %v990_v57 = vunpack.i.l.bf16 %v1310_v56  ;;  %v991_v58 = vunpack.i.h.bf16 %v1310_v56 }
 0x11a   :  { %540 = vmatpush.msrb.mxu1 %v990_v57 }
 0x11c   :  { %541 = vmatpush.msrb.mxu1 %v991_v58 }
 0x127   :  { %v984_v59 = vpop.permute.xlu1 %983 }
 0x128   :  { %v985_v60 = vunpack.i.l.bf16 %v984_v59  ;;  %v986_v61 = vunpack.i.h.bf16 %v984_v59 }
 0x12a   :  { %448 = vmatpush.msrb.mxu0 %v985_v60  ;;  %952 = vmatpush.msrb.mxu2 %v985_v60 }
 0x12c   :  { %449 = vmatpush.msrb.mxu0 %v986_v61  ;;  %953 = vmatpush.msrb.mxu2 %v986_v61 }
 0x12e   :  { %v170_v46 = vpop.f32.mrf.mxu2 }
 0x12f   :  { %206 = vperm.xlu0 %992, %v170_v46   ;;  %379 = vperm.xlu1 %994, %v170_v46  }
 0x130   :  { %563 = vperm.xlu2 %995, %v170_v46  }
 0x136   :  { %v173_v50 = vpop.f32.mrf.mxu2 }
 0x137   :  { %993 = vset.pattern.permute.xlu0 %v1180_v47  ;;  %996 = vset.pattern.permute.xlu1 %v1181_v48 }
 0x138   :  { %997 = vset.pattern.permute.xlu2 %v1182_v49  ;;  %285 = vperm.xlu0 %993, %v170_v46  }
 0x139   :  { %471 = vperm.xlu1 %996, %v170_v46   ;;  %655 = vperm.xlu2 %997, %v170_v46  }
 0x13d   :  { %v1319_v62 = vpop.f32.mrf.mxu3 }
 0x13e   :  { %v214_v63 = vperm.slane %v1319_v62, 0  ;;  %v386_v0 = vperm.slane %v1319_v62, 2  ;;  %v570_v13 = vperm.slane %v1319_v62, 4  ;;  %v292_v14 = vperm.slane %v1319_v62, 1 }
 0x13f   :  { %v478_v17 = vperm.slane %v1319_v62, 3  ;;  %v662_v28 = vperm.slane %v1319_v62, 5 }
 0x140   :  { %998 = vset.pattern.permute.xlu0 %v1183_v51 }
 0x141   :  { %999 = vset.pattern.permute.xlu1 %v1184_v52  ;;  %659 = vperm.xlu2 %997, %v173_v50  }
 0x142   :  { %747 = vperm.xlu0 %998, %v170_v46   ;;  %839 = vperm.xlu1 %999, %v170_v46   ;;  %v754_v46 = vperm.slane %v1319_v62, 6 }
 0x149   :  { %1005 = vset.pattern.permute.xlu2 %v1183_v51 }
 0x14a   :  { %1000 = vset.pattern.permute.xlu0 %v1176_v38  ;;  %1001 = vset.pattern.permute.xlu1 %v1180_v47 }
 0x14b   :  { %751 = vperm.xlu2 %1005, %v173_v50   ;;  %211 = vperm.xlu0 %1000, %v173_v50  }
 0x14c   :  { %289 = vperm.xlu1 %1001, %v173_v50  }
 0x153   :  { %1027 = vset.pattern.permute.xlu0 %v1184_v52 }
 0x154   :  { %1002 = vset.pattern.permute.xlu1 %v1175_v37 }
 0x155   :  { %383 = vperm.xlu1 %1002, %v173_v50  }
 0x15d   :  { %1003 = vset.pattern.permute.xlu1 %v1181_v48 }
 0x15e   :  { %475 = vperm.xlu1 %1003, %v173_v50  }
 0x166   :  { %1004 = vset.pattern.permute.xlu1 %v1174_v36  ;;  %v846_v36 = vperm.slane %v1319_v62, 7 }
 0x167   :  { %567 = vperm.xlu1 %1004, %v173_v50  }
 0x16f   :  { %1006 = vset.pattern.permute.xlu1 %v1184_v52 }
 0x170   :  { %843 = vperm.xlu1 %1006, %v173_v50  }
 0x18a   :  { %v564_v8 = vpop.permute.xlu2 %563 }
 0x18b   :  { %v571_v21 = vadd.f32 %v570_v13, %v564_v8 }
 0x18d   :  { %v575_v27 = vmul.f32 0.2, %v571_v21  ;;  %vm573_vm6 = vcmp.gt.f32.partialorder %v571_v21, 0.0 }
 0x18f   :  { %v577_v38 = vsel %vm573_vm6, %v571_v21, %v575_v27  ;;  %vm651_vm6 = vcmask 654848  }
 0x190   :  { %v1366_v42 = vadd.f32 %v577_v38, %v1328_v10 }
 0x192   :  { %v581_v48 = vsel %vm225_vm3, %v1366_v42, -inf }
 0x193   :  { %v656_v30 = vpop.permute.xlu2 %655 }
 0x194   :  { %v663_v35 = vadd.f32 %v662_v28, %v656_v30 }
 0x196   :  { %v667_v43 = vmul.f32 0.2, %v663_v35  ;;  %vm665_vm8 = vcmp.gt.f32.partialorder %v663_v35, 0.0 }
 0x198   :  { %v669_v51 = vsel %vm665_vm8, %v663_v35, %v667_v43  ;;  %vm835_vm8 = vcmask 917248  }
 0x199   :  { %v1379_v60 = vadd.f32 %v669_v51, %v1328_v10 }
 0x19b   :  { %v660_v8 = vpop.permute.xlu2 %659 }
 0x1a1   :  { %v207_v2 = vpop.permute.xlu0 %206  ;;  %v380_v3 = vpop.permute.xlu1 %379 }
 0x1a2   :  { %v215_v4 = vadd.f32 %v214_v63, %v207_v2  ;;  %v387_v5 = vadd.f32 %v386_v0, %v380_v3  ;;  %v673_v2 = vsel %vm225_vm3, %v1379_v60, -inf  ;;  %v1384_v3 = vsel %vm200_vm9, 0.0, %v1185_v9 }
 0x1a3   :  { %vm927_vm9 = vcmask 1048448  }
 0x1a4   :  { %vm217_vm1 = vcmp.gt.f32.partialorder %v215_v4, 0.0  ;;  %v219_v6 = vmul.f32 0.2, %v215_v4  ;;  %vm389_vm2 = vcmp.gt.f32.partialorder %v387_v5, 0.0  ;;  %v391_v7 = vmul.f32 0.2, %v387_v5 }
 0x1a6   :  { %v393_v11 = vsel %vm389_vm2, %v387_v5, %v391_v7  ;;  %v221_v12 = vsel %vm217_vm1, %v215_v4, %v219_v6 }
 0x1a7   :  { %v1333_v15 = vadd.f32 %v393_v11, %v1328_v10  ;;  %v1336_v16 = vadd.f32 %v221_v12, %v1328_v10 }
 0x1a9   :  { %v397_v18 = vsel %vm225_vm3, %v1333_v15, -inf  ;;  %v226_v19 = vsel %vm225_vm3, %v1336_v16, -inf }
 0x1aa   :  { %v286_v20 = vpop.permute.xlu0 %285  ;;  %398 = vmax.xlane.f32.xlu0 %v397_v18  ;;  %227 = vmax.xlane.f32.xlu1 %v226_v19 }
 0x1ab   :  { %v293_v22 = vadd.f32 %v292_v14, %v286_v20  ;;  %v472_v23 = vpop.permute.xlu1 %471 }
 0x1ac   :  { %v479_v24 = vadd.f32 %v478_v17, %v472_v23 }
 0x1ad   :  { %vm295_vm4 = vcmp.gt.f32.partialorder %v293_v22, 0.0  ;;  %v297_v25 = vmul.f32 0.2, %v293_v22 }
 0x1ae   :  { %vm481_vm5 = vcmp.gt.f32.partialorder %v479_v24, 0.0  ;;  %v483_v26 = vmul.f32 0.2, %v479_v24 }
 0x1af   :  { %v299_v29 = vsel %vm295_vm4, %v293_v22, %v297_v25  ;;  %v752_v22 = vpop.permute.xlu2 %751  ;;  %vm467_vm4 = vcmask 392448  }
 0x1b0   :  { %v1351_v31 = vadd.f32 %v299_v29, %v1328_v10  ;;  %v485_v32 = vsel %vm481_vm5, %v479_v24, %v483_v26  ;;  %v756_v23 = vadd.f32 %v754_v46, %v752_v22  ;;  %vm559_vm5 = vcmask 523648  }
 0x1b1   :  { %v1354_v33 = vadd.f32 %v485_v32, %v1328_v10 }
 0x1b2   :  { %v303_v34 = vsel %vm225_vm3, %v1351_v31, -inf  ;;  %v760_v26 = vmul.f32 0.2, %v756_v23  ;;  %vm758_vm14 = vcmp.gt.f32.partialorder %v756_v23, 0.0 }
 0x1b3   :  { %304 = vmax.xlane.f32.xlu2 %v303_v34  ;;  %v489_v37 = vsel %vm225_vm3, %v1354_v33, -inf }
 0x1b4   :  { %v748_v39 = vpop.permute.xlu0 %747  ;;  %v840_v40 = vpop.permute.xlu1 %839  ;;  %490 = vmax.xlane.f32.xlu1 %v489_v37  ;;  %v762_v27 = vsel %vm758_vm14, %v756_v23, %v760_v26 }
 0x1b5   :  { %v847_v41 = vadd.f32 %v846_v36, %v840_v40  ;;  %v755_v50 = vadd.f32 %v754_v46, %v748_v39  ;;  %v1411_v29 = vadd.f32 %v762_v27, %v1384_v3 }
 0x1b7   :  { %vm849_vm7 = vcmp.gt.f32.partialorder %v847_v41, 0.0  ;;  %v851_v45 = vmul.f32 0.2, %v847_v41  ;;  %v759_v61 = vmul.f32 0.2, %v755_v50  ;;  %vm757_vm10 = vcmp.gt.f32.partialorder %v755_v50, 0.0 }
 0x1b8   :  { %v768_v30 = vsel %vm225_vm3, %v1411_v29, -inf }
 0x1b9   :  { %v853_v47 = vsel %vm849_vm7, %v847_v41, %v851_v45  ;;  %v761_v6 = vsel %vm757_vm10, %v755_v50, %v759_v61  ;;  %v664_v45 = vadd.f32 %v662_v28, %v660_v8  ;;  %vm743_vm7 = vcmask 786048  }
 0x1ba   :  { %v1372_v49 = vadd.f32 %v853_v47, %v1328_v10  ;;  %v1394_v11 = vadd.f32 %v761_v6, %v1328_v10 }
 0x1bb   :  { %582 = vmax.xlane.f32.xlu2 %v581_v48  ;;  %v668_v47 = vmul.f32 0.2, %v664_v45  ;;  %vm666_vm1 = vcmp.gt.f32.partialorder %v664_v45, 0.0 }
 0x1bc   :  { %v857_v52 = vsel %vm225_vm3, %v1372_v49, -inf  ;;  %v765_v18 = vsel %vm225_vm3, %v1394_v11, -inf }
 0x1bd   :  { %v212_v54 = vpop.permute.xlu0 %211  ;;  %858 = vmax.xlane.f32.xlu0 %v857_v52  ;;  %v670_v51 = vsel %vm666_vm1, %v664_v45, %v668_v47 }
 0x1be   :  { %v216_v55 = vadd.f32 %v214_v63, %v212_v54  ;;  %v290_v59 = vpop.permute.xlu1 %289  ;;  %v1436_v52 = vadd.f32 %v670_v51, %v1384_v3 }
 0x1bf   :  { %v294_v5 = vadd.f32 %v292_v14, %v290_v59 }
 0x1c0   :  { %vm218_vm11 = vcmp.gt.f32.partialorder %v216_v55, 0.0  ;;  %v220_v1 = vmul.f32 0.2, %v216_v55  ;;  %v676_v53 = vsel %vm225_vm3, %v1436_v52, -inf }
 0x1c1   :  { %v298_v12 = vmul.f32 0.2, %v294_v5  ;;  %vm296_vm12 = vcmp.gt.f32.partialorder %v294_v5, 0.0 }
 0x1c2   :  { %v222_v4 = vsel %vm218_vm11, %v216_v55, %v220_v1 }
 0x1c3   :  { %674 = vmax.xlane.f32.xlu2 %v673_v2  ;;  %v1389_v63 = vadd.f32 %v222_v4, %v1384_v3  ;;  %v300_v19 = vsel %vm296_vm12, %v294_v5, %v298_v12 }
 0x1c4   :  { %v1401_v20 = vadd.f32 %v300_v19, %v1384_v3 }
 0x1c5   :  { %v229_v7 = vsel %vm225_vm3, %v1389_v63, -inf }
 0x1c6   :  { %230 = vmax.xlane.f32.xlu1 %v229_v7  ;;  %v306_v10 = vsel %vm225_vm3, %v1401_v20, -inf }
 0x1c7   :  { %v384_v9 = vpop.permute.xlu1 %383 }
 0x1c8   :  { %v388_v14 = vadd.f32 %v386_v0, %v384_v9 }
 0x1ca   :  { %v392_v21 = vmul.f32 0.2, %v388_v14  ;;  %vm390_vm13 = vcmp.gt.f32.partialorder %v388_v14, 0.0 }
 0x1cb   :  { %766 = vmax.xlane.f32.xlu2 %v765_v18 }
 0x1cc   :  { %v394_v24 = vsel %vm390_vm13, %v388_v14, %v392_v21 }
 0x1cd   :  { %v1406_v25 = vadd.f32 %v394_v24, %v1384_v3 }
 0x1cf   :  { %v400_v0 = vsel %vm225_vm3, %v1406_v25, -inf }
 0x1d0   :  { %v476_v32 = vpop.permute.xlu1 %475 }
 0x1d1   :  { %v480_v34 = vadd.f32 %v478_v17, %v476_v32 }
 0x1d3   :  { %307 = vmax.xlane.f32.xlu2 %v306_v10  ;;  %v484_v35 = vmul.f32 0.2, %v480_v34  ;;  %vm482_vm15 = vcmp.gt.f32.partialorder %v480_v34, 0.0 }
 0x1d5   :  { %v486_v39 = vsel %vm482_vm15, %v480_v34, %v484_v35 }
 0x1d6   :  { %v1422_v40 = vadd.f32 %v486_v39, %v1384_v3 }
 0x1d8   :  { %v492_v43 = vsel %vm225_vm3, %v1422_v40, -inf }
 0x1d9   :  { %v568_v37 = vpop.permute.xlu1 %567 }
 0x1da   :  { %v572_v38 = vadd.f32 %v570_v13, %v568_v37 }
 0x1db   :  { %401 = vmax.xlane.f32.xlu2 %v400_v0 }
 0x1dc   :  { %v576_v41 = vmul.f32 0.2, %v572_v38  ;;  %vm574_vm0 = vcmp.gt.f32.partialorder %v572_v38, 0.0 }
 0x1de   :  { %v578_v17 = vsel %vm574_vm0, %v572_v38, %v576_v41 }
 0x1df   :  { %1008 = vrot.lane.b32.xlu1 %v1300_v44, %s1186_s4  ;;  %v1429_v46 = vadd.f32 %v578_v17, %v1384_v3 }
 0x1e1   :  { %v584_v48 = vsel %vm225_vm3, %v1429_v46, -inf }
 0x1e2   :  { %v844_v13 = vpop.permute.xlu1 %843 }
 0x1e3   :  { %769 = vmax.xlane.f32.xlu2 %v768_v30  ;;  %v848_v50 = vadd.f32 %v846_v36, %v844_v13 }
 0x1e5   :  { %v852_v28 = vmul.f32 0.2, %v848_v50  ;;  %vm850_vm2 = vcmp.gt.f32.partialorder %v848_v50, 0.0 }
 0x1e7   :  { %v854_v54 = vsel %vm850_vm2, %v848_v50, %v852_v28 }
 0x1e8   :  { %v1441_v55 = vadd.f32 %v854_v54, %v1384_v3 }
 0x1ea   :  { %v860_v36 = vsel %vm225_vm3, %v1441_v55, -inf }
 0x209   :  { %493 = vmax.xlane.f32.xlu1 %v492_v43 }
 0x211   :  { %585 = vmax.xlane.f32.xlu1 %v584_v48 }
 0x219   :  { %677 = vmax.xlane.f32.xlu1 %v676_v53 }
 0x21d   :  { %v228_v59 = vpop.xlane.xlu1 %227  ;;  %v399_v1 = vpop.xlane.xlu0 %398 }
 0x21e   :  { %v232_v61 = vsub.f32 %v1336_v16, %v228_v59  ;;  %v403_v6 = vsub.f32 %v1333_v15, %v399_v1 }
 0x220   :  { %v234_v62 = vmul.f32 1.442695, %v232_v61  ;;  %v405_v16 = vmul.f32 1.442695, %v403_v6 }
 0x221   :  { %861 = vmax.xlane.f32.xlu1 %v860_v36 }
 0x222   :  { %1029 = vpow2.f32 %v234_v62 }
 0x226   :  { %v305_v2 = vpop.xlane.xlu2 %304 }
 0x227   :  { %v309_v4 = vsub.f32 %v1351_v31, %v305_v2  ;;  %v491_v9 = vpop.xlane.xlu1 %490 }
 0x228   :  { %v1447_v5 = vpop.eup %1029  ;;  %v495_v21 = vsub.f32 %v1354_v33, %v491_v9 }
 0x229   :  { %v311_v7 = vmul.f32 1.442695, %v309_v4  ;;  %v238_v3 = vsel %vm225_vm3, %v1447_v5, 0.0 }
 0x22a   :  { %239 = vadd.xlane.f32.xlu2 %v238_v3 }
 0x22b   :  { %1031 = vpow2.f32 %v311_v7 }
 0x22c   :  { %1033 = vpow2.f32 %v405_v16 }
 0x22e   :  { %v583_v8 = vpop.xlane.xlu2 %582 }
 0x22f   :  { %v587_v18 = vsub.f32 %v1366_v42, %v583_v8  ;;  %v497_v42 = vmul.f32 1.442695, %v495_v21 }
 0x230   :  { %v859_v37 = vpop.xlane.xlu0 %858 }
 0x231   :  { %v1452_v12 = vpop.eup %1031  ;;  %v589_v14 = vmul.f32 1.442695, %v587_v18  ;;  %v863_v41 = vsub.f32 %v1372_v49, %v859_v37 }
 0x232   :  { %v315_v31 = vsel %vm225_vm3, %v1452_v12, 0.0  ;;  %v1457_v19 = vpop.eup %1033 }
 0x233   :  { %316 = vadd.xlane.f32.xlu0 %v315_v31  ;;  %1035 = vpow2.f32 %v589_v14  ;;  %v409_v23 = vsel %vm225_vm3, %v1457_v19, 0.0  ;;  %v865_v47 = vmul.f32 1.442695, %v863_v41 }
 0x236   :  { %v675_v15 = vpop.xlane.xlu2 %674 }
 0x237   :  { %v679_v30 = vsub.f32 %v1379_v60, %v675_v15 }
 0x239   :  { %v231_v22 = vpop.xlane.xlu1 %230  ;;  %v1463_v0 = vpop.eup %1035  ;;  %v681_v34 = vmul.f32 1.442695, %v679_v30 }
 0x23a   :  { %v233_v10 = vsub.f32 %v1389_v63, %v231_v22  ;;  %v593_v32 = vsel %vm225_vm3, %v1463_v0, 0.0 }
 0x23b   :  { %410 = vadd.xlane.f32.xlu0 %v409_v23 }
 0x23c   :  { %v236_v24 = vmul.f32 1.442695, %v233_v10 }
 0x23e   :  { %1037 = vpow2.f32 %v236_v24  ;;  %v767_v26 = vpop.xlane.xlu2 %766 }
 0x23f   :  { %v771_v27 = vsub.f32 %v1394_v11, %v767_v26  ;;  %1039 = vpow2.f32 %v497_v42 }
 0x241   :  { %v773_v33 = vmul.f32 1.442695, %v771_v27 }
 0x243   :  { %1041 = vpow2.f32 %v773_v33  ;;  %594 = vadd.xlane.f32.xlu0 %v593_v32 }
 0x244   :  { %v1469_v63 = vpop.eup %1037  ;;  %1043 = vpow2.f32 %v681_v34 }
 0x245   :  { %v241_v35 = vsel %vm225_vm3, %v1469_v63, 0.0  ;;  %v1473_v39 = vpop.eup %1039 }
 0x246   :  { %242 = vadd.xlane.f32.xlu2 %v241_v35  ;;  %v308_v38 = vpop.xlane.xlu2 %307  ;;  %v501_v17 = vsel %vm225_vm3, %v1473_v39, 0.0 }
 0x247   :  { %v310_v11 = vsub.f32 %v1401_v20, %v308_v38 }
 0x249   :  { %v1476_v60 = vpop.eup %1041  ;;  %v313_v43 = vmul.f32 1.442695, %v310_v11 }
 0x24a   :  { %v777_v45 = vsel %vm225_vm3, %v1476_v60, 0.0  ;;  %v1483_v48 = vpop.eup %1043 }
 0x24b   :  { %1045 = vpow2.f32 %v313_v43  ;;  %778 = vadd.xlane.f32.xlu1 %v777_v45  ;;  %502 = vadd.xlane.f32.xlu0 %v501_v17  ;;  %v685_v53 = vsel %vm225_vm3, %v1483_v48, 0.0 }
 0x24c   :  { %1047 = vpow2.f32 %v865_v47 }
 0x24e   :  { %v402_v13 = vpop.xlane.xlu2 %401 }
 0x24f   :  { %v404_v20 = vsub.f32 %v1406_v25, %v402_v13 }
 0x251   :  { %v1486_v50 = vpop.eup %1045  ;;  %v407_v49 = vmul.f32 1.442695, %v404_v20  ;;  %v1009_v51 = vpop.permute.xlu1 %1008 }
 0x252   :  { %v1010_v28 = vunpack.i.l.bf16 %v1009_v51  ;;  %v318_v54 = vsel %vm225_vm3, %v1486_v50, 0.0  ;;  %v1011_v59 = vunpack.i.h.bf16 %v1009_v51  ;;  %v1492_v61 = vpop.eup %1047 }
 0x253   :  { %1049 = vpow2.f32 %v407_v49  ;;  %686 = vadd.xlane.f32.xlu0 %v685_v53  ;;  %319 = vadd.xlane.f32.xlu2 %v318_v54  ;;  %v869_v36 = vsel %vm225_vm3, %v1492_v61, 0.0 }
 0x254   :  { %632 = vmatpush.msra.mxu2 %v1010_v28 }
 0x256   :  { %633 = vmatpush.msra.mxu2 %v1011_v59  ;;  %v770_v6 = vpop.xlane.xlu2 %769 }
 0x257   :  { %v772_v8 = vsub.f32 %v1411_v29, %v770_v6 }
 0x259   :  { %v1494_v25 = vpop.eup %1049  ;;  %v775_v31 = vmul.f32 1.442695, %v772_v8 }
 0x25a   :  { %v412_v62 = vsel %vm225_vm3, %v1494_v25, 0.0 }
 0x25b   :  { %413 = vadd.xlane.f32.xlu0 %v412_v62  ;;  %870 = vadd.xlane.f32.xlu2 %v869_v36 }
 0x264   :  { %1018 = vrot.lane.b32.xlu1 %v1300_v44, %s1187_s8 }
 0x26f   :  { %1013 = vrot.lane.b32.xlu0 %v1300_v44, %s1188_s9 }
 0x27c   :  { %v494_v1 = vpop.xlane.xlu1 %493 }
 0x27d   :  { %v496_v2 = vsub.f32 %v1422_v40, %v494_v1 }
 0x27f   :  { %v499_v4 = vmul.f32 1.442695, %v496_v2 }
 0x281   :  { %1051 = vpow2.f32 %v499_v4 }
 0x284   :  { %v586_v7 = vpop.xlane.xlu1 %585 }
 0x285   :  { %v588_v3 = vsub.f32 %v1429_v46, %v586_v7 }
 0x287   :  { %v1506_v16 = vpop.eup %1051  ;;  %v591_v9 = vmul.f32 1.442695, %v588_v3 }
 0x288   :  { %v504_v18 = vsel %vm225_vm3, %v1506_v16, 0.0 }
 0x289   :  { %1053 = vpow2.f32 %v591_v9  ;;  %505 = vadd.xlane.f32.xlu2 %v504_v18 }
 0x28a   :  { %1055 = vpow2.f32 %v775_v31 }
 0x28c   :  { %v678_v14 = vpop.xlane.xlu1 %677 }
 0x28d   :  { %v680_v40 = vsub.f32 %v1436_v52, %v678_v14 }
 0x28f   :  { %v1512_v15 = vpop.eup %1053  ;;  %v683_v21 = vmul.f32 1.442695, %v680_v40 }
 0x290   :  { %v596_v46 = vsel %vm225_vm3, %v1512_v15, 0.0  ;;  %v1516_v22 = vpop.eup %1055 }
 0x291   :  { %1057 = vpow2.f32 %v683_v21  ;;  %597 = vadd.xlane.f32.xlu2 %v596_v46  ;;  %v780_v52 = vsel %vm225_vm3, %v1516_v22, 0.0 }
 0x294   :  { %v862_v29 = vpop.xlane.xlu1 %861 }
 0x295   :  { %v864_v10 = vsub.f32 %v1441_v55, %v862_v29  ;;  %v1529_v55 = vld [vmem:[#allocation4] ss:$0 sm:$0xff] }
 0x296   :  { %333 = vrot.lane.b32.xlu1 %v1529_v55, %s1177_s0 }
 0x297   :  { %v1519_v23 = vpop.eup %1057  ;;  %v867_v24 = vmul.f32 1.442695, %v864_v10 }
 0x298   :  { %v688_v42 = vsel %vm225_vm3, %v1519_v23, 0.0 }
 0x299   :  { %1059 = vpow2.f32 %v867_v24  ;;  %781 = vadd.xlane.f32.xlu2 %v780_v52  ;;  %689 = vadd.xlane.f32.xlu0 %v688_v42 }
 0x29d   :  { %v240_v26 = vpop.xlane.xlu2 %239 }
 0x29e   :  { %1061 = vrcp.f32 %v240_v26  ;;  %517 = vrot.lane.b32.xlu1 %v1529_v55, %s1179_s30 }
 0x29f   :  { %v1525_v27 = vpop.eup %1059 }
 0x2a0   :  { %v872_v30 = vsel %vm225_vm3, %v1525_v27, 0.0 }
 0x2a1   :  { %873 = vadd.xlane.f32.xlu0 %v872_v30 }
 0x2a4   :  { %v1062_v33 = vpop.eup %1061 }
 0x2a5   :  { %v246_v34 = vmul.f32 %v1062_v33, %v1447_v5 }
 0x2a6   :  { %v317_v32 = vpop.xlane.xlu0 %316  ;;  %701 = vrot.lane.b32.xlu1 %v1529_v55, %s1188_s9 }
 0x2a7   :  { %936 = vmatmul.msk.f32.vlgmr.msrb.gmra.mxu3 %vm225_vm3, %v246_v34 }
 0x2a8   :  { %954 = vmatpush.msrb.mxu3 %v990_v57 }
 0x2aa   :  { %955 = vmatpush.msrb.mxu3 %v991_v58 }
 0x2ae   :  { %v411_v35 = vpop.xlane.xlu0 %410 }
 0x2af   :  { %1063 = vrcp.f32 %v411_v35 }
 0x2b1   :  { %1023 = vrot.lane.b32.xlu2 %v1300_v44, %s1189_s10 }
 0x2b5   :  { %v1064_v37 = vpop.eup %1063  ;;  %425 = vrot.lane.b32.xlu0 %v1529_v55, %s1178_s1 }
 0x2b6   :  { %v595_v57 = vpop.xlane.xlu0 %594  ;;  %v417_v56 = vmul.f32 %v1064_v37, %v1457_v19 }
 0x2b8   :  { %940 = vmatmul.msk.f32.vlgmr.msrb.gmra.mxu0 %vm225_vm3, %v417_v56 }
 0x2b9   :  { %v243_v58 = vpop.xlane.xlu2 %242  ;;  %609 = vrot.lane.b32.xlu2 %v1529_v55, %s1186_s4 }
 0x2ba   :  { %1065 = vrcp.f32 %v243_v58 }
 0x2bd   :  { %885 = vrot.lane.b32.xlu0 %v1529_v55, %s1189_s10 }
 0x2be   :  { %v503_v44 = vpop.xlane.xlu0 %502 }
 0x2bf   :  { %1067 = vrcp.f32 %v503_v44 }
 0x2c0   :  { %v1066_v5 = vpop.eup %1065  ;;  %1069 = vrcp.f32 %v317_v32 }
 0x2c1   :  { %v247_v38 = vmul.f32 %v1066_v5, %v1469_v63  ;;  %793 = vrot.lane.b32.xlu2 %v1529_v55, %s1187_s8  ;;  %v779_v63 = vpop.xlane.xlu1 %778 }
 0x2c3   :  { %937 = vmatmul.msk.f32.gmra.mxu3 %vm225_vm3, %v247_v38 }
 0x2c5   :  { %v1068_v19 = vpop.eup %1067 }
 0x2c6   :  { %v1070_v11 = vpop.eup %1069  ;;  %v687_v41 = vpop.xlane.xlu0 %686  ;;  %v509_v45 = vmul.f32 %v1068_v19, %v1473_v39 }
 0x2c7   :  { %v320_v43 = vpop.xlane.xlu2 %319  ;;  %v323_v17 = vmul.f32 %v1070_v11, %v1452_v12 }
 0x2c8   :  { %1071 = vrcp.f32 %v320_v43  ;;  %942 = vmatmul.msk.f32.vlgmr.msrb.gmra.mxu1 %vm225_vm3, %v509_v45 }
 0x2cb   :  { %938 = vmatmul.msk.f32.vlgmr.msra.gmra.mxu3 %vm225_vm3, %v323_v17 }
 0x2ce   :  { %v1072_v47 = vpop.eup %1071  ;;  %v414_v13 = vpop.xlane.xlu0 %413 }
 0x2cf   :  { %1073 = vrcp.f32 %v414_v13  ;;  %v324_v20 = vmul.f32 %v1072_v47, %v1486_v50 }
 0x2d0   :  { %1075 = vrcp.f32 %v779_v63 }
 0x2d1   :  { %1077 = vrcp.f32 %v595_v57 }
 0x2d3   :  { %939 = vmatmul.msk.f32.gmra.mxu3 %vm225_vm3, %v324_v20 }
 0x2d5   :  { %v1074_v49 = vpop.eup %1073 }
 0x2d6   :  { %v1019_v51 = vpop.permute.xlu1 %1018  ;;  %v418_v39 = vmul.f32 %v1074_v49, %v1494_v25  ;;  %v1076_v28 = vpop.eup %1075 }
 0x2d7   :  { %v1020_v53 = vunpack.i.l.bf16 %v1019_v51  ;;  %v1021_v12 = vunpack.i.h.bf16 %v1019_v51  ;;  %v785_v54 = vmul.f32 %v1076_v28, %v1476_v60  ;;  %v1078_v59 = vpop.eup %1077  ;;  %v871_v25 = vpop.xlane.xlu2 %870 }
 0x2d8   :  { %941 = vmatmul.msk.f32.vlgmr.msrb.gmra.mxu2 %vm225_vm3, %v418_v39  ;;  %v601_v50 = vmul.f32 %v1078_v59, %v1463_v0 }
 0x2d9   :  { %816 = vmatpush.msra.mxu0 %v1020_v53 }
 0x2db   :  { %817 = vmatpush.msra.mxu0 %v1021_v12 }
 0x2dc   :  { %948 = vmatmul.msk.f32.vlgmr.msra.gmra.mxu0 %vm225_vm3, %v785_v54 }
 0x2e0   :  { %944 = vmatmul.msk.f32.vlgmr.msra.gmra.mxu2 %vm225_vm3, %v601_v50 }
 0x2e1   :  { %v1014_v62 = vpop.permute.xlu0 %1013 }
 0x2e2   :  { %v1015_v36 = vunpack.i.l.bf16 %v1014_v62  ;;  %v1016_v1 = vunpack.i.h.bf16 %v1014_v62 }
 0x2e4   :  { %724 = vmatpush.msra.mxu3 %v1015_v36 }
 0x2e6   :  { %725 = vmatpush.msra.mxu3 %v1016_v1 }
 0x2fc   :  { %v506_v2 = vpop.xlane.xlu2 %505 }
 0x2fd   :  { %1079 = vrcp.f32 %v506_v2 }
 0x2fe   :  { %1081 = vrcp.f32 %v687_v41 }
 0x303   :  { %v1080_v4 = vpop.eup %1079 }
 0x304   :  { %v510_v60 = vmul.f32 %v1080_v4, %v1506_v16  ;;  %v598_v6 = vpop.xlane.xlu2 %597  ;;  %v1082_v7 = vpop.eup %1081 }
 0x305   :  { %1083 = vrcp.f32 %v598_v6  ;;  %v693_v3 = vmul.f32 %v1082_v7, %v1483_v48 }
 0x306   :  { %943 = vmatmul.msk.f32.vlgmr.msrb.gmra.mxu3 %vm225_vm3, %v510_v60 }
 0x308   :  { %v334_v32 = vpop.permute.xlu1 %333 }
 0x30b   :  { %v1084_v0 = vpop.eup %1083 }
 0x30c   :  { %v782_v8 = vpop.xlane.xlu2 %781  ;;  %v690_v9 = vpop.xlane.xlu0 %689  ;;  %v602_v18 = vmul.f32 %v1084_v0, %v1512_v15 }
 0x30d   :  { %1085 = vrcp.f32 %v782_v8 }
 0x30e   :  { %1087 = vrcp.f32 %v690_v9  ;;  %945 = vmatmul.msk.f32.gmra.mxu2 %vm225_vm3, %v602_v18  ;;  %946 = vmatmul.msk.f32.vlgmr.msra.gmra.mxu3 %vm225_vm3, %v693_v3 }
 0x30f   :  { %1089 = vrcp.f32 %v871_v25 }
 0x310   :  { %v518_v34 = vpop.permute.xlu1 %517 }
 0x313   :  { %v1086_v16 = vpop.eup %1085 }
 0x314   :  { %v1088_v31 = vpop.eup %1087  ;;  %v1024_v14 = vpop.permute.xlu2 %1023  ;;  %v786_v21 = vmul.f32 %v1086_v16, %v1516_v22 }
 0x315   :  { %v874_v40 = vpop.xlane.xlu0 %873  ;;  %v1090_v46 = vpop.eup %1089  ;;  %v1025_v29 = vunpack.i.l.bf16 %v1024_v14  ;;  %v694_v48 = vmul.f32 %v1088_v31, %v1519_v23  ;;  %v1026_v15 = vunpack.i.h.bf16 %v1024_v14 }
 0x316   :  { %949 = vmatmul.msk.f32.gmra.mxu0 %vm225_vm3, %v786_v21  ;;  %1091 = vrcp.f32 %v874_v40  ;;  %v877_v10 = vmul.f32 %v1090_v46, %v1492_v61 }
 0x317   :  { %947 = vmatmul.msk.f32.gmra.mxu3 %vm225_vm3, %v694_v48  ;;  %908 = vmatpush.msra.mxu1 %v1025_v29 }
 0x318   :  { %v702_v54 = vpop.permute.xlu1 %701 }
 0x319   :  { %909 = vmatpush.msra.mxu1 %v1026_v15 }
 0x31a   :  { %950 = vmatmul.msk.f32.vlgmr.msra.gmra.mxu1 %vm225_vm3, %v877_v10 }
 0x31c   :  { %v1092_v24 = vpop.eup %1091  ;;  %v610_v44 = vpop.permute.xlu2 %609 }
 0x31d   :  { %v878_v52 = vmul.f32 %v1092_v24, %v1525_v27 }
 0x322   :  { %951 = vmatmul.msk.f32.gmra.mxu1 %vm225_vm3, %v878_v52 }
 0x324   :  { %v794_v38 = vpop.permute.xlu2 %793 }
 0x327   :  { %v426_v26 = vpop.permute.xlu0 %425 }
 0x32a   :  { %v274_v22 = vpop.f32.mrf.mxu3 }
 0x32b   :  { %v275_v23 = vadd.f32 %v1529_v55, %v274_v22 }
 0x32d   :  { %v280_v42 = vmax.f32 %v275_v23, 0.0 }
 0x32f   :  { %282 = vst.msk [vmem:[%s1656_s7] sm:$0xff] %vm225_vm3, %v280_v42  ;;  %v886_v8 = vpop.permute.xlu0 %885 }
 0x335   :  { %v451_v30 = vpop.f32.mrf.mxu0 }
 0x336   :  { %v452_v61 = vadd.f32 %v451_v30, %v426_v26 }
 0x338   :  { %v457_v33 = vmax.f32 %v452_v61, 0.0 }
 0x33a   :  { %461 = vrot.lane.b32.xlu0 %v457_v33, %s1187_s8 }
 0x345   :  { %v543_v27 = vpop.f32.mrf.mxu1 }
 0x346   :  { %v277_v35 = vpop.f32.mrf.mxu3  ;;  %v544_v37 = vadd.f32 %v543_v27, %v518_v34 }
 0x347   :  { %v278_v57 = vadd.f32 %v1529_v55, %v277_v35 }
 0x348   :  { %v549_v56 = vmax.f32 %v544_v37, 0.0 }
 0x349   :  { %v281_v58 = vmax.f32 %v278_v57, 0.0 }
 0x34a   :  { %553 = vrot.lane.b32.xlu2 %v549_v56, %s1188_s9 }
 0x34b   :  { %283 = vst.msk [vmem:[%s1656_s7 + $0x8] sm:$0xff] %vm225_vm3, %v281_v58  ;;  %vm375_vm3 = vcmask 261248  }
 0x34e   :  { %v359_v5 = vpop.f32.mrf.mxu3 }
 0x34f   :  { %v360_v63 = vadd.f32 %v359_v5, %v334_v32 }
 0x351   :  { %v365_v20 = vmax.f32 %v360_v63, 0.0 }
 0x356   :  { %v362_v17 = vpop.f32.mrf.mxu3 }
 0x357   :  { %v363_v55 = vadd.f32 %v362_v17, %v334_v32 }
 0x359   :  { %v819_v19 = vpop.f32.mrf.mxu0  ;;  %v366_v13 = vmax.f32 %v363_v55, 0.0 }
 0x35a   :  { %v820_v11 = vadd.f32 %v819_v19, %v794_v38 }
 0x35b   :  { %v454_v41 = vpop.f32.mrf.mxu2 }
 0x35c   :  { %v825_v43 = vmax.f32 %v820_v11, 0.0  ;;  %v455_v45 = vadd.f32 %v454_v41, %v426_v26 }
 0x35e   :  { %v458_v47 = vmax.f32 %v455_v45, 0.0  ;;  %829 = vrot.lane.b32.xlu2 %v825_v43, %s1178_s1 }
 0x360   :  { %463 = vrot.lane.b32.xlu1 %v458_v47, %s1187_s8 }
 0x363   :  { %v635_v49 = vpop.f32.mrf.mxu2 }
 0x364   :  { %v636_v51 = vadd.f32 %v635_v49, %v610_v44 }
 0x366   :  { %371 = vrot.lane.b32.xlu2 %v366_v13, %s1189_s10  ;;  %v641_v39 = vmax.f32 %v636_v51, 0.0 }
 0x368   :  { %369 = vrot.lane.b32.xlu1 %v365_v20, %s1189_s10 }
 0x370   :  { %645 = vrot.lane.b32.xlu1 %v641_v39, %s1186_s4 }
 0x389   :  { %v546_v28 = vpop.f32.mrf.mxu3 }
 0x38a   :  { %v547_v53 = vadd.f32 %v546_v28, %v518_v34 }
 0x38c   :  { %v550_v12 = vmax.f32 %v547_v53, 0.0 }
 0x38e   :  { %555 = vrot.lane.b32.xlu0 %v550_v12, %s1188_s9 }
 0x391   :  { %v727_v59 = vpop.f32.mrf.mxu3  ;;  %v638_v50 = vpop.f32.mrf.mxu2 }
 0x392   :  { %v728_v62 = vadd.f32 %v727_v59, %v702_v54  ;;  %v639_v36 = vadd.f32 %v638_v50, %v610_v44 }
 0x393   :  { %v822_v2 = vpop.f32.mrf.mxu0 }
 0x394   :  { %v733_v1 = vmax.f32 %v728_v62, 0.0  ;;  %v642_v25 = vmax.f32 %v639_v36, 0.0  ;;  %v823_v60 = vadd.f32 %v822_v2, %v794_v38 }
 0x396   :  { %737 = vrot.lane.b32.xlu0 %v733_v1, %s1179_s30  ;;  %647 = vrot.lane.b32.xlu2 %v642_v25, %s1186_s4  ;;  %v826_v0 = vmax.f32 %v823_v60, 0.0 }
 0x397   :  { %v911_v4 = vpop.f32.mrf.mxu1 }
 0x398   :  { %v912_v16 = vadd.f32 %v911_v4, %v886_v8 }
 0x39a   :  { %v730_v6 = vpop.f32.mrf.mxu3  ;;  %v917_v14 = vmax.f32 %v912_v16, 0.0 }
 0x39b   :  { %v731_v7 = vadd.f32 %v730_v6, %v702_v54 }
 0x39d   :  { %v734_v3 = vmax.f32 %v731_v7, 0.0 }
 0x39e   :  { %831 = vrot.lane.b32.xlu0 %v826_v0, %s1178_s1 }
 0x39f   :  { %v914_v9 = vpop.f32.mrf.mxu1  ;;  %739 = vrot.lane.b32.xlu1 %v734_v3, %s1179_s30 }
 0x3a0   :  { %v915_v18 = vadd.f32 %v914_v9, %v886_v8 }
 0x3a2   :  { %v918_v31 = vmax.f32 %v915_v18, 0.0 }
 0x3a4   :  { %923 = vrot.lane.b32.xlu2 %v918_v31, %s1177_s0  ;;  %v554_v40 = vpop.permute.xlu2 %553 }
 0x3a7   :  { %921 = vrot.lane.b32.xlu1 %v917_v14, %s1177_s0 }
 0x3ac   :  { %v462_v15 = vpop.permute.xlu0 %461 }
 0x3b8   :  { %v830_v21 = vpop.permute.xlu2 %829 }
 0x3c0   :  { %v372_v46 = vpop.permute.xlu2 %371 }
 0x3c1   :  { %377 = vst.msk [vmem:[%s1656_s7 + $0x8] sm:$0xff] %vm375_vm3, %v372_v46 }
 0x3d2   :  { %v464_v29 = vpop.permute.xlu1 %463 }
 0x3d3   :  { %469 = vst.msk [vmem:[%s1656_s7 + $0x8] sm:$0xff] %vm467_vm4, %v464_v29 }
 0x3da   :  { %v370_v48 = vpop.permute.xlu1 %369 }
 0x3db   :  { %376 = vst.msk [vmem:[%s1656_s7] sm:$0xff] %vm375_vm3, %v370_v48 }
 0x3dc   :  { %468 = vst.msk [vmem:[%s1656_s7] sm:$0xff] %vm467_vm4, %v462_v15 }
 0x3dd   :  { %560 = vst.msk [vmem:[%s1656_s7] sm:$0xff] %vm559_vm5, %v554_v40 }
 0x3e2   :  { %v646_v10 = vpop.permute.xlu1 %645 }
 0x3e3   :  { %652 = vst.msk [vmem:[%s1656_s7] sm:$0xff] %vm651_vm6, %v646_v10 }
 0x3f0   :  { %v648_v52 = vpop.permute.xlu2 %647 }
 0x3fe   :  { %v924_v26 = vpop.permute.xlu2 %923 }
 0x400   :  { %v556_v24 = vpop.permute.xlu0 %555 }
 0x401   :  { %561 = vst.msk [vmem:[%s1656_s7 + $0x8] sm:$0xff] %vm559_vm5, %v556_v24 }
 0x402   :  { %653 = vst.msk [vmem:[%s1656_s7 + $0x8] sm:$0xff] %vm651_vm6, %v648_v52 }
 0x408   :  { %v738_v22 = vpop.permute.xlu0 %737 }
 0x409   :  { %744 = vst.msk [vmem:[%s1656_s7] sm:$0xff] %vm743_vm7, %v738_v22 }
 0x40a   :  { %836 = vst.msk [vmem:[%s1656_s7] sm:$0xff] %vm835_vm8, %v830_v21 }
 0x410   :  { %v832_v42 = vpop.permute.xlu0 %831 }
 0x411   :  { %v740_v23 = vpop.permute.xlu1 %739 }
 0x412   :  { %745 = vst.msk [vmem:[%s1656_s7 + $0x8] sm:$0xff] %vm743_vm7, %v740_v23 }
 0x413   :  { %837 = vst.msk [vmem:[%s1656_s7 + $0x8] sm:$0xff] %vm835_vm8, %v832_v42 }
 0x414   :  { %929 = vst.msk [vmem:[%s1656_s7 + $0x8] sm:$0xff] %vm927_vm9, %v924_v26 }
 0x419   :  { %v922_v30 = vpop.permute.xlu1 %921 }
 0x41a   :  { %928 = vst.msk [vmem:[%s1656_s7] sm:$0xff] %vm927_vm9, %v922_v30 }
 0x41b   :  { %934 = vsyncpa [#allocation3], 1 }
 0x41c   :  { %935 = vsyncpa [#allocation5], 1 }

// kernel: _lambda_.13
= control target key start
LH: loop header
LB: loop body
LE: loop exit
PB: predicated region body
PF: predicated region fallthrough
CT: control target
= control target key end

     0   :  { %10 = vsyncpa [#allocation3], 0  ;;  %s426_s0 = inlined_call_operand.vmem [shape: f32[16,128], index: 0, kind: input, shape index: {}]   ;;  %s427_s1 = inlined_call_operand.hbm [shape: f32[128,128], index: 1, kind: input, shape index: {}]   ;;  %s428_s2 = inlined_call_operand.vmem [shape: f32[3,128], index: 2, kind: input, shape index: {}]   ;;  %s429_s3 = inlined_call_operand.hbm [shape: f32[128,128], index: 3, kind: input, shape index: {}]   ;;  %s430_s4 = inlined_call_operand.vmem [shape: f32[1,128], index: 4, kind: input, shape index: {}]   ;;  %s431_s5 = inlined_call_operand.hbm [shape: f32[16,128], index: 5, kind: output, shape index: {}]  }
   0x1   :  { %11 = vsyncpa [#allocation6], 0 }
   0x2   :  { %12 = vsyncpa [#allocation4], 0  ;;  %s19_s20 = sshll.u32 %s427_s1, 4  ;;  %s344_s21 = smov [#allocation2]   ;;  %s20_s20 = int_to_ptr.hbm [resolvable:$true] %s19_s20 }
   0x3   :  { %s21_s22 = sshll.u32 %s344_s21, 4  ;;  %s34_s25 = sshll.u32 %s429_s3, 4  ;;  %s22_s22 = int_to_ptr.vmem [resolvable:$true] %s21_s22  ;;  %s35_s25 = int_to_ptr.hbm [resolvable:$true] %s34_s25 }
   0x4   :  { %s345_s26 = smov 128   ;;  %s346_s27 = smov 8  }
   0x5   :  { %27 = dma.hbm_to_vmem [thread:$0]  %s20_s20, 2048, %s22_s22, [#allocation3], %s345_s26, %s345_s26, %s346_s27  }
   0x6   :  { %s347_s28 = smov [#allocation5]  }
   0x7   :  { %s36_s29 = sshll.u32 %s347_s28, 4  ;;  %s37_s29 = int_to_ptr.vmem [resolvable:$true] %s36_s29 }
   0x8   :  { %42 = dma.hbm_to_vmem [thread:$0]  %s35_s25, 2048, %s37_s29, [#allocation6], %s345_s26, %s345_s26, %s346_s27  }
   0x9   :  { %338 = dma.done.wait [#allocation3], 2048  }
   0xa   :  { %339 = vsyncadd [#allocation3], 4294965248 }
   0xb   :  { %340 = dma.done.wait [#allocation6], 2048  }
   0xc   :  { %341 = vsyncadd [#allocation6], 4294965248  ;;  %v70_v0 = vld [vmem:[#allocation2 + $0x78] sm:$0xff]  ;;  %v69_v1 = vld [vmem:[#allocation2 + $0x70] sm:$0xff]  ;;  %v348_v23 = vmov 128.0   ;;  %s204_s17 = sshll.u32 %s431_s5, 4  ;;  %s205_s17 = int_to_ptr.hbm [resolvable:$true] %s204_s17 }
   0xd   :  { %218 = vmatpush.msra.mxu2 %v70_v0  ;;  %73 = vmatpush.msra.mxu0 %v70_v0  ;;  %v68_v2 = vld [vmem:[#allocation2 + $0x68] sm:$0xff]  ;;  %v67_v3 = vld [vmem:[#allocation2 + $0x60] sm:$0xff]  ;;  %v66_v4 = vld [vmem:[#allocation2 + $0x58] sm:$0xff]  ;;  %260 = vrcp.f32 %v348_v23 }
   0xe   :  { %v65_v5 = vld [vmem:[#allocation2 + $0x50] sm:$0xff]  ;;  %v64_v6 = vld [vmem:[#allocation2 + $0x48] sm:$0xff]  ;;  %v63_v7 = vld [vmem:[#allocation2 + $0x40] sm:$0xff] }
   0xf   :  { %219 = vmatpush.msra.mxu2 %v69_v1  ;;  %74 = vmatpush.msra.mxu0 %v69_v1  ;;  %v62_v8 = vld [vmem:[#allocation2 + $0x38] sm:$0xff]  ;;  %v61_v9 = vld [vmem:[#allocation2 + $0x30] sm:$0xff]  ;;  %v60_v10 = vld [vmem:[#allocation2 + $0x28] sm:$0xff] }
  0x10   :  { %v59_v11 = vld [vmem:[#allocation2 + $0x20] sm:$0xff]  ;;  %v58_v12 = vld [vmem:[#allocation2 + $0x18] sm:$0xff]  ;;  %v57_v13 = vld [vmem:[#allocation2 + $0x10] sm:$0xff] }
  0x11   :  { %220 = vmatpush.msra.mxu2 %v68_v2  ;;  %75 = vmatpush.msra.mxu0 %v68_v2  ;;  %v56_v14 = vld [vmem:[#allocation2 + $0x8] sm:$0xff]  ;;  %v55_v15 = vld [vmem:[#allocation2] sm:$0xff]  ;;  %v168_v26 = vld [vmem:[#allocation5 + $0x78] sm:$0xff] }
  0x12   :  { %v54_v16 = vld [vmem:[%s426_s0 + $0x8] sm:$0xff]  ;;  %v53_v17 = vld [vmem:[%s426_s0] sm:$0xff]  ;;  %234 = vmatpush.msra.mxu3 %v168_v26  ;;  %173 = vmatpush.msra.mxu1 %v168_v26  ;;  %v167_v39 = vld [vmem:[#allocation5 + $0x70] sm:$0xff] }
  0x13   :  { %221 = vmatpush.msra.mxu2 %v67_v3  ;;  %76 = vmatpush.msra.mxu0 %v67_v3  ;;  %v256_v18 = vld [vmem:[%s428_s2] ss:$0 sm:$0xff]  ;;  %v261_v24 = vpop.eup %260  ;;  %v166_v40 = vld [vmem:[#allocation5 + $0x68] sm:$0xff]  ;;  %v164_v42 = vld [vmem:[#allocation5 + $0x58] sm:$0xff] }
  0x14   :  { %v103_v25 = vmul.f32 128.0, %v261_v24  ;;  %vm107_vm0 = vweird.f32 %v261_v24  ;;  %235 = vmatpush.msra.mxu3 %v167_v39  ;;  %174 = vmatpush.msra.mxu1 %v167_v39  ;;  %v165_v41 = vld [vmem:[#allocation5 + $0x60] sm:$0xff]  ;;  %v163_v43 = vld [vmem:[#allocation5 + $0x50] sm:$0xff]  ;;  %v162_v44 = vld [vmem:[#allocation5 + $0x48] sm:$0xff] }
  0x15   :  { %222 = vmatpush.msra.mxu2 %v66_v4  ;;  %77 = vmatpush.msra.mxu0 %v66_v4  ;;  %v161_v45 = vld [vmem:[#allocation5 + $0x40] sm:$0xff]  ;;  %v160_v46 = vld [vmem:[#allocation5 + $0x38] sm:$0xff]  ;;  %v159_v47 = vld [vmem:[#allocation5 + $0x30] sm:$0xff] }
  0x16   :  { %v104_v27 = vsub.f32 1.0, %v103_v25  ;;  %236 = vmatpush.msra.mxu3 %v166_v40  ;;  %175 = vmatpush.msra.mxu1 %v166_v40  ;;  %v158_v48 = vld [vmem:[#allocation5 + $0x28] sm:$0xff]  ;;  %v157_v49 = vld [vmem:[#allocation5 + $0x20] sm:$0xff]  ;;  %v156_v50 = vld [vmem:[#allocation5 + $0x18] sm:$0xff] }
  0x17   :  { %223 = vmatpush.msra.mxu2 %v65_v5  ;;  %78 = vmatpush.msra.mxu0 %v65_v5  ;;  %v155_v51 = vld [vmem:[#allocation5 + $0x10] sm:$0xff]  ;;  %v154_v52 = vld [vmem:[#allocation5 + $0x8] sm:$0xff]  ;;  %v153_v53 = vld [vmem:[#allocation5] sm:$0xff] }
  0x18   :  { %v105_v28 = vmul.f32 %v261_v24, %v104_v27  ;;  %237 = vmatpush.msra.mxu3 %v165_v41  ;;  %176 = vmatpush.msra.mxu1 %v165_v41  ;;  %v257_v4 = vld [vmem:[%s428_s2 + $0x1] ss:$0 sm:$0xff] }
  0x19   :  { %224 = vmatpush.msra.mxu2 %v64_v6  ;;  %79 = vmatpush.msra.mxu0 %v64_v6 }
  0x1a   :  { %v106_v29 = vadd.f32 %v261_v24, %v105_v28  ;;  %238 = vmatpush.msra.mxu3 %v164_v42  ;;  %177 = vmatpush.msra.mxu1 %v164_v42 }
  0x1b   :  { %225 = vmatpush.msra.mxu2 %v63_v7  ;;  %80 = vmatpush.msra.mxu0 %v63_v7 }
  0x1c   :  { %v108_v30 = vsel %vm107_vm0, %v261_v24, %v106_v29  ;;  %239 = vmatpush.msra.mxu3 %v163_v43  ;;  %178 = vmatpush.msra.mxu1 %v163_v43 }
  0x1d   :  { %226 = vmatpush.msra.mxu2 %v62_v8  ;;  %81 = vmatpush.msra.mxu0 %v62_v8  ;;  %v258_v8 = vld [vmem:[%s428_s2 + $0x2] ss:$0 sm:$0xff]  ;;  %s349_s2 = smov [#allocation7]  }
  0x1e   :  { %240 = vmatpush.msra.mxu3 %v162_v44  ;;  %179 = vmatpush.msra.mxu1 %v162_v44  ;;  %s202_s14 = sshll.u32 %s349_s2, 4  ;;  %s203_s14 = int_to_ptr.vmem [resolvable:$true] %s202_s14 }
  0x1f   :  { %227 = vmatpush.msra.mxu2 %v61_v9  ;;  %82 = vmatpush.msra.mxu0 %v61_v9 }
  0x20   :  { %241 = vmatpush.msra.mxu3 %v161_v45  ;;  %180 = vmatpush.msra.mxu1 %v161_v45 }
  0x21   :  { %228 = vmatpush.msra.mxu2 %v60_v10  ;;  %83 = vmatpush.msra.mxu0 %v60_v10 }
  0x22   :  { %242 = vmatpush.msra.mxu3 %v160_v46  ;;  %181 = vmatpush.msra.mxu1 %v160_v46 }
  0x23   :  { %229 = vmatpush.msra.mxu2 %v59_v11  ;;  %84 = vmatpush.msra.mxu0 %v59_v11 }
  0x24   :  { %243 = vmatpush.msra.mxu3 %v159_v47  ;;  %182 = vmatpush.msra.mxu1 %v159_v47 }
  0x25   :  { %230 = vmatpush.msra.mxu2 %v58_v12  ;;  %85 = vmatpush.msra.mxu0 %v58_v12 }
  0x26   :  { %244 = vmatpush.msra.mxu3 %v158_v48  ;;  %183 = vmatpush.msra.mxu1 %v158_v48 }
  0x27   :  { %231 = vmatpush.msra.mxu2 %v57_v13  ;;  %86 = vmatpush.msra.mxu0 %v57_v13 }
  0x28   :  { %245 = vmatpush.msra.mxu3 %v157_v49  ;;  %184 = vmatpush.msra.mxu1 %v157_v49 }
  0x29   :  { %232 = vmatpush.msra.mxu2 %v56_v14  ;;  %87 = vmatpush.msra.mxu0 %v56_v14 }
  0x2a   :  { %246 = vmatpush.msra.mxu3 %v156_v50  ;;  %185 = vmatpush.msra.mxu1 %v156_v50 }
  0x2b   :  { %233 = vmatpush.msra.mxu2 %v55_v15  ;;  %88 = vmatpush.msra.mxu0 %v55_v15 }
  0x2c   :  { %92 = vmatmul.f32.vlgmr.msra.gmra.mxu2 %v54_v16  ;;  %89 = vmatmul.f32.vlgmr.msra.gmra.mxu0 %v53_v17 }
  0x2d   :  { %247 = vmatpush.msra.mxu3 %v155_v51  ;;  %186 = vmatpush.msra.mxu1 %v155_v51 }
  0x2f   :  { %248 = vmatpush.msra.mxu3 %v154_v52  ;;  %187 = vmatpush.msra.mxu1 %v154_v52 }
  0x31   :  { %249 = vmatpush.msra.mxu3 %v153_v53  ;;  %188 = vmatpush.msra.mxu1 %v153_v53 }
  0xa9   :  { %v90_v21 = vpop.f32.mrf.mxu0 }
  0xaa   :  { %v91_v22 = vadd.f32 %v256_v18, %v90_v21 }
  0xaf   :  { %v93_v19 = vpop.f32.mrf.mxu2 }
  0xb0   :  { %v94_v20 = vadd.f32 %v256_v18, %v93_v19 }
  0xb2   :  { %100 = vadd.xlane.f32.xlu0 %v94_v20 }
  0xba   :  { %98 = vadd.xlane.f32.xlu0 %v91_v22 }
 0x125   :  { %v101_v31 = vpop.xlane.xlu0 %100 }
 0x126   :  { %v110_v32 = vmul.f32 %v108_v30, %v101_v31 }
 0x128   :  { %v401_v33 = vsub.f32 %v94_v20, %v110_v32  ;;  %v259_v20 = vld [vmem:[%s430_s4] ss:$0 sm:$0xff] }
 0x12a   :  { %v114_v34 = vmul.f32 %v401_v33, %v401_v33 }
 0x12c   :  { %117 = vadd.xlane.f32.xlu1 %v114_v34 }
 0x12d   :  { %v99_v35 = vpop.xlane.xlu0 %98 }
 0x12e   :  { %v109_v36 = vmul.f32 %v108_v30, %v99_v35 }
 0x130   :  { %v405_v37 = vsub.f32 %v91_v22, %v109_v36 }
 0x132   :  { %v113_v38 = vmul.f32 %v405_v37, %v405_v37 }
 0x134   :  { %115 = vadd.xlane.f32.xlu1 %v113_v38 }
 0x19f   :  { %v118_v54 = vpop.xlane.xlu1 %117 }
 0x1a0   :  { %v120_v55 = vmul.f32 %v118_v54, %v108_v30 }
 0x1a2   :  { %v122_v56 = vadd.f32 1e-05, %v120_v55 }
 0x1a4   :  { %262 = vrsqrt.f32 %v122_v56  ;;  %vm139_vm2 = vweird.f32 %v122_v56 }
 0x1a7   :  { %v116_v57 = vpop.xlane.xlu1 %115 }
 0x1a8   :  { %v119_v58 = vmul.f32 %v116_v57, %v108_v30 }
 0x1aa   :  { %v263_v59 = vpop.eup %262  ;;  %v121_v60 = vadd.f32 1e-05, %v119_v58 }
 0x1ab   :  { %v134_v61 = vmul.f32 %v263_v59, %v122_v56  ;;  %vm140_vm1 = vweird.f32 %v263_v59 }
 0x1ac   :  { %264 = vrsqrt.f32 %v121_v60  ;;  %vm141_vm3 = vmor %vm139_vm2, %vm140_vm1  ;;  %vm129_vm5 = vweird.f32 %v121_v60 }
 0x1ad   :  { %v135_v62 = vmul.f32 %v263_v59, %v134_v61 }
 0x1af   :  { %v136_v63 = vmul.f32 0.5, %v135_v62 }
 0x1b1   :  { %v137_v0 = vsub.f32 1.5, %v136_v63 }
 0x1b2   :  { %v265_v1 = vpop.eup %264 }
 0x1b3   :  { %v138_v2 = vmul.f32 %v263_v59, %v137_v0  ;;  %v124_v3 = vmul.f32 %v265_v1, %v121_v60  ;;  %vm130_vm4 = vweird.f32 %v265_v1 }
 0x1b4   :  { %vm131_vm6 = vmor %vm129_vm5, %vm130_vm4 }
 0x1b5   :  { %v125_v5 = vmul.f32 %v265_v1, %v124_v3  ;;  %v142_v6 = vsel %vm141_vm3, %v263_v59, %v138_v2 }
 0x1b6   :  { %v144_v7 = vmul.f32 %v142_v6, %v401_v33 }
 0x1b7   :  { %v126_v9 = vmul.f32 0.5, %v125_v5 }
 0x1b8   :  { %v147_v10 = vmul.f32 %v257_v4, %v144_v7 }
 0x1b9   :  { %v127_v11 = vsub.f32 1.5, %v126_v9 }
 0x1ba   :  { %v150_v12 = vadd.f32 %v258_v8, %v147_v10 }
 0x1bb   :  { %v128_v13 = vmul.f32 %v265_v1, %v127_v11 }
 0x1bc   :  { %v152_v14 = vmax.f32 %v150_v12, 0.0 }
 0x1bd   :  { %v132_v15 = vsel %vm131_vm6, %v265_v1, %v128_v13 }
 0x1be   :  { %192 = vmatmul.f32.vlgmr.msra.gmra.mxu3 %v152_v14  ;;  %v143_v16 = vmul.f32 %v132_v15, %v405_v37 }
 0x1c0   :  { %v146_v17 = vmul.f32 %v257_v4, %v143_v16 }
 0x1c2   :  { %v149_v18 = vadd.f32 %v258_v8, %v146_v17 }
 0x1c4   :  { %v151_v19 = vmax.f32 %v149_v18, 0.0 }
 0x1c6   :  { %189 = vmatmul.f32.vlgmr.msra.gmra.mxu1 %v151_v19 }
 0x241   :  { %v193_v21 = vpop.f32.mrf.mxu3 }
 0x242   :  { %v194_v22 = vadd.f32 %v259_v20, %v193_v21 }
 0x243   :  { %v190_v23 = vpop.f32.mrf.mxu1 }
 0x244   :  { %197 = vst [vmem:[#allocation7 + $0x8] sm:$0xff] %v194_v22  ;;  %v191_v24 = vadd.f32 %v259_v20, %v190_v23 }
 0x246   :  { %196 = vst [vmem:[#allocation7] sm:$0xff] %v191_v24 }
 0x247   :  { %210 = dma.vmem_to_hbm [thread:$0]  %s203_s14, 256, %s205_s17, [#allocation4], %s345_s26, %s345_s26, %s346_s27  }
 0x248   :  { %342 = dma.done.wait [#allocation4], 256  }
 0x249   :  { %343 = vsyncadd [#allocation4], 4294967040 }
 0x24a   :  { %215 = vsyncpa [#allocation3], 1 }
 0x24b   :  { %216 = vsyncpa [#allocation6], 1 }
 0x24c   :  { %217 = vsyncpa [#allocation4], 1 }

// kernel: _lambda_.11
= control target key start
LH: loop header
LB: loop body
LE: loop exit
PB: predicated region body
PF: predicated region fallthrough
CT: control target
= control target key end

     0   :  { %12 = vsyncpa [#allocation3], 0  ;;  %s535_s0 = inlined_call_operand.vmem [shape: f32[16,128], index: 0, kind: input, shape index: {}]   ;;  %s536_s1 = inlined_call_operand.vmem [shape: f32[16,128], index: 1, kind: input, shape index: {}]   ;;  %s537_s2 = inlined_call_operand.hbm [shape: f32[128,128], index: 2, kind: input, shape index: {}]   ;;  %s538_s3 = inlined_call_operand.hbm [shape: f32[128,128], index: 3, kind: input, shape index: {}]   ;;  %s539_s4 = inlined_call_operand.vmem [shape: f32[3,128], index: 4, kind: input, shape index: {}]   ;;  %s540_s5 = inlined_call_operand.hbm [shape: f32[128,128], index: 5, kind: input, shape index: {}]   ;;  %s541_s6 = inlined_call_operand.vmem [shape: f32[3,128], index: 6, kind: input, shape index: {}]   ;;  %s542_s7 = inlined_call_operand.vmem [shape: f32[16,128], index: 7, kind: output, shape index: {}]  }
   0x1   :  { %13 = vsyncpa [#allocation5], 0  ;;  %s35_s26 = sshll.u32 %s538_s3, 4  ;;  %s429_s27 = smov [#allocation4]   ;;  %s36_s26 = int_to_ptr.hbm [resolvable:$true] %s35_s26 }
   0x2   :  { %s37_s28 = sshll.u32 %s429_s27, 4  ;;  %s22_s8 = sshll.u32 %s537_s2, 4  ;;  %s38_s28 = int_to_ptr.vmem [resolvable:$true] %s37_s28  ;;  %s23_s8 = int_to_ptr.hbm [resolvable:$true] %s22_s8 }
   0x3   :  { %s430_s9 = smov 128   ;;  %s431_s10 = smov 8  }
   0x4   :  { %43 = dma.hbm_to_vmem [thread:$0]  %s36_s26, 2048, %s38_s28, [#allocation5], %s430_s9, %s430_s9, %s431_s10  }
   0x5   :  { %s432_s11 = smov [#allocation2]   ;;  %s50_s15 = sshll.u32 %s540_s5, 4  ;;  %s51_s15 = int_to_ptr.hbm [resolvable:$true] %s50_s15 }
   0x6   :  { %s24_s12 = sshll.u32 %s432_s11, 4  ;;  %s433_s3 = smov [#allocation6]   ;;  %s25_s12 = int_to_ptr.vmem [resolvable:$true] %s24_s12 }
   0x7   :  { %30 = dma.hbm_to_vmem [thread:$0]  %s23_s8, 2048, %s25_s12, [#allocation3], %s430_s9, %s430_s9, %s431_s10  }
   0x8   :  { %s52_s16 = sshll.u32 %s433_s3, 4  ;;  %s53_s16 = int_to_ptr.vmem [resolvable:$true] %s52_s16 }
   0x9   :  { %58 = dma.hbm_to_vmem [thread:$0]  %s51_s15, 2048, %s53_s16, [#allocation5], %s430_s9, %s430_s9, %s431_s10  }
   0xa   :  { %425 = dma.done.wait [#allocation3], 2048  }
   0xb   :  { %426 = vsyncadd [#allocation3], 4294965248 }
   0xc   :  { %427 = dma.done.wait [#allocation5], 4096  }
   0xd   :  { %428 = vsyncadd [#allocation5], 4294963200  ;;  %v108_v0 = vld [vmem:[#allocation4 + $0x78] sm:$0xff]  ;;  %v107_v2 = vld [vmem:[#allocation4 + $0x70] sm:$0xff]  ;;  %v434_v45 = vmov 128.0  }
   0xe   :  { %v90_v1 = vld [vmem:[#allocation2 + $0x78] sm:$0xff]  ;;  %109 = vmatpush.msra.mxu0 %v108_v0  ;;  %v89_v3 = vld [vmem:[#allocation2 + $0x70] sm:$0xff]  ;;  %315 = vmatpush.msra.mxu3 %v108_v0  ;;  %v106_v4 = vld [vmem:[#allocation4 + $0x68] sm:$0xff]  ;;  %343 = vrcp.f32 %v434_v45 }
   0xf   :  { %132 = vmatpush.msra.mxu1 %v90_v1  ;;  %v88_v5 = vld [vmem:[#allocation2 + $0x68] sm:$0xff]  ;;  %v105_v6 = vld [vmem:[#allocation4 + $0x60] sm:$0xff]  ;;  %v104_v8 = vld [vmem:[#allocation4 + $0x58] sm:$0xff] }
  0x10   :  { %110 = vmatpush.msra.mxu0 %v107_v2  ;;  %316 = vmatpush.msra.mxu3 %v107_v2  ;;  %v87_v7 = vld [vmem:[#allocation2 + $0x60] sm:$0xff]  ;;  %v86_v9 = vld [vmem:[#allocation2 + $0x58] sm:$0xff]  ;;  %v103_v10 = vld [vmem:[#allocation4 + $0x50] sm:$0xff] }
  0x11   :  { %133 = vmatpush.msra.mxu1 %v89_v3  ;;  %v85_v11 = vld [vmem:[#allocation2 + $0x50] sm:$0xff]  ;;  %v102_v12 = vld [vmem:[#allocation4 + $0x48] sm:$0xff]  ;;  %v101_v14 = vld [vmem:[#allocation4 + $0x40] sm:$0xff] }
  0x12   :  { %111 = vmatpush.msra.mxu0 %v106_v4  ;;  %317 = vmatpush.msra.mxu3 %v106_v4  ;;  %v84_v13 = vld [vmem:[#allocation2 + $0x48] sm:$0xff]  ;;  %v83_v15 = vld [vmem:[#allocation2 + $0x40] sm:$0xff]  ;;  %v100_v16 = vld [vmem:[#allocation4 + $0x38] sm:$0xff] }
  0x13   :  { %134 = vmatpush.msra.mxu1 %v88_v5  ;;  %v82_v17 = vld [vmem:[#allocation2 + $0x38] sm:$0xff]  ;;  %v99_v18 = vld [vmem:[#allocation4 + $0x30] sm:$0xff]  ;;  %v98_v20 = vld [vmem:[#allocation4 + $0x28] sm:$0xff] }
  0x14   :  { %112 = vmatpush.msra.mxu0 %v105_v6  ;;  %318 = vmatpush.msra.mxu3 %v105_v6  ;;  %v81_v19 = vld [vmem:[#allocation2 + $0x30] sm:$0xff]  ;;  %v80_v21 = vld [vmem:[#allocation2 + $0x28] sm:$0xff]  ;;  %v97_v22 = vld [vmem:[#allocation4 + $0x20] sm:$0xff]  ;;  %v344_v46 = vpop.eup %343 }
  0x15   :  { %135 = vmatpush.msra.mxu1 %v87_v7  ;;  %v79_v23 = vld [vmem:[#allocation2 + $0x20] sm:$0xff]  ;;  %v96_v24 = vld [vmem:[#allocation4 + $0x18] sm:$0xff]  ;;  %v95_v26 = vld [vmem:[#allocation4 + $0x10] sm:$0xff]  ;;  %v166_v47 = vmul.f32 128.0, %v344_v46  ;;  %vm170_vm0 = vweird.f32 %v344_v46 }
  0x16   :  { %113 = vmatpush.msra.mxu0 %v104_v8  ;;  %319 = vmatpush.msra.mxu3 %v104_v8  ;;  %v78_v25 = vld [vmem:[#allocation2 + $0x18] sm:$0xff]  ;;  %v77_v27 = vld [vmem:[#allocation2 + $0x10] sm:$0xff]  ;;  %v94_v28 = vld [vmem:[#allocation4 + $0x8] sm:$0xff] }
  0x17   :  { %136 = vmatpush.msra.mxu1 %v86_v9  ;;  %v76_v29 = vld [vmem:[#allocation2 + $0x8] sm:$0xff]  ;;  %v93_v30 = vld [vmem:[#allocation4] sm:$0xff]  ;;  %v231_v48 = vld [vmem:[#allocation6 + $0x78] sm:$0xff]  ;;  %v167_v49 = vsub.f32 1.0, %v166_v47 }
  0x18   :  { %114 = vmatpush.msra.mxu0 %v103_v10  ;;  %320 = vmatpush.msra.mxu3 %v103_v10  ;;  %v75_v31 = vld [vmem:[#allocation2] sm:$0xff]  ;;  %v92_v34 = vld [vmem:[%s536_s1 + $0x8] sm:$0xff]  ;;  %v230_v61 = vld [vmem:[#allocation6 + $0x70] sm:$0xff] }
  0x19   :  { %137 = vmatpush.msra.mxu1 %v85_v11  ;;  %v91_v32 = vld [vmem:[%s536_s1] sm:$0xff]  ;;  %v74_v35 = vld [vmem:[%s535_s0 + $0x8] sm:$0xff]  ;;  %234 = vmatpush.msra.mxu2 %v231_v48  ;;  %v168_v50 = vmul.f32 %v344_v46, %v167_v49  ;;  %v227_v0 = vld [vmem:[#allocation6 + $0x58] sm:$0xff] }
  0x1a   :  { %115 = vmatpush.msra.mxu0 %v102_v12  ;;  %321 = vmatpush.msra.mxu3 %v102_v12  ;;  %v73_v33 = vld [vmem:[%s535_s0] sm:$0xff]  ;;  %v229_v62 = vld [vmem:[#allocation6 + $0x68] sm:$0xff]  ;;  %v226_v1 = vld [vmem:[#allocation6 + $0x50] sm:$0xff] }
  0x1b   :  { %138 = vmatpush.msra.mxu1 %v84_v13  ;;  %v337_v36 = vld [vmem:[%s539_s4] ss:$0 sm:$0xff]  ;;  %v169_v51 = vadd.f32 %v344_v46, %v168_v50  ;;  %235 = vmatpush.msra.mxu2 %v230_v61  ;;  %v225_v2 = vld [vmem:[#allocation6 + $0x48] sm:$0xff]  ;;  %v223_v4 = vld [vmem:[#allocation6 + $0x38] sm:$0xff] }
  0x1c   :  { %116 = vmatpush.msra.mxu0 %v101_v14  ;;  %322 = vmatpush.msra.mxu3 %v101_v14  ;;  %v228_v63 = vld [vmem:[#allocation6 + $0x60] sm:$0xff]  ;;  %v222_v5 = vld [vmem:[#allocation6 + $0x30] sm:$0xff]  ;;  %v221_v6 = vld [vmem:[#allocation6 + $0x28] sm:$0xff] }
  0x1d   :  { %139 = vmatpush.msra.mxu1 %v83_v15  ;;  %v499_v52 = vsel %vm170_vm0, %v344_v46, %v169_v51  ;;  %236 = vmatpush.msra.mxu2 %v229_v62  ;;  %v224_v3 = vld [vmem:[#allocation6 + $0x40] sm:$0xff]  ;;  %v219_v8 = vld [vmem:[#allocation6 + $0x18] sm:$0xff]  ;;  %v218_v9 = vld [vmem:[#allocation6 + $0x10] sm:$0xff] }
  0x1e   :  { %117 = vmatpush.msra.mxu0 %v100_v16  ;;  %323 = vmatpush.msra.mxu3 %v100_v16  ;;  %v220_v7 = vld [vmem:[#allocation6 + $0x20] sm:$0xff]  ;;  %v217_v10 = vld [vmem:[#allocation6 + $0x8] sm:$0xff] }
  0x1f   :  { %140 = vmatpush.msra.mxu1 %v82_v17  ;;  %237 = vmatpush.msra.mxu2 %v228_v63  ;;  %v216_v11 = vld [vmem:[#allocation6] sm:$0xff] }
  0x20   :  { %118 = vmatpush.msra.mxu0 %v99_v18  ;;  %324 = vmatpush.msra.mxu3 %v99_v18 }
  0x21   :  { %141 = vmatpush.msra.mxu1 %v81_v19  ;;  %238 = vmatpush.msra.mxu2 %v227_v0 }
  0x22   :  { %119 = vmatpush.msra.mxu0 %v98_v20  ;;  %325 = vmatpush.msra.mxu3 %v98_v20 }
  0x23   :  { %142 = vmatpush.msra.mxu1 %v80_v21  ;;  %239 = vmatpush.msra.mxu2 %v226_v1 }
  0x24   :  { %120 = vmatpush.msra.mxu0 %v97_v22  ;;  %326 = vmatpush.msra.mxu3 %v97_v22 }
  0x25   :  { %143 = vmatpush.msra.mxu1 %v79_v23  ;;  %240 = vmatpush.msra.mxu2 %v225_v2 }
  0x26   :  { %121 = vmatpush.msra.mxu0 %v96_v24  ;;  %327 = vmatpush.msra.mxu3 %v96_v24 }
  0x27   :  { %144 = vmatpush.msra.mxu1 %v78_v25  ;;  %241 = vmatpush.msra.mxu2 %v224_v3 }
  0x28   :  { %122 = vmatpush.msra.mxu0 %v95_v26  ;;  %328 = vmatpush.msra.mxu3 %v95_v26  ;;  %v338_v26 = vld [vmem:[%s539_s4 + $0x1] ss:$0 sm:$0xff] }
  0x29   :  { %145 = vmatpush.msra.mxu1 %v77_v27  ;;  %242 = vmatpush.msra.mxu2 %v223_v4 }
  0x2a   :  { %123 = vmatpush.msra.mxu0 %v94_v28  ;;  %329 = vmatpush.msra.mxu3 %v94_v28 }
  0x2b   :  { %146 = vmatpush.msra.mxu1 %v76_v29  ;;  %243 = vmatpush.msra.mxu2 %v222_v5 }
  0x2c   :  { %124 = vmatpush.msra.mxu0 %v93_v30  ;;  %330 = vmatpush.msra.mxu3 %v93_v30  ;;  %v339_v30 = vld [vmem:[%s539_s4 + $0x2] ss:$0 sm:$0xff] }
  0x2d   :  { %147 = vmatpush.msra.mxu1 %v75_v31  ;;  %125 = vmatmul.f32.vlgmr.msra.gmra.mxu0 %v91_v32 }
  0x2e   :  { %148 = vmatmul.f32.vlgmr.msra.gmra.mxu1 %v73_v33  ;;  %128 = vmatmul.f32.vlgmr.msra.gmra.mxu3 %v92_v34 }
  0x2f   :  { %244 = vmatpush.msra.mxu2 %v221_v6  ;;  %v341_v6 = vld [vmem:[%s541_s6 + $0x1] ss:$0 sm:$0xff] }
  0x31   :  { %245 = vmatpush.msra.mxu2 %v220_v7 }
  0x33   :  { %246 = vmatpush.msra.mxu2 %v219_v8 }
  0x35   :  { %247 = vmatpush.msra.mxu2 %v218_v9 }
  0x36   :  { %151 = vmatmul.f32.gmra.mxu1 %v74_v35 }
  0x37   :  { %248 = vmatpush.msra.mxu2 %v217_v10 }
  0x39   :  { %249 = vmatpush.msra.mxu2 %v216_v11 }
  0xaa   :  { %v126_v37 = vpop.f32.mrf.mxu0 }
  0xab   :  { %v149_v38 = vpop.f32.mrf.mxu1 }
  0xac   :  { %v150_v39 = vadd.f32 %v149_v38, %v126_v37 }
  0xae   :  { %v157_v40 = vadd.f32 %v337_v36, %v150_v39 }
  0xb0   :  { %161 = vadd.xlane.f32.xlu0 %v157_v40 }
  0xb1   :  { %v129_v41 = vpop.f32.mrf.mxu3 }
  0xb3   :  { %v152_v42 = vpop.f32.mrf.mxu1 }
  0xb4   :  { %v153_v43 = vadd.f32 %v152_v42, %v129_v41  ;;  %v340_v42 = vld [vmem:[%s541_s6] ss:$0 sm:$0xff] }
  0xb6   :  { %v158_v44 = vadd.f32 %v337_v36, %v153_v43 }
  0xb8   :  { %163 = vadd.xlane.f32.xlu0 %v158_v44 }
 0x123   :  { %v162_v53 = vpop.xlane.xlu0 %161 }
 0x124   :  { %v172_v54 = vmul.f32 %v499_v52, %v162_v53 }
 0x126   :  { %v174_v55 = vsub.f32 %v157_v40, %v172_v54 }
 0x128   :  { %v176_v56 = vmul.f32 %v174_v55, %v174_v55 }
 0x12a   :  { %178 = vadd.xlane.f32.xlu1 %v176_v56 }
 0x12b   :  { %v164_v57 = vpop.xlane.xlu0 %163 }
 0x12c   :  { %v173_v58 = vmul.f32 %v499_v52, %v164_v57 }
 0x12e   :  { %v503_v59 = vsub.f32 %v158_v44, %v173_v58 }
 0x130   :  { %v177_v60 = vmul.f32 %v503_v59, %v503_v59 }
 0x132   :  { %180 = vadd.xlane.f32.xlu1 %v177_v60 }
 0x19d   :  { %v179_v12 = vpop.xlane.xlu1 %178 }
 0x19e   :  { %v182_v13 = vmul.f32 %v179_v12, %v499_v52 }
 0x1a0   :  { %v184_v14 = vadd.f32 1e-05, %v182_v13 }
 0x1a2   :  { %345 = vrsqrt.f32 %v184_v14  ;;  %vm192_vm2 = vweird.f32 %v184_v14 }
 0x1a5   :  { %v181_v15 = vpop.xlane.xlu1 %180 }
 0x1a6   :  { %v183_v16 = vmul.f32 %v181_v15, %v499_v52 }
 0x1a8   :  { %v346_v17 = vpop.eup %345  ;;  %v185_v18 = vadd.f32 1e-05, %v183_v16 }
 0x1a9   :  { %v187_v19 = vmul.f32 %v346_v17, %v184_v14  ;;  %vm193_vm1 = vweird.f32 %v346_v17 }
 0x1aa   :  { %347 = vrsqrt.f32 %v185_v18  ;;  %vm194_vm3 = vmor %vm192_vm2, %vm193_vm1  ;;  %vm202_vm5 = vweird.f32 %v185_v18 }
 0x1ab   :  { %v188_v20 = vmul.f32 %v346_v17, %v187_v19 }
 0x1ad   :  { %v189_v21 = vmul.f32 0.5, %v188_v20 }
 0x1af   :  { %v190_v22 = vsub.f32 1.5, %v189_v21 }
 0x1b0   :  { %v348_v23 = vpop.eup %347 }
 0x1b1   :  { %v191_v24 = vmul.f32 %v346_v17, %v190_v22  ;;  %v197_v25 = vmul.f32 %v348_v23, %v185_v18  ;;  %vm203_vm4 = vweird.f32 %v348_v23 }
 0x1b2   :  { %vm204_vm6 = vmor %vm202_vm5, %vm203_vm4 }
 0x1b3   :  { %v198_v27 = vmul.f32 %v348_v23, %v197_v25  ;;  %v195_v28 = vsel %vm194_vm3, %v346_v17, %v191_v24 }
 0x1b4   :  { %v206_v29 = vmul.f32 %v195_v28, %v174_v55 }
 0x1b5   :  { %v199_v31 = vmul.f32 0.5, %v198_v27 }
 0x1b6   :  { %v209_v32 = vmul.f32 %v338_v26, %v206_v29 }
 0x1b7   :  { %v200_v33 = vsub.f32 1.5, %v199_v31 }
 0x1b8   :  { %v212_v34 = vadd.f32 %v339_v30, %v209_v32 }
 0x1b9   :  { %v201_v35 = vmul.f32 %v348_v23, %v200_v33 }
 0x1ba   :  { %v214_v36 = vmax.f32 %v212_v34, 0.0 }
 0x1bb   :  { %v205_v37 = vsel %vm204_vm6, %v348_v23, %v201_v35 }
 0x1bc   :  { %250 = vmatmul.f32.vlgmr.msra.gmra.mxu2 %v214_v36  ;;  %v207_v38 = vmul.f32 %v205_v37, %v503_v59 }
 0x1be   :  { %v210_v39 = vmul.f32 %v338_v26, %v207_v38 }
 0x1c0   :  { %v213_v40 = vadd.f32 %v339_v30, %v210_v39 }
 0x1c2   :  { %v215_v41 = vmax.f32 %v213_v40, 0.0 }
 0x1c4   :  { %253 = vmatmul.f32.gmra.mxu2 %v215_v41 }
 0x23f   :  { %v251_v43 = vpop.f32.mrf.mxu2 }
 0x240   :  { %v252_v44 = vadd.f32 %v340_v42, %v251_v43 }
 0x242   :  { %259 = vadd.xlane.f32.xlu2 %v252_v44 }
 0x247   :  { %v254_v45 = vpop.f32.mrf.mxu2 }
 0x248   :  { %v255_v46 = vadd.f32 %v340_v42, %v254_v45 }
 0x24a   :  { %261 = vadd.xlane.f32.xlu2 %v255_v46 }
 0x2b5   :  { %v260_v47 = vpop.xlane.xlu2 %259 }
 0x2b6   :  { %v263_v48 = vmul.f32 %v260_v47, %v499_v52 }
 0x2b8   :  { %v265_v49 = vsub.f32 %v252_v44, %v263_v48 }
 0x2ba   :  { %v267_v50 = vmul.f32 %v265_v49, %v265_v49 }
 0x2bc   :  { %269 = vadd.xlane.f32.xlu0 %v267_v50 }
 0x2bd   :  { %v262_v51 = vpop.xlane.xlu2 %261 }
 0x2be   :  { %v264_v53 = vmul.f32 %v262_v51, %v499_v52 }
 0x2c0   :  { %v266_v54 = vsub.f32 %v255_v46, %v264_v53 }
 0x2c2   :  { %v268_v55 = vmul.f32 %v266_v54, %v266_v54 }
 0x2c4   :  { %271 = vadd.xlane.f32.xlu1 %v268_v55 }
 0x32f   :  { %v270_v56 = vpop.xlane.xlu0 %269 }
 0x330   :  { %v273_v57 = vmul.f32 %v270_v56, %v499_v52 }
 0x332   :  { %v275_v58 = vadd.f32 1e-05, %v273_v57 }
 0x334   :  { %349 = vrsqrt.f32 %v275_v58  ;;  %vm283_vm8 = vweird.f32 %v275_v58 }
 0x337   :  { %v272_v59 = vpop.xlane.xlu1 %271 }
 0x338   :  { %v274_v60 = vmul.f32 %v272_v59, %v499_v52  ;;  %v342_v52 = vld [vmem:[%s541_s6 + $0x2] ss:$0 sm:$0xff] }
 0x33a   :  { %v350_v61 = vpop.eup %349  ;;  %v276_v62 = vadd.f32 1e-05, %v274_v60 }
 0x33b   :  { %v278_v63 = vmul.f32 %v350_v61, %v275_v58  ;;  %vm284_vm7 = vweird.f32 %v350_v61 }
 0x33c   :  { %351 = vrsqrt.f32 %v276_v62  ;;  %vm285_vm9 = vmor %vm283_vm8, %vm284_vm7  ;;  %vm293_vm11 = vweird.f32 %v276_v62 }
 0x33d   :  { %v279_v0 = vmul.f32 %v350_v61, %v278_v63 }
 0x33f   :  { %v280_v1 = vmul.f32 0.5, %v279_v0 }
 0x341   :  { %v281_v2 = vsub.f32 1.5, %v280_v1 }
 0x342   :  { %v352_v3 = vpop.eup %351 }
 0x343   :  { %v282_v4 = vmul.f32 %v350_v61, %v281_v2  ;;  %v288_v5 = vmul.f32 %v352_v3, %v276_v62  ;;  %vm294_vm10 = vweird.f32 %v352_v3 }
 0x344   :  { %vm295_vm12 = vmor %vm293_vm11, %vm294_vm10 }
 0x345   :  { %v286_v7 = vsel %vm285_vm9, %v350_v61, %v282_v4  ;;  %v289_v8 = vmul.f32 %v352_v3, %v288_v5 }
 0x346   :  { %v297_v9 = vmul.f32 %v286_v7, %v265_v49 }
 0x347   :  { %v290_v10 = vmul.f32 0.5, %v289_v8 }
 0x348   :  { %v300_v11 = vmul.f32 %v341_v6, %v297_v9 }
 0x349   :  { %v291_v12 = vsub.f32 1.5, %v290_v10 }
 0x34a   :  { %v303_v13 = vadd.f32 %v342_v52, %v300_v11 }
 0x34b   :  { %v292_v14 = vmul.f32 %v352_v3, %v291_v12 }
 0x34c   :  { %v305_v15 = vmax.f32 %v303_v13, 0.0 }
 0x34d   :  { %v296_v16 = vsel %vm295_vm12, %v352_v3, %v292_v14 }
 0x34e   :  { %307 = vst [vmem:[%s542_s7] sm:$0xff] %v305_v15  ;;  %v298_v17 = vmul.f32 %v296_v16, %v266_v54 }
 0x350   :  { %v301_v18 = vmul.f32 %v341_v6, %v298_v17 }
 0x352   :  { %v304_v19 = vadd.f32 %v342_v52, %v301_v18 }
 0x354   :  { %v306_v20 = vmax.f32 %v304_v19, 0.0 }
 0x356   :  { %308 = vst [vmem:[%s542_s7 + $0x8] sm:$0xff] %v306_v20 }
 0x357   :  { %313 = vsyncpa [#allocation3], 1 }
 0x358   :  { %314 = vsyncpa [#allocation5], 1 }

</bundles_post_ra>
